<compile_context>
chip_gen: v7x
topology: tpu7x:2x2x1
jax: 0.10.0
libtpu: 0.0.40
codegen_flags: <defaults>
</compile_context>

<pallas_src>
import functools

import jax
import jax.numpy as jnp
from jax import lax
from jax.experimental import pallas as pl
from jax.experimental.pallas import tpu as pltpu


# -----------------------------------------------------------------------------
# In-kernel helper: one LSTM layer, serial recurrence fully unrolled.
# -----------------------------------------------------------------------------
def _lstm_layer(xg_tm, w_hh_fused, nh, *, last_idx=None, collect_seq=False,
                fcd_row=None, fcd_bias=None):
    """Serial LSTM recurrence (trace-time unrolled).

    xg_tm      : (L, N, 4H) hoisted input projections, bias folded in,
                 time-major so per-step access is a leading-dim index.
    w_hh_fused : (H, 4H) recurrent weights, gates (i, f, g, o) stacked on lanes.
    last_idx   : (N, 1) int32 -> also track the hidden state at that step.
    collect_seq: also return the full hidden sequence (L, N, H).
    fcd_row    : (1, H) -> fuse fcd into the loop, return per-step (N, 1) cols.
    """
    steps, n, _ = xg_tm.shape
    h = jnp.zeros((n, nh), jnp.float32)
    c = jnp.zeros((n, nh), jnp.float32)
    h_last = jnp.zeros((n, nh), jnp.float32) if last_idx is not None else None
    seq = [] if collect_seq else None
    xhat_cols = [] if fcd_row is not None else None

    # TODO(synk): for production L >> 16, switch this trace-time-unrolled loop
    # to lax.fori_loop(..., unroll=2..4) over a VMEM ref to bound vreg live
    # ranges and compiled program size.
    for t in range(steps):
        # ONE 128-lane-wide recurrent matmul per step (i|f|g|o stacked), then
        # static lane slices per gate.
        a = xg_tm[t] + jnp.dot(h, w_hh_fused,
                               preferred_element_type=jnp.float32)   # (N, 4H)
        i_g = jax.nn.sigmoid(a[:, 0 * nh:1 * nh])
        f_g = jax.nn.sigmoid(a[:, 1 * nh:2 * nh])
        g_g = jnp.tanh(a[:, 2 * nh:3 * nh])
        o_g = jax.nn.sigmoid(a[:, 3 * nh:4 * nh])
        c = f_g * c + i_g * g_g
        h = o_g * jnp.tanh(c)
        if collect_seq:
            seq.append(h)
        if last_idx is not None:
            h_last = jnp.where(last_idx == t, h, h_last)
        if fcd_row is not None:
            # fcd (nout == 1) fused per step: mul + lane reduce, never stored.
            xhat_cols.append(jnp.sum(h * fcd_row, axis=-1, keepdims=True)
                             + fcd_bias)

    hseq = jnp.stack(seq, axis=0) if collect_seq else None
    return h_last, hseq, xhat_cols


# -----------------------------------------------------------------------------
# Fused forward kernel
# -----------------------------------------------------------------------------
def _make_dagmmts_kernel(*, nlayers, seq_l, nin, nh, z_dim):
    g4 = 4 * nh

    def kernel(*refs):
        it = iter(refs)
        x_ref, m_ref, s_ref = next(it), next(it), next(it)
        enc = [(next(it), next(it), next(it)) for _ in range(nlayers)]
        dec = [(next(it), next(it), next(it)) for _ in range(nlayers)]
        fce_w, fce_b = next(it), next(it)
        fcd_w, fcd_b = next(it), next(it)
        fc9_w, fc9_b = next(it), next(it)
        fc10_w, fc10_b = next(it), next(it)
        out_ref = next(it)                               # (Nb, out_width) slab

        x = x_ref[...]                                   # (Nb, L, nin)
        nb = x.shape[0]
        dt = x[:, :, 0]                                  # (Nb, L)
        x1 = x[:, :, 1]                                  # (Nb, L)
        mask = (dt != 0.0).astype(jnp.float32)
        seq_len = jnp.sum(mask, axis=-1, keepdims=True)  # (Nb, 1)
        last_f = seq_len - 1.0
        # torch indexes z_c with (seq_len - 1); -1 wraps to the last timestep
        last_f = jnp.where(last_f < 0.0, jnp.float32(seq_l - 1), last_f)
        last_idx = last_f.astype(jnp.int32)              # (Nb, 1)

        dt_tm = dt.T                                     # (L, Nb), one 2-D xpose

        # ---------------- encoder (fce on last valid hidden only) ----------
        layer_in_tm = None
        h_last = None
        for li, (w_ih_f, w_hh_f, b_f) in enumerate(enc):
            top = li == nlayers - 1
            if li == 0:
                # Hoisted layer-0 input projection: K = nin is tiny, so use VPU
                # broadcast-MADs instead of a <2%-utilized MXU matmul.
                xg = jnp.zeros((seq_l, nb, g4), jnp.float32) + b_f[...][None, :, :]
                for k in range(nin):
                    feat_tm = dt_tm if k == 0 else x[:, :, k].T     # (L, Nb)
                    xg = xg + feat_tm[:, :, None] * w_ih_f[k, :][None, None, :]
            else:
                # Layer-to-layer input: K = nh -> one hoisted MXU matmul.
                flat = layer_in_tm.reshape(seq_l * nb, nh)
                xg = (jnp.dot(flat, w_ih_f[...],
                              preferred_element_type=jnp.float32)
                      + b_f[...]).reshape(seq_l, nb, g4)
            h_last_l, hseq, _ = _lstm_layer(
                xg, w_hh_f[...], nh,
                last_idx=last_idx if top else None,
                collect_seq=not top)
            if top:
                h_last = h_last_l
            else:
                layer_in_tm = hseq

        # fce applied only to the last valid hidden state; output width z_dim
        # is tiny -> mul + lane reduce instead of an MXU matmul.
        zc_cols = [jnp.sum(h_last * fce_w[j, :][None, :], axis=-1, keepdims=True)
                   + fce_b[:, j:j + 1] for j in range(z_dim)]
        z_c = zc_cols[0] if z_dim == 1 else jnp.concatenate(zc_cols, axis=1)

        # ---------------- decoder (dropout on z == identity) ----------------
        # Layer-0 input x_lat = [z_c (time-broadcast), dt] is never
        # materialized; its hoisted projection is K = z_dim+1 VPU MADs.
        layer_in_tm = None
        xhat_cols = None
        for li, (w_ih_f, w_hh_f, b_f) in enumerate(dec):
            top = li == nlayers - 1
            if li == 0:
                const = jnp.zeros((nb, g4), jnp.float32) + b_f[...]
                for j in range(z_dim):
                    const = const + z_c[:, j:j + 1] * w_ih_f[j, :][None, :]
                xg = (const[None, :, :]
                      + dt_tm[:, :, None] * w_ih_f[z_dim, :][None, None, :])
            else:
                flat = layer_in_tm.reshape(seq_l * nb, nh)
                xg = (jnp.dot(flat, w_ih_f[...],
                              preferred_element_type=jnp.float32)
                      + b_f[...]).reshape(seq_l, nb, g4)
            if top:
                _, _, xhat_cols = _lstm_layer(
                    xg, w_hh_f[...], nh,
                    fcd_row=fcd_w[...], fcd_bias=fcd_b[...])
            else:
                _, layer_in_tm, _ = _lstm_layer(
                    xg, w_hh_f[...], nh, collect_seq=True)

        x_hat = (xhat_cols[0] if seq_l == 1
                 else jnp.concatenate(xhat_cols, axis=1))    # (Nb, L) batch-major

        # ---------------- reconstruction features (reference formulas) ------
        diff = x_hat - x1
        rec1_num = jnp.sum(diff * diff * mask, axis=-1, keepdims=True)
        x1_sq = jnp.sum(x1 * x1, axis=-1, keepdims=True)
        xh_sq = jnp.sum(x_hat * x_hat, axis=-1, keepdims=True)
        # rec_1 = rec1_num / ||x1||, no eps (matches torch); rsqrt -> EUP slot.
        rec_1 = rec1_num * lax.rsqrt(x1_sq)
        eps = jnp.float32(1e-8)
        denom = jnp.maximum(jnp.sqrt(x1_sq * xh_sq), eps)
        rec_2 = (jnp.sum(x1 * x_hat, axis=-1, keepdims=True)
                 * pl.reciprocal(denom, approx=True))

        # ---------------- z concat + estimation net -------------------------
        # TODO(synk): F.dropout(p=0.5) inside estimate() (training-mode default
        # in the reference) is treated as identity.
        z = jnp.concatenate([z_c, rec_1, rec_2, m_ref[...], s_ref[...]], axis=1)
        h9 = jnp.tanh(jnp.dot(z, fc9_w[...], preferred_element_type=jnp.float32)
                      + fc9_b[...])
        logits = (jnp.dot(h9, fc10_w[...], preferred_element_type=jnp.float32)
                  + fc10_b[...])
        logits = logits - jnp.max(logits, axis=1, keepdims=True)
        e = jnp.exp(logits)
        # Exact reciprocal so gamma rows sum to 1 (review correctness note).
        gamma = e / jnp.sum(e, axis=1, keepdims=True)

        # Single lane-dense output slab -> one unmasked store stream.
        out_ref[...] = jnp.concatenate([z_c, x_hat, z, gamma], axis=1)

    return kernel


# -----------------------------------------------------------------------------
# Public wrapper: batch grid + single pallas_call, outputs split from the slab.
# -----------------------------------------------------------------------------
def dagmmts_forward(params, x, m, s, p=None, *, batch_tile=None):
    if p is not None:
        # TODO(synk): optional `p` branch (fc9 input z_dim + 5) not wired up.
        raise NotImplementedError("p != None is not supported by the fused kernel")

    x = x.astype(jnp.float32)
    m = m.astype(jnp.float32)
    s = s.astype(jnp.float32)
    n_batch, seq_l, nin = x.shape
    nh, z_dim, n_gmm = params["nh"], params["z_dim"], params["n_gmm"]
    nlayers = len(params["enc"])

    # Batch tile: default = whole batch at toy sizes.  For production N, pick a
    # multiple of 8 sized against scoped VMEM (re-derive per generation: v7x
    # has half the VMEM of v5e/v6e).
    nb = n_batch if batch_tile is None else batch_tile
    assert n_batch % nb == 0, "batch_tile must divide the batch size"
    # TODO(synk): optional bf16 storage of weights / hoisted gates (v6e/v7x
    # VMEM + MXU throughput win) is not enabled; everything stays f32.

    args = [x, m, s]
    for layer in params["enc"]:
        args.extend(layer)
    for layer in params["dec"]:
        args.extend(layer)
    args.extend([params["fce"][0], params["fce"][1],
                 params["fcd"][0], params["fcd"][1],
                 params["fc9"][0], params["fc9"][1],
                 params["fc10"][0], params["fc10"][1]])

    def const_spec(a):
        nd = a.ndim
        return pl.BlockSpec(a.shape, lambda i, _nd=nd: (0,) * _nd)

    in_specs = [
        pl.BlockSpec((nb, seq_l, nin), lambda i: (i, 0, 0)),   # x
        pl.BlockSpec((nb, 1), lambda i: (i, 0)),               # m
        pl.BlockSpec((nb, 1), lambda i: (i, 0)),               # s
    ] + [const_spec(a) for a in args[3:]]                      # weights resident

    out_w = z_dim + seq_l + (z_dim + 4) + n_gmm
    out_shape = jax.ShapeDtypeStruct((n_batch, out_w), jnp.float32)
    out_spec = pl.BlockSpec((nb, out_w), lambda i: (i, 0))

    kernel = _make_dagmmts_kernel(nlayers=nlayers, seq_l=seq_l, nin=nin,
                                  nh=nh, z_dim=z_dim)
    out = pl.pallas_call(
        kernel,
        out_shape=out_shape,
        grid=(n_batch // nb,),
        in_specs=in_specs,
        out_specs=out_spec,
        compiler_params=pltpu.CompilerParams(
            dimension_semantics=("parallel",)),
    )(*args)

    z_c = out[:, :z_dim]
    x_hat = out[:, z_dim:z_dim + seq_l]
    z = out[:, z_dim + seq_l:z_dim + seq_l + z_dim + 4]
    gamma = out[:, z_dim + seq_l + z_dim + 4:]
    return z_c, x_hat, z, gamma


# -----------------------------------------------------------------------------
# Parameter initialization (PyTorch-like uniform ranges) + kernel layouts
# -----------------------------------------------------------------------------
def _uniform(key, shape, scale):
    return jax.random.uniform(key, shape, jnp.float32, -scale, scale)


def init_lstm_params(key, input_size, hidden_size, num_layers):
    layers = []
    k = 1.0 / float(hidden_size) ** 0.5
    for layer in range(num_layers):
        in_size = input_size if layer == 0 else hidden_size
        key, k1, k2, k3, k4 = jax.random.split(key, 5)
        w_ih = _uniform(k1, (4 * hidden_size, in_size), k)      # torch layout
        w_hh = _uniform(k2, (4 * hidden_size, hidden_size), k)
        b_ih = _uniform(k3, (4 * hidden_size,), k)
        b_hh = _uniform(k4, (4 * hidden_size,), k)
        # Fused, lane-stacked kernel layout: columns [g*nh:(g+1)*nh] hold gate g
        # in PyTorch order (i, f, g, o); kernel computes x @ W (no in-kernel
        # gate slicing of the weights and a single 4H-wide recurrent matmul).
        w_ih_f = w_ih.T                                         # (in, 4nh)
        w_hh_f = w_hh.T                                         # (nh, 4nh)
        b_f = (b_ih + b_hh)[None, :]                            # (1, 4nh)
        layers.append((w_ih_f, w_hh_f, b_f))
    return key, layers


def init_linear_params(key, in_f, out_f, *, layout="xw"):
    k = 1.0 / float(in_f) ** 0.5
    key, k1, k2 = jax.random.split(key, 3)
    w = _uniform(k1, (out_f, in_f), k)          # torch layout (out, in)
    b = _uniform(k2, (out_f,), k)
    if layout == "xw":
        return key, (w.T, b[None, :])           # kernel does x @ w + b
    return key, (w, b[None, :])                 # row layout (mul + lane reduce)


def init_dagmmts_params(seed, nin, nh, nout, nlayers, n_gmm=2, z_dim=1,
                        folded=False):
    assert nout == 1, "reference forward squeezes fcd output; nout must be 1"
    key = jax.random.PRNGKey(seed)
    key, enc = init_lstm_params(key, nin, nh, nlayers)
    key, dec = init_lstm_params(key, z_dim + 1, nh, nlayers)
    key, fcd = init_linear_params(key, nh, nout, layout="row")   # (1, nh), (1, 1)
    key, fce = init_linear_params(key, nh, z_dim, layout="row")  # (z_dim, nh)
    z_in = z_dim + 5 if folded else z_dim + 4
    key, fc9 = init_linear_params(key, z_in, 16)
    key, fc10 = init_linear_params(key, 16, n_gmm)
    return dict(enc=enc, dec=dec, fcd=fcd, fce=fce, fc9=fc9, fc10=fc10,
                nh=nh, z_dim=z_dim, n_gmm=n_gmm, nout=nout)


if __name__ == "__main__":
    # Small shapes consistent with the module:
    #   batch N=2, seq L=8, features nin=4 (feature 0 = dt, feature 1 = value),
    #   hidden nh=32, nout=1, nlayers=1, z_dim=1, n_gmm=2, m/s: (N, 1)
    N, L, NIN, NH, NOUT, NLAYERS, NGMM, ZDIM = 2, 8, 4, 32, 1, 1, 2, 1

    params = init_dagmmts_params(seed=0, nin=NIN, nh=NH, nout=NOUT,
                                 nlayers=NLAYERS, n_gmm=NGMM, z_dim=ZDIM)

    key = jax.random.PRNGKey(0)
    kx, km, ks = jax.random.split(key, 3)
    x = jax.random.normal(kx, (N, L, NIN), jnp.float32)
    m = jax.random.normal(km, (N, 1), jnp.float32)
    s = jax.random.normal(ks, (N, 1), jnp.float32)

    fwd = jax.jit(functools.partial(dagmmts_forward, params))
    z_c, x_hat, z, gamma = fwd(x, m, s)
    jax.block_until_ready((z_c, x_hat, z, gamma))

    assert z_c.shape == (N, ZDIM)
    assert x_hat.shape == (N, L)
    assert z.shape == (N, ZDIM + 4)
    assert gamma.shape == (N, NGMM)
    assert bool(jnp.all(jnp.isfinite(gamma)))
    assert bool(jnp.all(jnp.isfinite(z)))
    print("KERNEL_OK")
</pallas_src>

<mosaic_0001>
module attributes {stable_mosaic.version = 11 : i64} {
  func.func @kernel(%arg0: i32, %arg1: memref<2x8x4xf32, #tpu.memory_space<vmem>>, %arg2: memref<2x1xf32, #tpu.memory_space<vmem>>, %arg3: memref<2x1xf32, #tpu.memory_space<vmem>>, %arg4: memref<4x128xf32, #tpu.memory_space<vmem>>, %arg5: memref<32x128xf32, #tpu.memory_space<vmem>>, %arg6: memref<1x128xf32, #tpu.memory_space<vmem>>, %arg7: memref<2x128xf32, #tpu.memory_space<vmem>>, %arg8: memref<32x128xf32, #tpu.memory_space<vmem>>, %arg9: memref<1x128xf32, #tpu.memory_space<vmem>>, %arg10: memref<1x32xf32, #tpu.memory_space<vmem>>, %arg11: memref<1x1xf32, #tpu.memory_space<vmem>>, %arg12: memref<1x32xf32, #tpu.memory_space<vmem>>, %arg13: memref<1x1xf32, #tpu.memory_space<vmem>>, %arg14: memref<5x16xf32, #tpu.memory_space<vmem>>, %arg15: memref<1x16xf32, #tpu.memory_space<vmem>>, %arg16: memref<16x2xf32, #tpu.memory_space<vmem>>, %arg17: memref<1x2xf32, #tpu.memory_space<vmem>>, %arg18: memref<2x16xf32, #tpu.memory_space<vmem>>) attributes {dimension_semantics = [#tpu.dimension_semantics<parallel>], iteration_bounds = array<i64: 1>, scalar_prefetch = 0 : i64, scratch_operands = 0 : i64, tpu.core_type = #tpu.core_type<tc>, window_params = [{transform_indices = @transform_0, window_bounds = array<i64: 2, 8, 4>}, {transform_indices = @transform_1, window_bounds = array<i64: 2, 1>}, {transform_indices = @transform_2, window_bounds = array<i64: 2, 1>}, {pipeline_mode = #tpu.pipeline_mode<synchronous>, transform_indices = @transform_3, window_bounds = array<i64: 4, 128>}, {pipeline_mode = #tpu.pipeline_mode<synchronous>, transform_indices = @transform_4, window_bounds = array<i64: 32, 128>}, {pipeline_mode = #tpu.pipeline_mode<synchronous>, transform_indices = @transform_5, window_bounds = array<i64: 1, 128>}, {pipeline_mode = #tpu.pipeline_mode<synchronous>, transform_indices = @transform_6, window_bounds = array<i64: 2, 128>}, {pipeline_mode = #tpu.pipeline_mode<synchronous>, transform_indices = @transform_7, window_bounds = array<i64: 32, 128>}, {pipeline_mode = #tpu.pipeline_mode<synchronous>, transform_indices = @transform_8, window_bounds = array<i64: 1, 128>}, {pipeline_mode = #tpu.pipeline_mode<synchronous>, transform_indices = @transform_9, window_bounds = array<i64: 1, 32>}, {pipeline_mode = #tpu.pipeline_mode<synchronous>, transform_indices = @transform_10, window_bounds = array<i64: 1, 1>}, {pipeline_mode = #tpu.pipeline_mode<synchronous>, transform_indices = @transform_11, window_bounds = array<i64: 1, 32>}, {pipeline_mode = #tpu.pipeline_mode<synchronous>, transform_indices = @transform_12, window_bounds = array<i64: 1, 1>}, {pipeline_mode = #tpu.pipeline_mode<synchronous>, transform_indices = @transform_13, window_bounds = array<i64: 5, 16>}, {pipeline_mode = #tpu.pipeline_mode<synchronous>, transform_indices = @transform_14, window_bounds = array<i64: 1, 16>}, {pipeline_mode = #tpu.pipeline_mode<synchronous>, transform_indices = @transform_15, window_bounds = array<i64: 16, 2>}, {pipeline_mode = #tpu.pipeline_mode<synchronous>, transform_indices = @transform_16, window_bounds = array<i64: 1, 2>}, {transform_indices = @transform_17, window_bounds = array<i64: 2, 16>}]} {
    %c0 = arith.constant 0 : index
    %c0_0 = arith.constant 0 : index
    %c0_1 = arith.constant 0 : index
    %0 = vector.load %arg1[%c0, %c0_0, %c0_1] : memref<2x8x4xf32, #tpu.memory_space<vmem>>, vector<2x8x4xf32>
    %1 = vector.extract_strided_slice %0 {offsets = [0, 0, 0], sizes = [2, 8, 1], strides = [1, 1, 1]} : vector<2x8x4xf32> to vector<2x8x1xf32>
    %2 = vector.shape_cast %1 : vector<2x8x1xf32> to vector<2x8xf32>
    %3 = vector.extract_strided_slice %0 {offsets = [0, 0, 1], sizes = [2, 8, 1], strides = [1, 1, 1]} : vector<2x8x4xf32> to vector<2x8x1xf32>
    %4 = vector.shape_cast %3 : vector<2x8x1xf32> to vector<2x8xf32>
    %cst = arith.constant 0.000000e+00 : f32
    %5 = vector.broadcast %cst : f32 to vector<2x8xf32>
    %6 = arith.cmpf one, %2, %5 : vector<2x8xf32>
    %7 = arith.extui %6 : vector<2x8xi1> to vector<2x8xi32>
    %8 = arith.sitofp %7 : vector<2x8xi32> to vector<2x8xf32>
    %cst_2 = arith.constant dense<0.000000e+00> : vector<2xf32>
    %9 = vector.multi_reduction <add>, %8, %cst_2 [1] : vector<2x8xf32> to vector<2xf32>
    %10 = vector.shape_cast %9 : vector<2xf32> to vector<2x1xf32>
    %cst_3 = arith.constant 1.000000e+00 : f32
    %11 = vector.broadcast %cst_3 : f32 to vector<2x1xf32>
    %12 = arith.subf %10, %11 : vector<2x1xf32>
    %cst_4 = arith.constant 0.000000e+00 : f32
    %13 = vector.broadcast %cst_4 : f32 to vector<2x1xf32>
    %14 = arith.cmpf olt, %12, %13 : vector<2x1xf32>
    %cst_5 = arith.constant 7.000000e+00 : f32
    %15 = vector.broadcast %cst_5 : f32 to vector<2x1xf32>
    %16 = arith.select %14, %15, %12 : vector<2x1xi1>, vector<2x1xf32>
    %17 = arith.fptosi %16 : vector<2x1xf32> to vector<2x1xi32>
    %18 = tpu.transpose %2, [1, 0] : vector<2x8xf32> -> vector<8x2xf32>
    %cst_6 = arith.constant 0.000000e+00 : f32
    %19 = vector.broadcast %cst_6 : f32 to vector<8x2x128xf32>
    %c0_7 = arith.constant 0 : index
    %c0_8 = arith.constant 0 : index
    %20 = vector.load %arg6[%c0_7, %c0_8] : memref<1x128xf32, #tpu.memory_space<vmem>>, vector<1x128xf32>
    %21 = vector.shape_cast %20 : vector<1x128xf32> to vector<1x1x128xf32>
    %22 = vector.broadcast %21 : vector<1x1x128xf32> to vector<8x2x128xf32>
    %23 = arith.addf %19, %22 : vector<8x2x128xf32>
    %24 = vector.shape_cast %18 : vector<8x2xf32> to vector<8x2x1xf32>
    %c0_9 = arith.constant 0 : index
    %c0_10 = arith.constant 0 : index
    %25 = vector.load %arg4[%c0_9, %c0_10] : memref<4x128xf32, #tpu.memory_space<vmem>>, vector<1x128xf32>
    %26 = vector.shape_cast %25 : vector<1x128xf32> to vector<128xf32>
    %27 = vector.shape_cast %26 : vector<128xf32> to vector<1x1x128xf32>
    %28 = vector.broadcast %24 : vector<8x2x1xf32> to vector<8x2x128xf32>
    %29 = vector.broadcast %27 : vector<1x1x128xf32> to vector<8x2x128xf32>
    %30 = arith.mulf %28, %29 : vector<8x2x128xf32>
    %31 = arith.addf %23, %30 : vector<8x2x128xf32>
    %32 = vector.extract_strided_slice %0 {offsets = [0, 0, 1], sizes = [2, 8, 1], strides = [1, 1, 1]} : vector<2x8x4xf32> to vector<2x8x1xf32>
    %33 = vector.shape_cast %32 : vector<2x8x1xf32> to vector<2x8xf32>
    %34 = tpu.transpose %33, [1, 0] : vector<2x8xf32> -> vector<8x2xf32>
    %35 = vector.shape_cast %34 : vector<8x2xf32> to vector<8x2x1xf32>
    %c1 = arith.constant 1 : index
    %c0_11 = arith.constant 0 : index
    %36 = vector.load %arg4[%c1, %c0_11] : memref<4x128xf32, #tpu.memory_space<vmem>>, vector<1x128xf32>
    %37 = vector.shape_cast %36 : vector<1x128xf32> to vector<128xf32>
    %38 = vector.shape_cast %37 : vector<128xf32> to vector<1x1x128xf32>
    %39 = vector.broadcast %35 : vector<8x2x1xf32> to vector<8x2x128xf32>
    %40 = vector.broadcast %38 : vector<1x1x128xf32> to vector<8x2x128xf32>
    %41 = arith.mulf %39, %40 : vector<8x2x128xf32>
    %42 = arith.addf %31, %41 : vector<8x2x128xf32>
    %43 = vector.extract_strided_slice %0 {offsets = [0, 0, 2], sizes = [2, 8, 1], strides = [1, 1, 1]} : vector<2x8x4xf32> to vector<2x8x1xf32>
    %44 = vector.shape_cast %43 : vector<2x8x1xf32> to vector<2x8xf32>
    %45 = tpu.transpose %44, [1, 0] : vector<2x8xf32> -> vector<8x2xf32>
    %46 = vector.shape_cast %45 : vector<8x2xf32> to vector<8x2x1xf32>
    %c2 = arith.constant 2 : index
    %c0_12 = arith.constant 0 : index
    %47 = vector.load %arg4[%c2, %c0_12] : memref<4x128xf32, #tpu.memory_space<vmem>>, vector<1x128xf32>
    %48 = vector.shape_cast %47 : vector<1x128xf32> to vector<128xf32>
    %49 = vector.shape_cast %48 : vector<128xf32> to vector<1x1x128xf32>
    %50 = vector.broadcast %46 : vector<8x2x1xf32> to vector<8x2x128xf32>
    %51 = vector.broadcast %49 : vector<1x1x128xf32> to vector<8x2x128xf32>
    %52 = arith.mulf %50, %51 : vector<8x2x128xf32>
    %53 = arith.addf %42, %52 : vector<8x2x128xf32>
    %54 = vector.extract_strided_slice %0 {offsets = [0, 0, 3], sizes = [2, 8, 1], strides = [1, 1, 1]} : vector<2x8x4xf32> to vector<2x8x1xf32>
    %55 = vector.shape_cast %54 : vector<2x8x1xf32> to vector<2x8xf32>
    %56 = tpu.transpose %55, [1, 0] : vector<2x8xf32> -> vector<8x2xf32>
    %57 = vector.shape_cast %56 : vector<8x2xf32> to vector<8x2x1xf32>
    %c3 = arith.constant 3 : index
    %c0_13 = arith.constant 0 : index
    %58 = vector.load %arg4[%c3, %c0_13] : memref<4x128xf32, #tpu.memory_space<vmem>>, vector<1x128xf32>
    %59 = vector.shape_cast %58 : vector<1x128xf32> to vector<128xf32>
    %60 = vector.shape_cast %59 : vector<128xf32> to vector<1x1x128xf32>
    %61 = vector.broadcast %57 : vector<8x2x1xf32> to vector<8x2x128xf32>
    %62 = vector.broadcast %60 : vector<1x1x128xf32> to vector<8x2x128xf32>
    %63 = arith.mulf %61, %62 : vector<8x2x128xf32>
    %64 = arith.addf %53, %63 : vector<8x2x128xf32>
    %c0_14 = arith.constant 0 : index
    %c0_15 = arith.constant 0 : index
    %65 = vector.load %arg5[%c0_14, %c0_15] : memref<32x128xf32, #tpu.memory_space<vmem>>, vector<32x128xf32>
    %cst_16 = arith.constant 0.000000e+00 : f32
    %66 = vector.broadcast %cst_16 : f32 to vector<2x32xf32>
    %cst_17 = arith.constant 0.000000e+00 : f32
    %67 = vector.broadcast %cst_17 : f32 to vector<2x32xf32>
    %cst_18 = arith.constant 0.000000e+00 : f32
    %68 = vector.broadcast %cst_18 : f32 to vector<2x32xf32>
    %69 = vector.extract_strided_slice %64 {offsets = [0, 0, 0], sizes = [1, 2, 128], strides = [1, 1, 1]} : vector<8x2x128xf32> to vector<1x2x128xf32>
    %70 = vector.shape_cast %69 : vector<1x2x128xf32> to vector<2x128xf32>
    %cst_19 = arith.constant dense<0.000000e+00> : vector<2x128xf32>
    %71 = tpu.matmul %66, %65, %cst_19 {dimension_numbers = #tpu.dot_dimension_numbers<[1], [0], [0], [1], [0, 0, 1, 1], [], []>} : vector<2x32xf32>, vector<32x128xf32>, vector<2x128xf32> -> vector<2x128xf32>
    %72 = arith.addf %70, %71 : vector<2x128xf32>
    %73 = vector.extract_strided_slice %72 {offsets = [0, 0], sizes = [2, 32], strides = [1, 1]} : vector<2x128xf32> to vector<2x32xf32>
    %74 = arith.negf %73 : vector<2x32xf32>
    %75 = math.exp %74 : vector<2x32xf32>
    %cst_20 = arith.constant 1.000000e+00 : f32
    %76 = vector.broadcast %cst_20 : f32 to vector<2x32xf32>
    %77 = arith.addf %76, %75 : vector<2x32xf32>
    %78 = arith.divf %76, %77 : vector<2x32xf32>
    %79 = vector.extract_strided_slice %72 {offsets = [0, 32], sizes = [2, 32], strides = [1, 1]} : vector<2x128xf32> to vector<2x32xf32>
    %80 = arith.negf %79 : vector<2x32xf32>
    %81 = math.exp %80 : vector<2x32xf32>
    %cst_21 = arith.constant 1.000000e+00 : f32
    %82 = vector.broadcast %cst_21 : f32 to vector<2x32xf32>
    %83 = arith.addf %82, %81 : vector<2x32xf32>
    %84 = arith.divf %82, %83 : vector<2x32xf32>
    %85 = vector.extract_strided_slice %72 {offsets = [0, 64], sizes = [2, 32], strides = [1, 1]} : vector<2x128xf32> to vector<2x32xf32>
    %86 = math.tanh %85 : vector<2x32xf32>
    %87 = vector.extract_strided_slice %72 {offsets = [0, 96], sizes = [2, 32], strides = [1, 1]} : vector<2x128xf32> to vector<2x32xf32>
    %88 = arith.negf %87 : vector<2x32xf32>
    %89 = math.exp %88 : vector<2x32xf32>
    %cst_22 = arith.constant 1.000000e+00 : f32
    %90 = vector.broadcast %cst_22 : f32 to vector<2x32xf32>
    %91 = arith.addf %90, %89 : vector<2x32xf32>
    %92 = arith.divf %90, %91 : vector<2x32xf32>
    %93 = arith.mulf %84, %67 : vector<2x32xf32>
    %94 = arith.mulf %78, %86 : vector<2x32xf32>
    %95 = arith.addf %93, %94 : vector<2x32xf32>
    %96 = math.tanh %95 : vector<2x32xf32>
    %97 = arith.mulf %92, %96 : vector<2x32xf32>
    %c0_i32 = arith.constant 0 : i32
    %98 = vector.broadcast %c0_i32 : i32 to vector<2x1xi32>
    %99 = arith.cmpi eq, %17, %98 : vector<2x1xi32>
    %100 = vector.shape_cast %99 : vector<2x1xi1> to vector<2x1xi1>
    %101 = vector.broadcast %100 : vector<2x1xi1> to vector<2x32xi1>
    %102 = arith.select %101, %97, %68 : vector<2x32xi1>, vector<2x32xf32>
    %103 = vector.extract_strided_slice %64 {offsets = [1, 0, 0], sizes = [1, 2, 128], strides = [1, 1, 1]} : vector<8x2x128xf32> to vector<1x2x128xf32>
    %104 = vector.shape_cast %103 : vector<1x2x128xf32> to vector<2x128xf32>
    %cst_23 = arith.constant dense<0.000000e+00> : vector<2x128xf32>
    %105 = tpu.matmul %97, %65, %cst_23 {dimension_numbers = #tpu.dot_dimension_numbers<[1], [0], [0], [1], [0, 0, 1, 1], [], []>} : vector<2x32xf32>, vector<32x128xf32>, vector<2x128xf32> -> vector<2x128xf32>
    %106 = arith.addf %104, %105 : vector<2x128xf32>
    %107 = vector.extract_strided_slice %106 {offsets = [0, 0], sizes = [2, 32], strides = [1, 1]} : vector<2x128xf32> to vector<2x32xf32>
    %108 = arith.negf %107 : vector<2x32xf32>
    %109 = math.exp %108 : vector<2x32xf32>
    %cst_24 = arith.constant 1.000000e+00 : f32
    %110 = vector.broadcast %cst_24 : f32 to vector<2x32xf32>
    %111 = arith.addf %110, %109 : vector<2x32xf32>
    %112 = arith.divf %110, %111 : vector<2x32xf32>
    %113 = vector.extract_strided_slice %106 {offsets = [0, 32], sizes = [2, 32], strides = [1, 1]} : vector<2x128xf32> to vector<2x32xf32>
    %114 = arith.negf %113 : vector<2x32xf32>
    %115 = math.exp %114 : vector<2x32xf32>
    %cst_25 = arith.constant 1.000000e+00 : f32
    %116 = vector.broadcast %cst_25 : f32 to vector<2x32xf32>
    %117 = arith.addf %116, %115 : vector<2x32xf32>
    %118 = arith.divf %116, %117 : vector<2x32xf32>
    %119 = vector.extract_strided_slice %106 {offsets = [0, 64], sizes = [2, 32], strides = [1, 1]} : vector<2x128xf32> to vector<2x32xf32>
    %120 = math.tanh %119 : vector<2x32xf32>
    %121 = vector.extract_strided_slice %106 {offsets = [0, 96], sizes = [2, 32], strides = [1, 1]} : vector<2x128xf32> to vector<2x32xf32>
    %122 = arith.negf %121 : vector<2x32xf32>
    %123 = math.exp %122 : vector<2x32xf32>
    %cst_26 = arith.constant 1.000000e+00 : f32
    %124 = vector.broadcast %cst_26 : f32 to vector<2x32xf32>
    %125 = arith.addf %124, %123 : vector<2x32xf32>
    %126 = arith.divf %124, %125 : vector<2x32xf32>
    %127 = arith.mulf %118, %95 : vector<2x32xf32>
    %128 = arith.mulf %112, %120 : vector<2x32xf32>
    %129 = arith.addf %127, %128 : vector<2x32xf32>
    %130 = math.tanh %129 : vector<2x32xf32>
    %131 = arith.mulf %126, %130 : vector<2x32xf32>
    %c1_i32 = arith.constant 1 : i32
    %132 = vector.broadcast %c1_i32 : i32 to vector<2x1xi32>
    %133 = arith.cmpi eq, %17, %132 : vector<2x1xi32>
    %134 = vector.shape_cast %133 : vector<2x1xi1> to vector<2x1xi1>
    %135 = vector.broadcast %134 : vector<2x1xi1> to vector<2x32xi1>
    %136 = arith.select %135, %131, %102 : vector<2x32xi1>, vector<2x32xf32>
    %137 = vector.extract_strided_slice %64 {offsets = [2, 0, 0], sizes = [1, 2, 128], strides = [1, 1, 1]} : vector<8x2x128xf32> to vector<1x2x128xf32>
    %138 = vector.shape_cast %137 : vector<1x2x128xf32> to vector<2x128xf32>
    %cst_27 = arith.constant dense<0.000000e+00> : vector<2x128xf32>
    %139 = tpu.matmul %131, %65, %cst_27 {dimension_numbers = #tpu.dot_dimension_numbers<[1], [0], [0], [1], [0, 0, 1, 1], [], []>} : vector<2x32xf32>, vector<32x128xf32>, vector<2x128xf32> -> vector<2x128xf32>
    %140 = arith.addf %138, %139 : vector<2x128xf32>
    %141 = vector.extract_strided_slice %140 {offsets = [0, 0], sizes = [2, 32], strides = [1, 1]} : vector<2x128xf32> to vector<2x32xf32>
    %142 = arith.negf %141 : vector<2x32xf32>
    %143 = math.exp %142 : vector<2x32xf32>
    %cst_28 = arith.constant 1.000000e+00 : f32
    %144 = vector.broadcast %cst_28 : f32 to vector<2x32xf32>
    %145 = arith.addf %144, %143 : vector<2x32xf32>
    %146 = arith.divf %144, %145 : vector<2x32xf32>
    %147 = vector.extract_strided_slice %140 {offsets = [0, 32], sizes = [2, 32], strides = [1, 1]} : vector<2x128xf32> to vector<2x32xf32>
    %148 = arith.negf %147 : vector<2x32xf32>
    %149 = math.exp %148 : vector<2x32xf32>
    %cst_29 = arith.constant 1.000000e+00 : f32
    %150 = vector.broadcast %cst_29 : f32 to vector<2x32xf32>
    %151 = arith.addf %150, %149 : vector<2x32xf32>
    %152 = arith.divf %150, %151 : vector<2x32xf32>
    %153 = vector.extract_strided_slice %140 {offsets = [0, 64], sizes = [2, 32], strides = [1, 1]} : vector<2x128xf32> to vector<2x32xf32>
    %154 = math.tanh %153 : vector<2x32xf32>
    %155 = vector.extract_strided_slice %140 {offsets = [0, 96], sizes = [2, 32], strides = [1, 1]} : vector<2x128xf32> to vector<2x32xf32>
    %156 = arith.negf %155 : vector<2x32xf32>
    %157 = math.exp %156 : vector<2x32xf32>
    %cst_30 = arith.constant 1.000000e+00 : f32
    %158 = vector.broadcast %cst_30 : f32 to vector<2x32xf32>
    %159 = arith.addf %158, %157 : vector<2x32xf32>
    %160 = arith.divf %158, %159 : vector<2x32xf32>
    %161 = arith.mulf %152, %129 : vector<2x32xf32>
    %162 = arith.mulf %146, %154 : vector<2x32xf32>
    %163 = arith.addf %161, %162 : vector<2x32xf32>
    %164 = math.tanh %163 : vector<2x32xf32>
    %165 = arith.mulf %160, %164 : vector<2x32xf32>
    %c2_i32 = arith.constant 2 : i32
    %166 = vector.broadcast %c2_i32 : i32 to vector<2x1xi32>
    %167 = arith.cmpi eq, %17, %166 : vector<2x1xi32>
    %168 = vector.shape_cast %167 : vector<2x1xi1> to vector<2x1xi1>
    %169 = vector.broadcast %168 : vector<2x1xi1> to vector<2x32xi1>
    %170 = arith.select %169, %165, %136 : vector<2x32xi1>, vector<2x32xf32>
    %171 = vector.extract_strided_slice %64 {offsets = [3, 0, 0], sizes = [1, 2, 128], strides = [1, 1, 1]} : vector<8x2x128xf32> to vector<1x2x128xf32>
    %172 = vector.shape_cast %171 : vector<1x2x128xf32> to vector<2x128xf32>
    %cst_31 = arith.constant dense<0.000000e+00> : vector<2x128xf32>
    %173 = tpu.matmul %165, %65, %cst_31 {dimension_numbers = #tpu.dot_dimension_numbers<[1], [0], [0], [1], [0, 0, 1, 1], [], []>} : vector<2x32xf32>, vector<32x128xf32>, vector<2x128xf32> -> vector<2x128xf32>
    %174 = arith.addf %172, %173 : vector<2x128xf32>
    %175 = vector.extract_strided_slice %174 {offsets = [0, 0], sizes = [2, 32], strides = [1, 1]} : vector<2x128xf32> to vector<2x32xf32>
    %176 = arith.negf %175 : vector<2x32xf32>
    %177 = math.exp %176 : vector<2x32xf32>
    %cst_32 = arith.constant 1.000000e+00 : f32
    %178 = vector.broadcast %cst_32 : f32 to vector<2x32xf32>
    %179 = arith.addf %178, %177 : vector<2x32xf32>
    %180 = arith.divf %178, %179 : vector<2x32xf32>
    %181 = vector.extract_strided_slice %174 {offsets = [0, 32], sizes = [2, 32], strides = [1, 1]} : vector<2x128xf32> to vector<2x32xf32>
    %182 = arith.negf %181 : vector<2x32xf32>
    %183 = math.exp %182 : vector<2x32xf32>
    %cst_33 = arith.constant 1.000000e+00 : f32
    %184 = vector.broadcast %cst_33 : f32 to vector<2x32xf32>
    %185 = arith.addf %184, %183 : vector<2x32xf32>
    %186 = arith.divf %184, %185 : vector<2x32xf32>
    %187 = vector.extract_strided_slice %174 {offsets = [0, 64], sizes = [2, 32], strides = [1, 1]} : vector<2x128xf32> to vector<2x32xf32>
    %188 = math.tanh %187 : vector<2x32xf32>
    %189 = vector.extract_strided_slice %174 {offsets = [0, 96], sizes = [2, 32], strides = [1, 1]} : vector<2x128xf32> to vector<2x32xf32>
    %190 = arith.negf %189 : vector<2x32xf32>
    %191 = math.exp %190 : vector<2x32xf32>
    %cst_34 = arith.constant 1.000000e+00 : f32
    %192 = vector.broadcast %cst_34 : f32 to vector<2x32xf32>
    %193 = arith.addf %192, %191 : vector<2x32xf32>
    %194 = arith.divf %192, %193 : vector<2x32xf32>
    %195 = arith.mulf %186, %163 : vector<2x32xf32>
    %196 = arith.mulf %180, %188 : vector<2x32xf32>
    %197 = arith.addf %195, %196 : vector<2x32xf32>
    %198 = math.tanh %197 : vector<2x32xf32>
    %199 = arith.mulf %194, %198 : vector<2x32xf32>
    %c3_i32 = arith.constant 3 : i32
    %200 = vector.broadcast %c3_i32 : i32 to vector<2x1xi32>
    %201 = arith.cmpi eq, %17, %200 : vector<2x1xi32>
    %202 = vector.shape_cast %201 : vector<2x1xi1> to vector<2x1xi1>
    %203 = vector.broadcast %202 : vector<2x1xi1> to vector<2x32xi1>
    %204 = arith.select %203, %199, %170 : vector<2x32xi1>, vector<2x32xf32>
    %205 = vector.extract_strided_slice %64 {offsets = [4, 0, 0], sizes = [1, 2, 128], strides = [1, 1, 1]} : vector<8x2x128xf32> to vector<1x2x128xf32>
    %206 = vector.shape_cast %205 : vector<1x2x128xf32> to vector<2x128xf32>
    %cst_35 = arith.constant dense<0.000000e+00> : vector<2x128xf32>
    %207 = tpu.matmul %199, %65, %cst_35 {dimension_numbers = #tpu.dot_dimension_numbers<[1], [0], [0], [1], [0, 0, 1, 1], [], []>} : vector<2x32xf32>, vector<32x128xf32>, vector<2x128xf32> -> vector<2x128xf32>
    %208 = arith.addf %206, %207 : vector<2x128xf32>
    %209 = vector.extract_strided_slice %208 {offsets = [0, 0], sizes = [2, 32], strides = [1, 1]} : vector<2x128xf32> to vector<2x32xf32>
    %210 = arith.negf %209 : vector<2x32xf32>
    %211 = math.exp %210 : vector<2x32xf32>
    %cst_36 = arith.constant 1.000000e+00 : f32
    %212 = vector.broadcast %cst_36 : f32 to vector<2x32xf32>
    %213 = arith.addf %212, %211 : vector<2x32xf32>
    %214 = arith.divf %212, %213 : vector<2x32xf32>
    %215 = vector.extract_strided_slice %208 {offsets = [0, 32], sizes = [2, 32], strides = [1, 1]} : vector<2x128xf32> to vector<2x32xf32>
    %216 = arith.negf %215 : vector<2x32xf32>
    %217 = math.exp %216 : vector<2x32xf32>
    %cst_37 = arith.constant 1.000000e+00 : f32
    %218 = vector.broadcast %cst_37 : f32 to vector<2x32xf32>
    %219 = arith.addf %218, %217 : vector<2x32xf32>
    %220 = arith.divf %218, %219 : vector<2x32xf32>
    %221 = vector.extract_strided_slice %208 {offsets = [0, 64], sizes = [2, 32], strides = [1, 1]} : vector<2x128xf32> to vector<2x32xf32>
    %222 = math.tanh %221 : vector<2x32xf32>
    %223 = vector.extract_strided_slice %208 {offsets = [0, 96], sizes = [2, 32], strides = [1, 1]} : vector<2x128xf32> to vector<2x32xf32>
    %224 = arith.negf %223 : vector<2x32xf32>
    %225 = math.exp %224 : vector<2x32xf32>
    %cst_38 = arith.constant 1.000000e+00 : f32
    %226 = vector.broadcast %cst_38 : f32 to vector<2x32xf32>
    %227 = arith.addf %226, %225 : vector<2x32xf32>
    %228 = arith.divf %226, %227 : vector<2x32xf32>
    %229 = arith.mulf %220, %197 : vector<2x32xf32>
    %230 = arith.mulf %214, %222 : vector<2x32xf32>
    %231 = arith.addf %229, %230 : vector<2x32xf32>
    %232 = math.tanh %231 : vector<2x32xf32>
    %233 = arith.mulf %228, %232 : vector<2x32xf32>
    %c4_i32 = arith.constant 4 : i32
    %234 = vector.broadcast %c4_i32 : i32 to vector<2x1xi32>
    %235 = arith.cmpi eq, %17, %234 : vector<2x1xi32>
    %236 = vector.shape_cast %235 : vector<2x1xi1> to vector<2x1xi1>
    %237 = vector.broadcast %236 : vector<2x1xi1> to vector<2x32xi1>
    %238 = arith.select %237, %233, %204 : vector<2x32xi1>, vector<2x32xf32>
    %239 = vector.extract_strided_slice %64 {offsets = [5, 0, 0], sizes = [1, 2, 128], strides = [1, 1, 1]} : vector<8x2x128xf32> to vector<1x2x128xf32>
    %240 = vector.shape_cast %239 : vector<1x2x128xf32> to vector<2x128xf32>
    %cst_39 = arith.constant dense<0.000000e+00> : vector<2x128xf32>
    %241 = tpu.matmul %233, %65, %cst_39 {dimension_numbers = #tpu.dot_dimension_numbers<[1], [0], [0], [1], [0, 0, 1, 1], [], []>} : vector<2x32xf32>, vector<32x128xf32>, vector<2x128xf32> -> vector<2x128xf32>
    %242 = arith.addf %240, %241 : vector<2x128xf32>
    %243 = vector.extract_strided_slice %242 {offsets = [0, 0], sizes = [2, 32], strides = [1, 1]} : vector<2x128xf32> to vector<2x32xf32>
    %244 = arith.negf %243 : vector<2x32xf32>
    %245 = math.exp %244 : vector<2x32xf32>
    %cst_40 = arith.constant 1.000000e+00 : f32
    %246 = vector.broadcast %cst_40 : f32 to vector<2x32xf32>
    %247 = arith.addf %246, %245 : vector<2x32xf32>
    %248 = arith.divf %246, %247 : vector<2x32xf32>
    %249 = vector.extract_strided_slice %242 {offsets = [0, 32], sizes = [2, 32], strides = [1, 1]} : vector<2x128xf32> to vector<2x32xf32>
    %250 = arith.negf %249 : vector<2x32xf32>
    %251 = math.exp %250 : vector<2x32xf32>
    %cst_41 = arith.constant 1.000000e+00 : f32
    %252 = vector.broadcast %cst_41 : f32 to vector<2x32xf32>
    %253 = arith.addf %252, %251 : vector<2x32xf32>
    %254 = arith.divf %252, %253 : vector<2x32xf32>
    %255 = vector.extract_strided_slice %242 {offsets = [0, 64], sizes = [2, 32], strides = [1, 1]} : vector<2x128xf32> to vector<2x32xf32>
    %256 = math.tanh %255 : vector<2x32xf32>
    %257 = vector.extract_strided_slice %242 {offsets = [0, 96], sizes = [2, 32], strides = [1, 1]} : vector<2x128xf32> to vector<2x32xf32>
    %258 = arith.negf %257 : vector<2x32xf32>
    %259 = math.exp %258 : vector<2x32xf32>
    %cst_42 = arith.constant 1.000000e+00 : f32
    %260 = vector.broadcast %cst_42 : f32 to vector<2x32xf32>
    %261 = arith.addf %260, %259 : vector<2x32xf32>
    %262 = arith.divf %260, %261 : vector<2x32xf32>
    %263 = arith.mulf %254, %231 : vector<2x32xf32>
    %264 = arith.mulf %248, %256 : vector<2x32xf32>
    %265 = arith.addf %263, %264 : vector<2x32xf32>
    %266 = math.tanh %265 : vector<2x32xf32>
    %267 = arith.mulf %262, %266 : vector<2x32xf32>
    %c5_i32 = arith.constant 5 : i32
    %268 = vector.broadcast %c5_i32 : i32 to vector<2x1xi32>
    %269 = arith.cmpi eq, %17, %268 : vector<2x1xi32>
    %270 = vector.shape_cast %269 : vector<2x1xi1> to vector<2x1xi1>
    %271 = vector.broadcast %270 : vector<2x1xi1> to vector<2x32xi1>
    %272 = arith.select %271, %267, %238 : vector<2x32xi1>, vector<2x32xf32>
    %273 = vector.extract_strided_slice %64 {offsets = [6, 0, 0], sizes = [1, 2, 128], strides = [1, 1, 1]} : vector<8x2x128xf32> to vector<1x2x128xf32>
    %274 = vector.shape_cast %273 : vector<1x2x128xf32> to vector<2x128xf32>
    %cst_43 = arith.constant dense<0.000000e+00> : vector<2x128xf32>
    %275 = tpu.matmul %267, %65, %cst_43 {dimension_numbers = #tpu.dot_dimension_numbers<[1], [0], [0], [1], [0, 0, 1, 1], [], []>} : vector<2x32xf32>, vector<32x128xf32>, vector<2x128xf32> -> vector<2x128xf32>
    %276 = arith.addf %274, %275 : vector<2x128xf32>
    %277 = vector.extract_strided_slice %276 {offsets = [0, 0], sizes = [2, 32], strides = [1, 1]} : vector<2x128xf32> to vector<2x32xf32>
    %278 = arith.negf %277 : vector<2x32xf32>
    %279 = math.exp %278 : vector<2x32xf32>
    %cst_44 = arith.constant 1.000000e+00 : f32
    %280 = vector.broadcast %cst_44 : f32 to vector<2x32xf32>
    %281 = arith.addf %280, %279 : vector<2x32xf32>
    %282 = arith.divf %280, %281 : vector<2x32xf32>
    %283 = vector.extract_strided_slice %276 {offsets = [0, 32], sizes = [2, 32], strides = [1, 1]} : vector<2x128xf32> to vector<2x32xf32>
    %284 = arith.negf %283 : vector<2x32xf32>
    %285 = math.exp %284 : vector<2x32xf32>
    %cst_45 = arith.constant 1.000000e+00 : f32
    %286 = vector.broadcast %cst_45 : f32 to vector<2x32xf32>
    %287 = arith.addf %286, %285 : vector<2x32xf32>
    %288 = arith.divf %286, %287 : vector<2x32xf32>
    %289 = vector.extract_strided_slice %276 {offsets = [0, 64], sizes = [2, 32], strides = [1, 1]} : vector<2x128xf32> to vector<2x32xf32>
    %290 = math.tanh %289 : vector<2x32xf32>
    %291 = vector.extract_strided_slice %276 {offsets = [0, 96], sizes = [2, 32], strides = [1, 1]} : vector<2x128xf32> to vector<2x32xf32>
    %292 = arith.negf %291 : vector<2x32xf32>
    %293 = math.exp %292 : vector<2x32xf32>
    %cst_46 = arith.constant 1.000000e+00 : f32
    %294 = vector.broadcast %cst_46 : f32 to vector<2x32xf32>
    %295 = arith.addf %294, %293 : vector<2x32xf32>
    %296 = arith.divf %294, %295 : vector<2x32xf32>
    %297 = arith.mulf %288, %265 : vector<2x32xf32>
    %298 = arith.mulf %282, %290 : vector<2x32xf32>
    %299 = arith.addf %297, %298 : vector<2x32xf32>
    %300 = math.tanh %299 : vector<2x32xf32>
    %301 = arith.mulf %296, %300 : vector<2x32xf32>
    %c6_i32 = arith.constant 6 : i32
    %302 = vector.broadcast %c6_i32 : i32 to vector<2x1xi32>
    %303 = arith.cmpi eq, %17, %302 : vector<2x1xi32>
    %304 = vector.shape_cast %303 : vector<2x1xi1> to vector<2x1xi1>
    %305 = vector.broadcast %304 : vector<2x1xi1> to vector<2x32xi1>
    %306 = arith.select %305, %301, %272 : vector<2x32xi1>, vector<2x32xf32>
    %307 = vector.extract_strided_slice %64 {offsets = [7, 0, 0], sizes = [1, 2, 128], strides = [1, 1, 1]} : vector<8x2x128xf32> to vector<1x2x128xf32>
    %308 = vector.shape_cast %307 : vector<1x2x128xf32> to vector<2x128xf32>
    %cst_47 = arith.constant dense<0.000000e+00> : vector<2x128xf32>
    %309 = tpu.matmul %301, %65, %cst_47 {dimension_numbers = #tpu.dot_dimension_numbers<[1], [0], [0], [1], [0, 0, 1, 1], [], []>} : vector<2x32xf32>, vector<32x128xf32>, vector<2x128xf32> -> vector<2x128xf32>
    %310 = arith.addf %308, %309 : vector<2x128xf32>
    %311 = vector.extract_strided_slice %310 {offsets = [0, 0], sizes = [2, 32], strides = [1, 1]} : vector<2x128xf32> to vector<2x32xf32>
    %312 = arith.negf %311 : vector<2x32xf32>
    %313 = math.exp %312 : vector<2x32xf32>
    %cst_48 = arith.constant 1.000000e+00 : f32
    %314 = vector.broadcast %cst_48 : f32 to vector<2x32xf32>
    %315 = arith.addf %314, %313 : vector<2x32xf32>
    %316 = arith.divf %314, %315 : vector<2x32xf32>
    %317 = vector.extract_strided_slice %310 {offsets = [0, 32], sizes = [2, 32], strides = [1, 1]} : vector<2x128xf32> to vector<2x32xf32>
    %318 = arith.negf %317 : vector<2x32xf32>
    %319 = math.exp %318 : vector<2x32xf32>
    %cst_49 = arith.constant 1.000000e+00 : f32
    %320 = vector.broadcast %cst_49 : f32 to vector<2x32xf32>
    %321 = arith.addf %320, %319 : vector<2x32xf32>
    %322 = arith.divf %320, %321 : vector<2x32xf32>
    %323 = vector.extract_strided_slice %310 {offsets = [0, 64], sizes = [2, 32], strides = [1, 1]} : vector<2x128xf32> to vector<2x32xf32>
    %324 = math.tanh %323 : vector<2x32xf32>
    %325 = vector.extract_strided_slice %310 {offsets = [0, 96], sizes = [2, 32], strides = [1, 1]} : vector<2x128xf32> to vector<2x32xf32>
    %326 = arith.negf %325 : vector<2x32xf32>
    %327 = math.exp %326 : vector<2x32xf32>
    %cst_50 = arith.constant 1.000000e+00 : f32
    %328 = vector.broadcast %cst_50 : f32 to vector<2x32xf32>
    %329 = arith.addf %328, %327 : vector<2x32xf32>
    %330 = arith.divf %328, %329 : vector<2x32xf32>
    %331 = arith.mulf %322, %299 : vector<2x32xf32>
    %332 = arith.mulf %316, %324 : vector<2x32xf32>
    %333 = arith.addf %331, %332 : vector<2x32xf32>
    %334 = math.tanh %333 : vector<2x32xf32>
    %335 = arith.mulf %330, %334 : vector<2x32xf32>
    %c7_i32 = arith.constant 7 : i32
    %336 = vector.broadcast %c7_i32 : i32 to vector<2x1xi32>
    %337 = arith.cmpi eq, %17, %336 : vector<2x1xi32>
    %338 = vector.shape_cast %337 : vector<2x1xi1> to vector<2x1xi1>
    %339 = vector.broadcast %338 : vector<2x1xi1> to vector<2x32xi1>
    %340 = arith.select %339, %335, %306 : vector<2x32xi1>, vector<2x32xf32>
    %c0_51 = arith.constant 0 : index
    %c0_52 = arith.constant 0 : index
    %341 = vector.load %arg10[%c0_51, %c0_52] : memref<1x32xf32, #tpu.memory_space<vmem>>, vector<1x32xf32>
    %342 = vector.shape_cast %341 : vector<1x32xf32> to vector<32xf32>
    %343 = vector.shape_cast %342 : vector<32xf32> to vector<1x32xf32>
    %344 = vector.broadcast %343 : vector<1x32xf32> to vector<2x32xf32>
    %345 = arith.mulf %340, %344 : vector<2x32xf32>
    %cst_53 = arith.constant dense<0.000000e+00> : vector<2xf32>
    %346 = vector.multi_reduction <add>, %345, %cst_53 [1] : vector<2x32xf32> to vector<2xf32>
    %347 = vector.shape_cast %346 : vector<2xf32> to vector<2x1xf32>
    %c0_54 = arith.constant 0 : index
    %c0_55 = arith.constant 0 : index
    %348 = vector.load %arg11[%c0_54, %c0_55] : memref<1x1xf32, #tpu.memory_space<vmem>>, vector<1x1xf32>
    %349 = vector.broadcast %348 : vector<1x1xf32> to vector<2x1xf32>
    %350 = arith.addf %347, %349 : vector<2x1xf32>
    %cst_56 = arith.constant 0.000000e+00 : f32
    %351 = vector.broadcast %cst_56 : f32 to vector<2x128xf32>
    %c0_57 = arith.constant 0 : index
    %c0_58 = arith.constant 0 : index
    %352 = vector.load %arg9[%c0_57, %c0_58] : memref<1x128xf32, #tpu.memory_space<vmem>>, vector<1x128xf32>
    %353 = vector.broadcast %352 : vector<1x128xf32> to vector<2x128xf32>
    %354 = arith.addf %351, %353 : vector<2x128xf32>
    %c0_59 = arith.constant 0 : index
    %c0_60 = arith.constant 0 : index
    %355 = vector.load %arg7[%c0_59, %c0_60] : memref<2x128xf32, #tpu.memory_space<vmem>>, vector<1x128xf32>
    %356 = vector.shape_cast %355 : vector<1x128xf32> to vector<128xf32>
    %357 = vector.shape_cast %356 : vector<128xf32> to vector<1x128xf32>
    %358 = vector.broadcast %350 : vector<2x1xf32> to vector<2x128xf32>
    %359 = vector.broadcast %357 : vector<1x128xf32> to vector<2x128xf32>
    %360 = arith.mulf %358, %359 : vector<2x128xf32>
    %361 = arith.addf %354, %360 : vector<2x128xf32>
    %362 = vector.shape_cast %361 : vector<2x128xf32> to vector<1x2x128xf32>
    %363 = vector.shape_cast %18 : vector<8x2xf32> to vector<8x2x1xf32>
    %c1_61 = arith.constant 1 : index
    %c0_62 = arith.constant 0 : index
    %364 = vector.load %arg7[%c1_61, %c0_62] : memref<2x128xf32, #tpu.memory_space<vmem>>, vector<1x128xf32>
    %365 = vector.shape_cast %364 : vector<1x128xf32> to vector<128xf32>
    %366 = vector.shape_cast %365 : vector<128xf32> to vector<1x1x128xf32>
    %367 = vector.broadcast %363 : vector<8x2x1xf32> to vector<8x2x128xf32>
    %368 = vector.broadcast %366 : vector<1x1x128xf32> to vector<8x2x128xf32>
    %369 = arith.mulf %367, %368 : vector<8x2x128xf32>
    %370 = vector.broadcast %362 : vector<1x2x128xf32> to vector<8x2x128xf32>
    %371 = arith.addf %370, %369 : vector<8x2x128xf32>
    %c0_63 = arith.constant 0 : index
    %c0_64 = arith.constant 0 : index
    %372 = vector.load %arg8[%c0_63, %c0_64] : memref<32x128xf32, #tpu.memory_space<vmem>>, vector<32x128xf32>
    %c0_65 = arith.constant 0 : index
    %c0_66 = arith.constant 0 : index
    %373 = vector.load %arg12[%c0_65, %c0_66] : memref<1x32xf32, #tpu.memory_space<vmem>>, vector<1x32xf32>
    %c0_67 = arith.constant 0 : index
    %c0_68 = arith.constant 0 : index
    %374 = vector.load %arg13[%c0_67, %c0_68] : memref<1x1xf32, #tpu.memory_space<vmem>>, vector<1x1xf32>
    %cst_69 = arith.constant 0.000000e+00 : f32
    %375 = vector.broadcast %cst_69 : f32 to vector<2x32xf32>
    %cst_70 = arith.constant 0.000000e+00 : f32
    %376 = vector.broadcast %cst_70 : f32 to vector<2x32xf32>
    %377 = vector.extract_strided_slice %371 {offsets = [0, 0, 0], sizes = [1, 2, 128], strides = [1, 1, 1]} : vector<8x2x128xf32> to vector<1x2x128xf32>
    %378 = vector.shape_cast %377 : vector<1x2x128xf32> to vector<2x128xf32>
    %cst_71 = arith.constant dense<0.000000e+00> : vector<2x128xf32>
    %379 = tpu.matmul %375, %372, %cst_71 {dimension_numbers = #tpu.dot_dimension_numbers<[1], [0], [0], [1], [0, 0, 1, 1], [], []>} : vector<2x32xf32>, vector<32x128xf32>, vector<2x128xf32> -> vector<2x128xf32>
    %380 = arith.addf %378, %379 : vector<2x128xf32>
    %381 = vector.extract_strided_slice %380 {offsets = [0, 0], sizes = [2, 32], strides = [1, 1]} : vector<2x128xf32> to vector<2x32xf32>
    %382 = arith.negf %381 : vector<2x32xf32>
    %383 = math.exp %382 : vector<2x32xf32>
    %cst_72 = arith.constant 1.000000e+00 : f32
    %384 = vector.broadcast %cst_72 : f32 to vector<2x32xf32>
    %385 = arith.addf %384, %383 : vector<2x32xf32>
    %386 = arith.divf %384, %385 : vector<2x32xf32>
    %387 = vector.extract_strided_slice %380 {offsets = [0, 32], sizes = [2, 32], strides = [1, 1]} : vector<2x128xf32> to vector<2x32xf32>
    %388 = arith.negf %387 : vector<2x32xf32>
    %389 = math.exp %388 : vector<2x32xf32>
    %cst_73 = arith.constant 1.000000e+00 : f32
    %390 = vector.broadcast %cst_73 : f32 to vector<2x32xf32>
    %391 = arith.addf %390, %389 : vector<2x32xf32>
    %392 = arith.divf %390, %391 : vector<2x32xf32>
    %393 = vector.extract_strided_slice %380 {offsets = [0, 64], sizes = [2, 32], strides = [1, 1]} : vector<2x128xf32> to vector<2x32xf32>
    %394 = math.tanh %393 : vector<2x32xf32>
    %395 = vector.extract_strided_slice %380 {offsets = [0, 96], sizes = [2, 32], strides = [1, 1]} : vector<2x128xf32> to vector<2x32xf32>
    %396 = arith.negf %395 : vector<2x32xf32>
    %397 = math.exp %396 : vector<2x32xf32>
    %cst_74 = arith.constant 1.000000e+00 : f32
    %398 = vector.broadcast %cst_74 : f32 to vector<2x32xf32>
    %399 = arith.addf %398, %397 : vector<2x32xf32>
    %400 = arith.divf %398, %399 : vector<2x32xf32>
    %401 = arith.mulf %392, %376 : vector<2x32xf32>
    %402 = arith.mulf %386, %394 : vector<2x32xf32>
    %403 = arith.addf %401, %402 : vector<2x32xf32>
    %404 = math.tanh %403 : vector<2x32xf32>
    %405 = arith.mulf %400, %404 : vector<2x32xf32>
    %406 = vector.broadcast %373 : vector<1x32xf32> to vector<2x32xf32>
    %407 = arith.mulf %405, %406 : vector<2x32xf32>
    %cst_75 = arith.constant dense<0.000000e+00> : vector<2xf32>
    %408 = vector.multi_reduction <add>, %407, %cst_75 [1] : vector<2x32xf32> to vector<2xf32>
    %409 = vector.shape_cast %408 : vector<2xf32> to vector<2x1xf32>
    %410 = vector.broadcast %374 : vector<1x1xf32> to vector<2x1xf32>
    %411 = arith.addf %409, %410 : vector<2x1xf32>
    %412 = vector.extract_strided_slice %371 {offsets = [1, 0, 0], sizes = [1, 2, 128], strides = [1, 1, 1]} : vector<8x2x128xf32> to vector<1x2x128xf32>
    %413 = vector.shape_cast %412 : vector<1x2x128xf32> to vector<2x128xf32>
    %cst_76 = arith.constant dense<0.000000e+00> : vector<2x128xf32>
    %414 = tpu.matmul %405, %372, %cst_76 {dimension_numbers = #tpu.dot_dimension_numbers<[1], [0], [0], [1], [0, 0, 1, 1], [], []>} : vector<2x32xf32>, vector<32x128xf32>, vector<2x128xf32> -> vector<2x128xf32>
    %415 = arith.addf %413, %414 : vector<2x128xf32>
    %416 = vector.extract_strided_slice %415 {offsets = [0, 0], sizes = [2, 32], strides = [1, 1]} : vector<2x128xf32> to vector<2x32xf32>
    %417 = arith.negf %416 : vector<2x32xf32>
    %418 = math.exp %417 : vector<2x32xf32>
    %cst_77 = arith.constant 1.000000e+00 : f32
    %419 = vector.broadcast %cst_77 : f32 to vector<2x32xf32>
    %420 = arith.addf %419, %418 : vector<2x32xf32>
    %421 = arith.divf %419, %420 : vector<2x32xf32>
    %422 = vector.extract_strided_slice %415 {offsets = [0, 32], sizes = [2, 32], strides = [1, 1]} : vector<2x128xf32> to vector<2x32xf32>
    %423 = arith.negf %422 : vector<2x32xf32>
    %424 = math.exp %423 : vector<2x32xf32>
    %cst_78 = arith.constant 1.000000e+00 : f32
    %425 = vector.broadcast %cst_78 : f32 to vector<2x32xf32>
    %426 = arith.addf %425, %424 : vector<2x32xf32>
    %427 = arith.divf %425, %426 : vector<2x32xf32>
    %428 = vector.extract_strided_slice %415 {offsets = [0, 64], sizes = [2, 32], strides = [1, 1]} : vector<2x128xf32> to vector<2x32xf32>
    %429 = math.tanh %428 : vector<2x32xf32>
    %430 = vector.extract_strided_slice %415 {offsets = [0, 96], sizes = [2, 32], strides = [1, 1]} : vector<2x128xf32> to vector<2x32xf32>
    %431 = arith.negf %430 : vector<2x32xf32>
    %432 = math.exp %431 : vector<2x32xf32>
    %cst_79 = arith.constant 1.000000e+00 : f32
    %433 = vector.broadcast %cst_79 : f32 to vector<2x32xf32>
    %434 = arith.addf %433, %432 : vector<2x32xf32>
    %435 = arith.divf %433, %434 : vector<2x32xf32>
    %436 = arith.mulf %427, %403 : vector<2x32xf32>
    %437 = arith.mulf %421, %429 : vector<2x32xf32>
    %438 = arith.addf %436, %437 : vector<2x32xf32>
    %439 = math.tanh %438 : vector<2x32xf32>
    %440 = arith.mulf %435, %439 : vector<2x32xf32>
    %441 = vector.broadcast %373 : vector<1x32xf32> to vector<2x32xf32>
    %442 = arith.mulf %440, %441 : vector<2x32xf32>
    %cst_80 = arith.constant dense<0.000000e+00> : vector<2xf32>
    %443 = vector.multi_reduction <add>, %442, %cst_80 [1] : vector<2x32xf32> to vector<2xf32>
    %444 = vector.shape_cast %443 : vector<2xf32> to vector<2x1xf32>
    %445 = vector.broadcast %374 : vector<1x1xf32> to vector<2x1xf32>
    %446 = arith.addf %444, %445 : vector<2x1xf32>
    %447 = vector.extract_strided_slice %371 {offsets = [2, 0, 0], sizes = [1, 2, 128], strides = [1, 1, 1]} : vector<8x2x128xf32> to vector<1x2x128xf32>
    %448 = vector.shape_cast %447 : vector<1x2x128xf32> to vector<2x128xf32>
    %cst_81 = arith.constant dense<0.000000e+00> : vector<2x128xf32>
    %449 = tpu.matmul %440, %372, %cst_81 {dimension_numbers = #tpu.dot_dimension_numbers<[1], [0], [0], [1], [0, 0, 1, 1], [], []>} : vector<2x32xf32>, vector<32x128xf32>, vector<2x128xf32> -> vector<2x128xf32>
    %450 = arith.addf %448, %449 : vector<2x128xf32>
    %451 = vector.extract_strided_slice %450 {offsets = [0, 0], sizes = [2, 32], strides = [1, 1]} : vector<2x128xf32> to vector<2x32xf32>
    %452 = arith.negf %451 : vector<2x32xf32>
    %453 = math.exp %452 : vector<2x32xf32>
    %cst_82 = arith.constant 1.000000e+00 : f32
    %454 = vector.broadcast %cst_82 : f32 to vector<2x32xf32>
    %455 = arith.addf %454, %453 : vector<2x32xf32>
    %456 = arith.divf %454, %455 : vector<2x32xf32>
    %457 = vector.extract_strided_slice %450 {offsets = [0, 32], sizes = [2, 32], strides = [1, 1]} : vector<2x128xf32> to vector<2x32xf32>
    %458 = arith.negf %457 : vector<2x32xf32>
    %459 = math.exp %458 : vector<2x32xf32>
    %cst_83 = arith.constant 1.000000e+00 : f32
    %460 = vector.broadcast %cst_83 : f32 to vector<2x32xf32>
    %461 = arith.addf %460, %459 : vector<2x32xf32>
    %462 = arith.divf %460, %461 : vector<2x32xf32>
    %463 = vector.extract_strided_slice %450 {offsets = [0, 64], sizes = [2, 32], strides = [1, 1]} : vector<2x128xf32> to vector<2x32xf32>
    %464 = math.tanh %463 : vector<2x32xf32>
    %465 = vector.extract_strided_slice %450 {offsets = [0, 96], sizes = [2, 32], strides = [1, 1]} : vector<2x128xf32> to vector<2x32xf32>
    %466 = arith.negf %465 : vector<2x32xf32>
    %467 = math.exp %466 : vector<2x32xf32>
    %cst_84 = arith.constant 1.000000e+00 : f32
    %468 = vector.broadcast %cst_84 : f32 to vector<2x32xf32>
    %469 = arith.addf %468, %467 : vector<2x32xf32>
    %470 = arith.divf %468, %469 : vector<2x32xf32>
    %471 = arith.mulf %462, %438 : vector<2x32xf32>
    %472 = arith.mulf %456, %464 : vector<2x32xf32>
    %473 = arith.addf %471, %472 : vector<2x32xf32>
    %474 = math.tanh %473 : vector<2x32xf32>
    %475 = arith.mulf %470, %474 : vector<2x32xf32>
    %476 = vector.broadcast %373 : vector<1x32xf32> to vector<2x32xf32>
    %477 = arith.mulf %475, %476 : vector<2x32xf32>
    %cst_85 = arith.constant dense<0.000000e+00> : vector<2xf32>
    %478 = vector.multi_reduction <add>, %477, %cst_85 [1] : vector<2x32xf32> to vector<2xf32>
    %479 = vector.shape_cast %478 : vector<2xf32> to vector<2x1xf32>
    %480 = vector.broadcast %374 : vector<1x1xf32> to vector<2x1xf32>
    %481 = arith.addf %479, %480 : vector<2x1xf32>
    %482 = vector.extract_strided_slice %371 {offsets = [3, 0, 0], sizes = [1, 2, 128], strides = [1, 1, 1]} : vector<8x2x128xf32> to vector<1x2x128xf32>
    %483 = vector.shape_cast %482 : vector<1x2x128xf32> to vector<2x128xf32>
    %cst_86 = arith.constant dense<0.000000e+00> : vector<2x128xf32>
    %484 = tpu.matmul %475, %372, %cst_86 {dimension_numbers = #tpu.dot_dimension_numbers<[1], [0], [0], [1], [0, 0, 1, 1], [], []>} : vector<2x32xf32>, vector<32x128xf32>, vector<2x128xf32> -> vector<2x128xf32>
    %485 = arith.addf %483, %484 : vector<2x128xf32>
    %486 = vector.extract_strided_slice %485 {offsets = [0, 0], sizes = [2, 32], strides = [1, 1]} : vector<2x128xf32> to vector<2x32xf32>
    %487 = arith.negf %486 : vector<2x32xf32>
    %488 = math.exp %487 : vector<2x32xf32>
    %cst_87 = arith.constant 1.000000e+00 : f32
    %489 = vector.broadcast %cst_87 : f32 to vector<2x32xf32>
    %490 = arith.addf %489, %488 : vector<2x32xf32>
    %491 = arith.divf %489, %490 : vector<2x32xf32>
    %492 = vector.extract_strided_slice %485 {offsets = [0, 32], sizes = [2, 32], strides = [1, 1]} : vector<2x128xf32> to vector<2x32xf32>
    %493 = arith.negf %492 : vector<2x32xf32>
    %494 = math.exp %493 : vector<2x32xf32>
    %cst_88 = arith.constant 1.000000e+00 : f32
    %495 = vector.broadcast %cst_88 : f32 to vector<2x32xf32>
    %496 = arith.addf %495, %494 : vector<2x32xf32>
    %497 = arith.divf %495, %496 : vector<2x32xf32>
    %498 = vector.extract_strided_slice %485 {offsets = [0, 64], sizes = [2, 32], strides = [1, 1]} : vector<2x128xf32> to vector<2x32xf32>
    %499 = math.tanh %498 : vector<2x32xf32>
    %500 = vector.extract_strided_slice %485 {offsets = [0, 96], sizes = [2, 32], strides = [1, 1]} : vector<2x128xf32> to vector<2x32xf32>
    %501 = arith.negf %500 : vector<2x32xf32>
    %502 = math.exp %501 : vector<2x32xf32>
    %cst_89 = arith.constant 1.000000e+00 : f32
    %503 = vector.broadcast %cst_89 : f32 to vector<2x32xf32>
    %504 = arith.addf %503, %502 : vector<2x32xf32>
    %505 = arith.divf %503, %504 : vector<2x32xf32>
    %506 = arith.mulf %497, %473 : vector<2x32xf32>
    %507 = arith.mulf %491, %499 : vector<2x32xf32>
    %508 = arith.addf %506, %507 : vector<2x32xf32>
    %509 = math.tanh %508 : vector<2x32xf32>
    %510 = arith.mulf %505, %509 : vector<2x32xf32>
    %511 = vector.broadcast %373 : vector<1x32xf32> to vector<2x32xf32>
    %512 = arith.mulf %510, %511 : vector<2x32xf32>
    %cst_90 = arith.constant dense<0.000000e+00> : vector<2xf32>
    %513 = vector.multi_reduction <add>, %512, %cst_90 [1] : vector<2x32xf32> to vector<2xf32>
    %514 = vector.shape_cast %513 : vector<2xf32> to vector<2x1xf32>
    %515 = vector.broadcast %374 : vector<1x1xf32> to vector<2x1xf32>
    %516 = arith.addf %514, %515 : vector<2x1xf32>
    %517 = vector.extract_strided_slice %371 {offsets = [4, 0, 0], sizes = [1, 2, 128], strides = [1, 1, 1]} : vector<8x2x128xf32> to vector<1x2x128xf32>
    %518 = vector.shape_cast %517 : vector<1x2x128xf32> to vector<2x128xf32>
    %cst_91 = arith.constant dense<0.000000e+00> : vector<2x128xf32>
    %519 = tpu.matmul %510, %372, %cst_91 {dimension_numbers = #tpu.dot_dimension_numbers<[1], [0], [0], [1], [0, 0, 1, 1], [], []>} : vector<2x32xf32>, vector<32x128xf32>, vector<2x128xf32> -> vector<2x128xf32>
    %520 = arith.addf %518, %519 : vector<2x128xf32>
    %521 = vector.extract_strided_slice %520 {offsets = [0, 0], sizes = [2, 32], strides = [1, 1]} : vector<2x128xf32> to vector<2x32xf32>
    %522 = arith.negf %521 : vector<2x32xf32>
    %523 = math.exp %522 : vector<2x32xf32>
    %cst_92 = arith.constant 1.000000e+00 : f32
    %524 = vector.broadcast %cst_92 : f32 to vector<2x32xf32>
    %525 = arith.addf %524, %523 : vector<2x32xf32>
    %526 = arith.divf %524, %525 : vector<2x32xf32>
    %527 = vector.extract_strided_slice %520 {offsets = [0, 32], sizes = [2, 32], strides = [1, 1]} : vector<2x128xf32> to vector<2x32xf32>
    %528 = arith.negf %527 : vector<2x32xf32>
    %529 = math.exp %528 : vector<2x32xf32>
    %cst_93 = arith.constant 1.000000e+00 : f32
    %530 = vector.broadcast %cst_93 : f32 to vector<2x32xf32>
    %531 = arith.addf %530, %529 : vector<2x32xf32>
    %532 = arith.divf %530, %531 : vector<2x32xf32>
    %533 = vector.extract_strided_slice %520 {offsets = [0, 64], sizes = [2, 32], strides = [1, 1]} : vector<2x128xf32> to vector<2x32xf32>
    %534 = math.tanh %533 : vector<2x32xf32>
    %535 = vector.extract_strided_slice %520 {offsets = [0, 96], sizes = [2, 32], strides = [1, 1]} : vector<2x128xf32> to vector<2x32xf32>
    %536 = arith.negf %535 : vector<2x32xf32>
    %537 = math.exp %536 : vector<2x32xf32>
    %cst_94 = arith.constant 1.000000e+00 : f32
    %538 = vector.broadcast %cst_94 : f32 to vector<2x32xf32>
    %539 = arith.addf %538, %537 : vector<2x32xf32>
    %540 = arith.divf %538, %539 : vector<2x32xf32>
    %541 = arith.mulf %532, %508 : vector<2x32xf32>
    %542 = arith.mulf %526, %534 : vector<2x32xf32>
    %543 = arith.addf %541, %542 : vector<2x32xf32>
    %544 = math.tanh %543 : vector<2x32xf32>
    %545 = arith.mulf %540, %544 : vector<2x32xf32>
    %546 = vector.broadcast %373 : vector<1x32xf32> to vector<2x32xf32>
    %547 = arith.mulf %545, %546 : vector<2x32xf32>
    %cst_95 = arith.constant dense<0.000000e+00> : vector<2xf32>
    %548 = vector.multi_reduction <add>, %547, %cst_95 [1] : vector<2x32xf32> to vector<2xf32>
    %549 = vector.shape_cast %548 : vector<2xf32> to vector<2x1xf32>
    %550 = vector.broadcast %374 : vector<1x1xf32> to vector<2x1xf32>
    %551 = arith.addf %549, %550 : vector<2x1xf32>
    %552 = vector.extract_strided_slice %371 {offsets = [5, 0, 0], sizes = [1, 2, 128], strides = [1, 1, 1]} : vector<8x2x128xf32> to vector<1x2x128xf32>
    %553 = vector.shape_cast %552 : vector<1x2x128xf32> to vector<2x128xf32>
    %cst_96 = arith.constant dense<0.000000e+00> : vector<2x128xf32>
    %554 = tpu.matmul %545, %372, %cst_96 {dimension_numbers = #tpu.dot_dimension_numbers<[1], [0], [0], [1], [0, 0, 1, 1], [], []>} : vector<2x32xf32>, vector<32x128xf32>, vector<2x128xf32> -> vector<2x128xf32>
    %555 = arith.addf %553, %554 : vector<2x128xf32>
    %556 = vector.extract_strided_slice %555 {offsets = [0, 0], sizes = [2, 32], strides = [1, 1]} : vector<2x128xf32> to vector<2x32xf32>
    %557 = arith.negf %556 : vector<2x32xf32>
    %558 = math.exp %557 : vector<2x32xf32>
    %cst_97 = arith.constant 1.000000e+00 : f32
    %559 = vector.broadcast %cst_97 : f32 to vector<2x32xf32>
    %560 = arith.addf %559, %558 : vector<2x32xf32>
    %561 = arith.divf %559, %560 : vector<2x32xf32>
    %562 = vector.extract_strided_slice %555 {offsets = [0, 32], sizes = [2, 32], strides = [1, 1]} : vector<2x128xf32> to vector<2x32xf32>
    %563 = arith.negf %562 : vector<2x32xf32>
    %564 = math.exp %563 : vector<2x32xf32>
    %cst_98 = arith.constant 1.000000e+00 : f32
    %565 = vector.broadcast %cst_98 : f32 to vector<2x32xf32>
    %566 = arith.addf %565, %564 : vector<2x32xf32>
    %567 = arith.divf %565, %566 : vector<2x32xf32>
    %568 = vector.extract_strided_slice %555 {offsets = [0, 64], sizes = [2, 32], strides = [1, 1]} : vector<2x128xf32> to vector<2x32xf32>
    %569 = math.tanh %568 : vector<2x32xf32>
    %570 = vector.extract_strided_slice %555 {offsets = [0, 96], sizes = [2, 32], strides = [1, 1]} : vector<2x128xf32> to vector<2x32xf32>
    %571 = arith.negf %570 : vector<2x32xf32>
    %572 = math.exp %571 : vector<2x32xf32>
    %cst_99 = arith.constant 1.000000e+00 : f32
    %573 = vector.broadcast %cst_99 : f32 to vector<2x32xf32>
    %574 = arith.addf %573, %572 : vector<2x32xf32>
    %575 = arith.divf %573, %574 : vector<2x32xf32>
    %576 = arith.mulf %567, %543 : vector<2x32xf32>
    %577 = arith.mulf %561, %569 : vector<2x32xf32>
    %578 = arith.addf %576, %577 : vector<2x32xf32>
    %579 = math.tanh %578 : vector<2x32xf32>
    %580 = arith.mulf %575, %579 : vector<2x32xf32>
    %581 = vector.broadcast %373 : vector<1x32xf32> to vector<2x32xf32>
    %582 = arith.mulf %580, %581 : vector<2x32xf32>
    %cst_100 = arith.constant dense<0.000000e+00> : vector<2xf32>
    %583 = vector.multi_reduction <add>, %582, %cst_100 [1] : vector<2x32xf32> to vector<2xf32>
    %584 = vector.shape_cast %583 : vector<2xf32> to vector<2x1xf32>
    %585 = vector.broadcast %374 : vector<1x1xf32> to vector<2x1xf32>
    %586 = arith.addf %584, %585 : vector<2x1xf32>
    %587 = vector.extract_strided_slice %371 {offsets = [6, 0, 0], sizes = [1, 2, 128], strides = [1, 1, 1]} : vector<8x2x128xf32> to vector<1x2x128xf32>
    %588 = vector.shape_cast %587 : vector<1x2x128xf32> to vector<2x128xf32>
    %cst_101 = arith.constant dense<0.000000e+00> : vector<2x128xf32>
    %589 = tpu.matmul %580, %372, %cst_101 {dimension_numbers = #tpu.dot_dimension_numbers<[1], [0], [0], [1], [0, 0, 1, 1], [], []>} : vector<2x32xf32>, vector<32x128xf32>, vector<2x128xf32> -> vector<2x128xf32>
    %590 = arith.addf %588, %589 : vector<2x128xf32>
    %591 = vector.extract_strided_slice %590 {offsets = [0, 0], sizes = [2, 32], strides = [1, 1]} : vector<2x128xf32> to vector<2x32xf32>
    %592 = arith.negf %591 : vector<2x32xf32>
    %593 = math.exp %592 : vector<2x32xf32>
    %cst_102 = arith.constant 1.000000e+00 : f32
    %594 = vector.broadcast %cst_102 : f32 to vector<2x32xf32>
    %595 = arith.addf %594, %593 : vector<2x32xf32>
    %596 = arith.divf %594, %595 : vector<2x32xf32>
    %597 = vector.extract_strided_slice %590 {offsets = [0, 32], sizes = [2, 32], strides = [1, 1]} : vector<2x128xf32> to vector<2x32xf32>
    %598 = arith.negf %597 : vector<2x32xf32>
    %599 = math.exp %598 : vector<2x32xf32>
    %cst_103 = arith.constant 1.000000e+00 : f32
    %600 = vector.broadcast %cst_103 : f32 to vector<2x32xf32>
    %601 = arith.addf %600, %599 : vector<2x32xf32>
    %602 = arith.divf %600, %601 : vector<2x32xf32>
    %603 = vector.extract_strided_slice %590 {offsets = [0, 64], sizes = [2, 32], strides = [1, 1]} : vector<2x128xf32> to vector<2x32xf32>
    %604 = math.tanh %603 : vector<2x32xf32>
    %605 = vector.extract_strided_slice %590 {offsets = [0, 96], sizes = [2, 32], strides = [1, 1]} : vector<2x128xf32> to vector<2x32xf32>
    %606 = arith.negf %605 : vector<2x32xf32>
    %607 = math.exp %606 : vector<2x32xf32>
    %cst_104 = arith.constant 1.000000e+00 : f32
    %608 = vector.broadcast %cst_104 : f32 to vector<2x32xf32>
    %609 = arith.addf %608, %607 : vector<2x32xf32>
    %610 = arith.divf %608, %609 : vector<2x32xf32>
    %611 = arith.mulf %602, %578 : vector<2x32xf32>
    %612 = arith.mulf %596, %604 : vector<2x32xf32>
    %613 = arith.addf %611, %612 : vector<2x32xf32>
    %614 = math.tanh %613 : vector<2x32xf32>
    %615 = arith.mulf %610, %614 : vector<2x32xf32>
    %616 = vector.broadcast %373 : vector<1x32xf32> to vector<2x32xf32>
    %617 = arith.mulf %615, %616 : vector<2x32xf32>
    %cst_105 = arith.constant dense<0.000000e+00> : vector<2xf32>
    %618 = vector.multi_reduction <add>, %617, %cst_105 [1] : vector<2x32xf32> to vector<2xf32>
    %619 = vector.shape_cast %618 : vector<2xf32> to vector<2x1xf32>
    %620 = vector.broadcast %374 : vector<1x1xf32> to vector<2x1xf32>
    %621 = arith.addf %619, %620 : vector<2x1xf32>
    %622 = vector.extract_strided_slice %371 {offsets = [7, 0, 0], sizes = [1, 2, 128], strides = [1, 1, 1]} : vector<8x2x128xf32> to vector<1x2x128xf32>
    %623 = vector.shape_cast %622 : vector<1x2x128xf32> to vector<2x128xf32>
    %cst_106 = arith.constant dense<0.000000e+00> : vector<2x128xf32>
    %624 = tpu.matmul %615, %372, %cst_106 {dimension_numbers = #tpu.dot_dimension_numbers<[1], [0], [0], [1], [0, 0, 1, 1], [], []>} : vector<2x32xf32>, vector<32x128xf32>, vector<2x128xf32> -> vector<2x128xf32>
    %625 = arith.addf %623, %624 : vector<2x128xf32>
    %626 = vector.extract_strided_slice %625 {offsets = [0, 0], sizes = [2, 32], strides = [1, 1]} : vector<2x128xf32> to vector<2x32xf32>
    %627 = arith.negf %626 : vector<2x32xf32>
    %628 = math.exp %627 : vector<2x32xf32>
    %cst_107 = arith.constant 1.000000e+00 : f32
    %629 = vector.broadcast %cst_107 : f32 to vector<2x32xf32>
    %630 = arith.addf %629, %628 : vector<2x32xf32>
    %631 = arith.divf %629, %630 : vector<2x32xf32>
    %632 = vector.extract_strided_slice %625 {offsets = [0, 32], sizes = [2, 32], strides = [1, 1]} : vector<2x128xf32> to vector<2x32xf32>
    %633 = arith.negf %632 : vector<2x32xf32>
    %634 = math.exp %633 : vector<2x32xf32>
    %cst_108 = arith.constant 1.000000e+00 : f32
    %635 = vector.broadcast %cst_108 : f32 to vector<2x32xf32>
    %636 = arith.addf %635, %634 : vector<2x32xf32>
    %637 = arith.divf %635, %636 : vector<2x32xf32>
    %638 = vector.extract_strided_slice %625 {offsets = [0, 64], sizes = [2, 32], strides = [1, 1]} : vector<2x128xf32> to vector<2x32xf32>
    %639 = math.tanh %638 : vector<2x32xf32>
    %640 = vector.extract_strided_slice %625 {offsets = [0, 96], sizes = [2, 32], strides = [1, 1]} : vector<2x128xf32> to vector<2x32xf32>
    %641 = arith.negf %640 : vector<2x32xf32>
    %642 = math.exp %641 : vector<2x32xf32>
    %cst_109 = arith.constant 1.000000e+00 : f32
    %643 = vector.broadcast %cst_109 : f32 to vector<2x32xf32>
    %644 = arith.addf %643, %642 : vector<2x32xf32>
    %645 = arith.divf %643, %644 : vector<2x32xf32>
    %646 = arith.mulf %637, %613 : vector<2x32xf32>
    %647 = arith.mulf %631, %639 : vector<2x32xf32>
    %648 = arith.addf %646, %647 : vector<2x32xf32>
    %649 = math.tanh %648 : vector<2x32xf32>
    %650 = arith.mulf %645, %649 : vector<2x32xf32>
    %651 = vector.broadcast %373 : vector<1x32xf32> to vector<2x32xf32>
    %652 = arith.mulf %650, %651 : vector<2x32xf32>
    %cst_110 = arith.constant dense<0.000000e+00> : vector<2xf32>
    %653 = vector.multi_reduction <add>, %652, %cst_110 [1] : vector<2x32xf32> to vector<2xf32>
    %654 = vector.shape_cast %653 : vector<2xf32> to vector<2x1xf32>
    %655 = vector.broadcast %374 : vector<1x1xf32> to vector<2x1xf32>
    %656 = arith.addf %654, %655 : vector<2x1xf32>
    %657 = tpu.concatenate %411, %446, %481, %516, %551, %586, %621, %656 in 1 : vector<2x1xf32>, vector<2x1xf32>, vector<2x1xf32>, vector<2x1xf32>, vector<2x1xf32>, vector<2x1xf32>, vector<2x1xf32>, vector<2x1xf32> -> vector<2x8xf32>
    %658 = arith.subf %657, %4 : vector<2x8xf32>
    %659 = arith.mulf %658, %658 : vector<2x8xf32>
    %660 = arith.mulf %659, %8 : vector<2x8xf32>
    %cst_111 = arith.constant dense<0.000000e+00> : vector<2xf32>
    %661 = vector.multi_reduction <add>, %660, %cst_111 [1] : vector<2x8xf32> to vector<2xf32>
    %662 = vector.shape_cast %661 : vector<2xf32> to vector<2x1xf32>
    %663 = arith.mulf %4, %4 : vector<2x8xf32>
    %cst_112 = arith.constant dense<0.000000e+00> : vector<2xf32>
    %664 = vector.multi_reduction <add>, %663, %cst_112 [1] : vector<2x8xf32> to vector<2xf32>
    %665 = vector.shape_cast %664 : vector<2xf32> to vector<2x1xf32>
    %666 = arith.mulf %657, %657 : vector<2x8xf32>
    %cst_113 = arith.constant dense<0.000000e+00> : vector<2xf32>
    %667 = vector.multi_reduction <add>, %666, %cst_113 [1] : vector<2x8xf32> to vector<2xf32>
    %668 = vector.shape_cast %667 : vector<2xf32> to vector<2x1xf32>
    %669 = math.rsqrt %665 : vector<2x1xf32>
    %670 = arith.mulf %662, %669 : vector<2x1xf32>
    %671 = arith.mulf %665, %668 : vector<2x1xf32>
    %672 = math.sqrt %671 : vector<2x1xf32>
    %cst_114 = arith.constant 9.99999993E-9 : f32
    %673 = vector.broadcast %cst_114 : f32 to vector<2x1xf32>
    %674 = arith.maximumf %672, %673 : vector<2x1xf32>
    %675 = arith.mulf %4, %657 : vector<2x8xf32>
    %cst_115 = arith.constant dense<0.000000e+00> : vector<2xf32>
    %676 = vector.multi_reduction <add>, %675, %cst_115 [1] : vector<2x8xf32> to vector<2xf32>
    %677 = vector.shape_cast %676 : vector<2xf32> to vector<2x1xf32>
    %678 = tpu.reciprocal %674 {approx = true} : vector<2x1xf32> -> vector<2x1xf32>
    %679 = arith.mulf %677, %678 : vector<2x1xf32>
    %c0_116 = arith.constant 0 : index
    %c0_117 = arith.constant 0 : index
    %680 = vector.load %arg2[%c0_116, %c0_117] : memref<2x1xf32, #tpu.memory_space<vmem>>, vector<2x1xf32>
    %c0_118 = arith.constant 0 : index
    %c0_119 = arith.constant 0 : index
    %681 = vector.load %arg3[%c0_118, %c0_119] : memref<2x1xf32, #tpu.memory_space<vmem>>, vector<2x1xf32>
    %682 = tpu.concatenate %350, %670, %679, %680, %681 in 1 : vector<2x1xf32>, vector<2x1xf32>, vector<2x1xf32>, vector<2x1xf32>, vector<2x1xf32> -> vector<2x5xf32>
    %c0_120 = arith.constant 0 : index
    %c0_121 = arith.constant 0 : index
    %683 = vector.load %arg14[%c0_120, %c0_121] : memref<5x16xf32, #tpu.memory_space<vmem>>, vector<5x16xf32>
    %cst_122 = arith.constant dense<0.000000e+00> : vector<2x16xf32>
    %684 = tpu.matmul %682, %683, %cst_122 {dimension_numbers = #tpu.dot_dimension_numbers<[1], [0], [0], [1], [0, 0, 1, 1], [], []>} : vector<2x5xf32>, vector<5x16xf32>, vector<2x16xf32> -> vector<2x16xf32>
    %c0_123 = arith.constant 0 : index
    %c0_124 = arith.constant 0 : index
    %685 = vector.load %arg15[%c0_123, %c0_124] : memref<1x16xf32, #tpu.memory_space<vmem>>, vector<1x16xf32>
    %686 = vector.broadcast %685 : vector<1x16xf32> to vector<2x16xf32>
    %687 = arith.addf %684, %686 : vector<2x16xf32>
    %688 = math.tanh %687 : vector<2x16xf32>
    %c0_125 = arith.constant 0 : index
    %c0_126 = arith.constant 0 : index
    %689 = vector.load %arg16[%c0_125, %c0_126] : memref<16x2xf32, #tpu.memory_space<vmem>>, vector<16x2xf32>
    %cst_127 = arith.constant dense<0.000000e+00> : vector<2x2xf32>
    %690 = tpu.matmul %688, %689, %cst_127 {dimension_numbers = #tpu.dot_dimension_numbers<[1], [0], [0], [1], [0, 0, 1, 1], [], []>} : vector<2x16xf32>, vector<16x2xf32>, vector<2x2xf32> -> vector<2x2xf32>
    %c0_128 = arith.constant 0 : index
    %c0_129 = arith.constant 0 : index
    %691 = vector.load %arg17[%c0_128, %c0_129] : memref<1x2xf32, #tpu.memory_space<vmem>>, vector<1x2xf32>
    %692 = vector.broadcast %691 : vector<1x2xf32> to vector<2x2xf32>
    %693 = arith.addf %690, %692 : vector<2x2xf32>
    %cst_130 = arith.constant dense<0xFF800000> : vector<2xf32>
    %694 = vector.multi_reduction <maximumf>, %693, %cst_130 [1] : vector<2x2xf32> to vector<2xf32>
    %695 = vector.shape_cast %694 : vector<2xf32> to vector<2x1xf32>
    %696 = vector.broadcast %695 : vector<2x1xf32> to vector<2x2xf32>
    %697 = arith.subf %693, %696 : vector<2x2xf32>
    %698 = math.exp %697 : vector<2x2xf32>
    %cst_131 = arith.constant dense<0.000000e+00> : vector<2xf32>
    %699 = vector.multi_reduction <add>, %698, %cst_131 [1] : vector<2x2xf32> to vector<2xf32>
    %700 = vector.shape_cast %699 : vector<2xf32> to vector<2x1xf32>
    %701 = vector.broadcast %700 : vector<2x1xf32> to vector<2x2xf32>
    %702 = arith.divf %698, %701 : vector<2x2xf32>
    %703 = tpu.concatenate %350, %657, %682, %702 in 1 : vector<2x1xf32>, vector<2x8xf32>, vector<2x5xf32>, vector<2x2xf32> -> vector<2x16xf32>
    %c0_132 = arith.constant 0 : index
    %c0_133 = arith.constant 0 : index
    %704 = vector.load %arg18[%c0_132, %c0_133] : memref<2x16xf32, #tpu.memory_space<vmem>>, vector<2x16xf32>
    tpu.vector_store %arg18[%c0_132, %c0_133], %703 {strides = array<i32>} : memref<2x16xf32, #tpu.memory_space<vmem>>, vector<2x16xf32>,
    return
  }
  func.func @transform_0(%arg0: i32) -> (i32, i32, i32) {
    %c0_i32 = arith.constant 0 : i32
    %c0_i32_0 = arith.constant 0 : i32
    %c0_i32_1 = arith.constant 0 : i32
    return %arg0, %c0_i32, %c0_i32_0 : i32, i32, i32
  }
  func.func @transform_1(%arg0: i32) -> (i32, i32) {
    %c0_i32 = arith.constant 0 : i32
    %c0_i32_0 = arith.constant 0 : i32
    return %arg0, %c0_i32 : i32, i32
  }
  func.func @transform_2(%arg0: i32) -> (i32, i32) {
    %c0_i32 = arith.constant 0 : i32
    %c0_i32_0 = arith.constant 0 : i32
    return %arg0, %c0_i32 : i32, i32
  }
  func.func @transform_3(%arg0: i32) -> (i32, i32) {
    %c0_i32 = arith.constant 0 : i32
    %c0_i32_0 = arith.constant 0 : i32
    %c0_i32_1 = arith.constant 0 : i32
    return %c0_i32, %c0_i32_0 : i32, i32
  }
  func.func @transform_4(%arg0: i32) -> (i32, i32) {
    %c0_i32 = arith.constant 0 : i32
    %c0_i32_0 = arith.constant 0 : i32
    %c0_i32_1 = arith.constant 0 : i32
    return %c0_i32, %c0_i32_0 : i32, i32
  }
  func.func @transform_5(%arg0: i32) -> (i32, i32) {
    %c0_i32 = arith.constant 0 : i32
    %c0_i32_0 = arith.constant 0 : i32
    %c0_i32_1 = arith.constant 0 : i32
    return %c0_i32, %c0_i32_0 : i32, i32
  }
  func.func @transform_6(%arg0: i32) -> (i32, i32) {
    %c0_i32 = arith.constant 0 : i32
    %c0_i32_0 = arith.constant 0 : i32
    %c0_i32_1 = arith.constant 0 : i32
    return %c0_i32, %c0_i32_0 : i32, i32
  }
  func.func @transform_7(%arg0: i32) -> (i32, i32) {
    %c0_i32 = arith.constant 0 : i32
    %c0_i32_0 = arith.constant 0 : i32
    %c0_i32_1 = arith.constant 0 : i32
    return %c0_i32, %c0_i32_0 : i32, i32
  }
  func.func @transform_8(%arg0: i32) -> (i32, i32) {
    %c0_i32 = arith.constant 0 : i32
    %c0_i32_0 = arith.constant 0 : i32
    %c0_i32_1 = arith.constant 0 : i32
    return %c0_i32, %c0_i32_0 : i32, i32
  }
  func.func @transform_9(%arg0: i32) -> (i32, i32) {
    %c0_i32 = arith.constant 0 : i32
    %c0_i32_0 = arith.constant 0 : i32
    %c0_i32_1 = arith.constant 0 : i32
    return %c0_i32, %c0_i32_0 : i32, i32
  }
  func.func @transform_10(%arg0: i32) -> (i32, i32) {
    %c0_i32 = arith.constant 0 : i32
    %c0_i32_0 = arith.constant 0 : i32
    %c0_i32_1 = arith.constant 0 : i32
    return %c0_i32, %c0_i32_0 : i32, i32
  }
  func.func @transform_11(%arg0: i32) -> (i32, i32) {
    %c0_i32 = arith.constant 0 : i32
    %c0_i32_0 = arith.constant 0 : i32
    %c0_i32_1 = arith.constant 0 : i32
    return %c0_i32, %c0_i32_0 : i32, i32
  }
  func.func @transform_12(%arg0: i32) -> (i32, i32) {
    %c0_i32 = arith.constant 0 : i32
    %c0_i32_0 = arith.constant 0 : i32
    %c0_i32_1 = arith.constant 0 : i32
    return %c0_i32, %c0_i32_0 : i32, i32
  }
  func.func @transform_13(%arg0: i32) -> (i32, i32) {
    %c0_i32 = arith.constant 0 : i32
    %c0_i32_0 = arith.constant 0 : i32
    %c0_i32_1 = arith.constant 0 : i32
    return %c0_i32, %c0_i32_0 : i32, i32
  }
  func.func @transform_14(%arg0: i32) -> (i32, i32) {
    %c0_i32 = arith.constant 0 : i32
    %c0_i32_0 = arith.constant 0 : i32
    %c0_i32_1 = arith.constant 0 : i32
    return %c0_i32, %c0_i32_0 : i32, i32
  }
  func.func @transform_15(%arg0: i32) -> (i32, i32) {
    %c0_i32 = arith.constant 0 : i32
    %c0_i32_0 = arith.constant 0 : i32
    %c0_i32_1 = arith.constant 0 : i32
    return %c0_i32, %c0_i32_0 : i32, i32
  }
  func.func @transform_16(%arg0: i32) -> (i32, i32) {
    %c0_i32 = arith.constant 0 : i32
    %c0_i32_0 = arith.constant 0 : i32
    %c0_i32_1 = arith.constant 0 : i32
    return %c0_i32, %c0_i32_0 : i32, i32
  }
  func.func @transform_17(%arg0: i32) -> (i32, i32) {
    %c0_i32 = arith.constant 0 : i32
    %c0_i32_0 = arith.constant 0 : i32
    return %arg0, %c0_i32 : i32, i32
  }
}

</mosaic_0001>

<bundles_post_ra>
// kernel: dagmmts_forward.1
= control target key start
LH: loop header
LB: loop body
LE: loop exit
PB: predicated region body
PF: predicated region fallthrough
CT: control target
= control target key end

     0   :  { %s4236_s0 = inlined_call_operand.vmem [shape: f32[2,8,4], index: 0, kind: input, shape index: {}]   ;;  %s4237_s1 = inlined_call_operand.vmem [shape: f32[2,1], index: 1, kind: input, shape index: {}]   ;;  %s4238_s2 = inlined_call_operand.vmem [shape: f32[2,1], index: 2, kind: input, shape index: {}]   ;;  %s4239_s3 = inlined_call_operand.hbm [shape: f32[4,128], index: 3, kind: input, shape index: {}]   ;;  %s4240_s4 = inlined_call_operand.hbm [shape: f32[32,128], index: 4, kind: input, shape index: {}]   ;;  %s4241_s5 = inlined_call_operand.hbm [shape: f32[1,128], index: 5, kind: input, shape index: {}]   ;;  %s4242_s6 = inlined_call_operand.vmem [shape: f32[2,128], index: 6, kind: input, shape index: {}]   ;;  %s4243_s7 = inlined_call_operand.vmem [shape: f32[32,128], index: 7, kind: input, shape index: {}]   ;;  %s4244_s8 = inlined_call_operand.hbm [shape: f32[1,128], index: 8, kind: input, shape index: {}]   ;;  %s4245_s9 = inlined_call_operand.vmem [shape: f32[1,32], index: 9, kind: input, shape index: {}]   ;;  %s4246_s10 = inlined_call_operand.<no memory space> [shape: f32[1,1], index: 10, kind: input, shape index: {}]   ;;  %s4247_s11 = inlined_call_operand.vmem [shape: f32[1,32], index: 11, kind: input, shape index: {}]   ;;  %s4248_s13 = inlined_call_operand.vmem [shape: f32[5,16], index: 13, kind: input, shape index: {}]   ;;  %s4249_s14 = inlined_call_operand.vmem [shape: f32[1,16], index: 14, kind: input, shape index: {}]   ;;  %s4250_s15 = inlined_call_operand.vmem [shape: f32[16,2], index: 15, kind: input, shape index: {}]   ;;  %s4251_s16 = inlined_call_operand.vmem [shape: f32[1,2], index: 16, kind: input, shape index: {}]   ;;  %s4252_s17 = inlined_call_operand.vmem [shape: f32[2,16], index: 17, kind: output, shape index: {}]   ;;  %s4253_s12 = inlined_call_operand.<no memory space> [shape: f32[1,1], index: 12, kind: input, shape index: {}]  }
   0x1   :  { %4255 = sst [smem:[#allocation14_spill]] %s4236_s0  ;;  %v22_v0 = vstv %s4246_s10  ;;  %v24_v1 = vstv %s4253_s12 }
   0x2   :  { %4256 = sst [smem:[#allocation15_spill]] %s4237_s1  ;;  %23 = vst [vmem:[#allocation2] sm:$0x1] %v22_v0  ;;  %25 = vst [vmem:[#allocation3] sm:$0x1] %v24_v1 }
   0x3   :  { %26 = vsyncpa [#allocation5], 0 }
   0x4   :  { %27 = vsyncpa [#allocation7], 0 }
   0x5   :  { %28 = vsyncpa [#allocation10], 0  ;;  %s3491_s28 = smov [#allocation6]   ;;  %s3397_s18 = scalar_lea.hbm %s4240_s4, 512 }
   0x6   :  { %s50_s29 = sshll.u32 %s3491_s28, 4  ;;  %p3398_p0 = scmp.ne.s32.totalorder %s4240_s4, %s3397_s18  ;;  %s51_s29 = int_to_ptr.vmem [resolvable:$true] %s50_s29 }
   0x7   :  { %p3401_p1 = scmp.lt.u32.totalorder %s3397_s18, %s4240_s4 }
   0x9   :  { %p3403_p2 = pnand %p3401_p1, %p3398_p0 }
   0xb   :  { %3406 = shalt.err (!%p3403_p2)
}
   0xc   :  { %s3407_s12 = scalar_lea.vmem %s51_s29, 512  ;;  %p3412_p4 = scmp.lt.s32.totalorder %s51_s29, %s51_s29 }
   0xd   :  { %p3408_p3 = scmp.ne.s32.totalorder %s51_s29, %s3407_s12  ;;  %p3413_p5 = scmp.lt.s32.totalorder %s3407_s12, %s3407_s12 }
   0xf   :  { %p3414_p6 = por %p3413_p5, %p3412_p4 }
  0x11   :  { %p3415_p7 = pnand %p3414_p6, %p3408_p3 }
  0x13   :  { %3418 = shalt.err (!%p3415_p7)
}
  0x14   :  { %s3492_s21 = smov 128   ;;  %s3493_s22 = smov 8  }
  0x15   :  { %56 = dma.hbm_to_vmem [thread:$0]  %s4240_s4, 512, %s51_s29, [#allocation7], %s3492_s21, %s3492_s21, %s3493_s22  }
  0x16   :  { %s3494_s25 = smov [#allocation4]   ;;  %s3495_s27 = smov [#allocation8]  }
  0x17   :  { %s41_s26 = sshll.u32 %s3494_s25, 4  ;;  %s63_s28 = sshll.u32 %s3495_s27, 4  ;;  %s42_s26 = int_to_ptr.vmem [resolvable:$true] %s41_s26  ;;  %s64_s28 = int_to_ptr.vmem [resolvable:$true] %s63_s28 }
  0x18   :  { %s3419_s18 = scalar_lea.hbm %s4239_s3, 64 }
  0x19   :  { %p3420_p8 = scmp.ne.s32.totalorder %s4239_s3, %s3419_s18  ;;  %p3423_p9 = scmp.lt.u32.totalorder %s3419_s18, %s4239_s3 }
  0x1b   :  { %p3425_p10 = pnand %p3423_p9, %p3420_p8 }
  0x1d   :  { %3428 = shalt.err (!%p3425_p10)
}
  0x1e   :  { %s3429_s4 = scalar_lea.vmem %s42_s26, 64  ;;  %p3434_p12 = scmp.lt.s32.totalorder %s42_s26, %s42_s26 }
  0x1f   :  { %p3430_p11 = scmp.ne.s32.totalorder %s42_s26, %s3429_s4  ;;  %p3435_p13 = scmp.lt.s32.totalorder %s3429_s4, %s3429_s4 }
  0x21   :  { %p3436_p0 = por %p3435_p13, %p3434_p12 }
  0x23   :  { %p3437_p1 = pnand %p3436_p0, %p3430_p11 }
  0x25   :  { %3440 = shalt.err (!%p3437_p1)
}
  0x26   :  { %44 = dma.hbm_to_vmem [thread:$0]  %s4239_s3, 64, %s42_s26, [#allocation5]  }
  0x27   :  { %s3441_s23 = scalar_lea.hbm %s4241_s5, 16 }
  0x28   :  { %p3442_p2 = scmp.ne.s32.totalorder %s4241_s5, %s3441_s23  ;;  %p3445_p3 = scmp.lt.u32.totalorder %s3441_s23, %s4241_s5 }
  0x2a   :  { %p3447_p4 = pnand %p3445_p3, %p3442_p2 }
  0x2c   :  { %3450 = shalt.err (!%p3447_p4)
}
  0x2d   :  { %s3451_s30 = scalar_lea.vmem %s64_s28, 16  ;;  %s3455_s18 = scalar_lea.vmem %s64_s28, 32 }
  0x2e   :  { %p3452_p5 = scmp.ne.s32.totalorder %s64_s28, %s3451_s30  ;;  %p3456_p6 = scmp.lt.s32.totalorder %s64_s28, %s64_s28 }
  0x2f   :  { %p3457_p7 = scmp.lt.s32.totalorder %s3455_s18, %s3451_s30 }
  0x31   :  { %p3458_p8 = por %p3457_p7, %p3456_p6 }
  0x33   :  { %p3459_p9 = pnand %p3458_p8, %p3452_p5 }
  0x35   :  { %3462 = shalt.err (!%p3459_p9)
}
  0x36   :  { %66 = dma.hbm_to_vmem [thread:$0]  %s4241_s5, 16, %s64_s28, [#allocation7]  }
  0x37   :  { %s3496_s19 = smov [#allocation9]   ;;  %s3463_s4 = scalar_lea.hbm %s4244_s8, 16 }
  0x38   :  { %s77_s1 = sshll.u32 %s3496_s19, 4  ;;  %p3464_p10 = scmp.ne.s32.totalorder %s4244_s8, %s3463_s4  ;;  %s78_s1 = int_to_ptr.vmem [resolvable:$true] %s77_s1 }
  0x39   :  { %p3467_p11 = scmp.lt.u32.totalorder %s3463_s4, %s4244_s8 }
  0x3b   :  { %p3469_p12 = pnand %p3467_p11, %p3464_p10 }
  0x3d   :  { %3472 = shalt.err (!%p3469_p12)
}
  0x3e   :  { %s3473_s23 = scalar_lea.vmem %s78_s1, 16  ;;  %s3477_s5 = scalar_lea.vmem %s78_s1, 32 }
  0x3f   :  { %p3474_p13 = scmp.ne.s32.totalorder %s78_s1, %s3473_s23  ;;  %p3478_p0 = scmp.lt.s32.totalorder %s78_s1, %s78_s1 }
  0x40   :  { %p3479_p1 = scmp.lt.s32.totalorder %s3477_s5, %s3473_s23 }
  0x42   :  { %p3480_p2 = por %p3479_p1, %p3478_p0 }
  0x44   :  { %p3481_p3 = pnand %p3480_p2, %p3474_p13 }
  0x46   :  { %3484 = shalt.err (!%p3481_p3)
}
  0x47   :  { %80 = dma.hbm_to_vmem [thread:$0]  %s4244_s8, 16, %s78_s1, [#allocation10]  }
  0x48   :  { %3485 = dma.done.wait [#allocation5], 64  }
  0x49   :  { %3486 = vsyncadd [#allocation5], 4294967232 }
  0x4a   :  { %3487 = dma.done.wait [#allocation7], 528  }
  0x4b   :  { %3488 = vsyncadd [#allocation7], 4294966768 }
  0x4c   :  { %3489 = dma.done.wait [#allocation10], 16  }
  0x4d   :  { %3490 = vsyncadd [#allocation10], 4294967280  ;;  %v3497_v2 = vmov 1   ;;  %v3498_v3 = vmov 0   ;;  %s4257_s0 = sld [smem:[#allocation14_spill]]  ;;  %v3499_v6 = vmov 2   ;;  %v125_v16 = vlaneseq }
  0x4e   :  { %3242 = vset.pattern.permute.xlu1 %v3497_v2  ;;  %3241 = vset.pattern.permute.xlu0 %v3498_v3  ;;  %v3500_v7 = vmov 3   ;;  %v656_v8 = vld [vmem:[#allocation6] sm:$0xff]  ;;  %v657_v9 = vld [vmem:[#allocation6 + $0x8] sm:$0xff]  ;;  %v658_v10 = vld [vmem:[#allocation6 + $0x10] sm:$0xff]  ;;  %v3501_v11 = vmov 0.0|0.0   ;;  %vm3502_vm0 = vmmov 0  }
  0x4f   :  { %3115 = vmatprep.subr.bf16.mxu0 %v3501_v11  ;;  %v3681_v12 = vpack.c.bf16 %v657_v9, %v656_v8  ;;  %v659_v13 = vld [vmem:[#allocation6 + $0x18] sm:$0xff]  ;;  %v3503_v14 = vmov 0.0   ;;  %3121 = vmatprep.subr.bf16.mxu1 %v3501_v11  ;;  %v126_v17 = vand.u32 127, %v125_v16  ;;  %v3705_v18 = vshrl.u32 %v125_v16, 7  ;;  %v3748_v52 = vld [vmem:[#allocation8] ss:$0 sm:$0xff] }
  0x50   :  { %2935 = vmatprep.mubr.msk.f32.mxu0 %vm3502_vm0, %v3503_v14  ;;  %2946 = vmatprep.mubr.msk.f32.mxu1 %vm3502_vm0, %v3503_v14  ;;  %v3689_v15 = vpack.c.bf16 %v659_v13, %v658_v10  ;;  %vm135_vm1 = vcmask 1041409   ;;  %v3746_v51 = vld [vmem:[#allocation4] ss:$0 sm:$0xff]  ;;  %v3752_v54 = vld [vmem:[#allocation4 + $0x1] ss:$0 sm:$0xff]  ;;  %s3504_s18 = smov 64  }
  0x51   :  { %3117 = vmatpush3.bf16.msra.mxu0 %v3681_v12  ;;  %3123 = vmatpush3.bf16.msra.mxu1 %v3681_v12  ;;  %v3708_v21 = vsub.s32 %v126_v17, %v3705_v18  ;;  %v3728_v40 = vsub.s32 0, %v3705_v18  ;;  %v3758_v59 = vld [vmem:[#allocation4 + $0x2] ss:$0 sm:$0xff]  ;;  %v3761_v63 = vld [vmem:[#allocation4 + $0x3] ss:$0 sm:$0xff]  ;;  %s3505_s3 = smov 32  }
  0x52   :  { %3118 = vmatprep.subr.bf16.mxu0 %v3501_v11  ;;  %3124 = vmatprep.subr.bf16.mxu1 %v3501_v11  ;;  %vm660_vm2 = vcmask 261120   ;;  %vm138_vm5 = vcmask 58368   ;;  %s3506_s1 = smov 96   ;;  %vm1505_vm15 = vcmask 254976   ;;  %s3508_s25 = smov 3  }
  0x53   :  { %v3665_v4 = vld [vmem:[%s4257_s0] sm:$0xff]  ;;  %v3672_v5 = vld [vmem:[%s4257_s0 + $0x8] sm:$0xff]  ;;  %s3509_s27 = smov 5   ;;  %s3510_s8 = smov 1  }
  0x54   :  { %282 = vperm.xlu1 %3242, %v3665_v4   ;;  %149 = vperm.xlu0 %3241, %v3665_v4   ;;  %vm111_vm3 = vcmp.ne.f32.partialorder %v3665_v4, 0.0  ;;  %vm112_vm4 = vcmp.ne.f32.partialorder %v3672_v5, 0.0  ;;  %s3511_s30 = smov 4   ;;  %s4258_s20 = sld [smem:[#allocation15_spill]] }
  0x55   :  { %3120 = vmatpush3.bf16.msra.mxu0 %v3689_v15  ;;  %3126 = vmatpush3.bf16.msra.mxu1 %v3689_v15 }
  0x56   :  { %3127 = vmatprep.subr.bf16.mxu0 %v3501_v11  ;;  %3133 = vmatprep.subr.bf16.mxu1 %v3501_v11 }
  0x58   :  { %285 = vperm.xlu1 %3242, %v3672_v5   ;;  %152 = vperm.xlu0 %3241, %v3672_v5  }
  0x59   :  { %2936 = vmatmul.mubr.f32.vlgmr.msra.gmra.mrb[0].mxu0 %v3503_v14 }
  0x5a   :  { %3129 = vmatpush3.bf16.msra.mxu0 %v3681_v12  ;;  %2957 = vmatprep.mubr.msk.f32.mxu0 %vm3502_vm0, %v3503_v14 }
  0x5b   :  { %3130 = vmatprep.subr.bf16.mxu0 %v3501_v11 }
  0x5c   :  { %3244 = vset.pattern.permute.xlu1 %v3499_v6  ;;  %3243 = vset.pattern.permute.xlu0 %v3499_v6 }
  0x5d   :  { %410 = vperm.xlu1 %3244, %v3672_v5   ;;  %407 = vperm.xlu0 %3243, %v3665_v4  }
  0x5e   :  { %3132 = vmatpush3.bf16.msra.mxu0 %v3689_v15 }
  0x5f   :  { %3139 = vmatprep.subr.bf16.mxu0 %v3501_v11 }
  0x61   :  { %3245 = vset.pattern.permute.xlu1 %v3500_v7  ;;  %3246 = vset.pattern.permute.xlu0 %v3500_v7 }
  0x62   :  { %532 = vperm.xlu1 %3245, %v3665_v4   ;;  %535 = vperm.xlu0 %3246, %v3672_v5  }
  0xd3   :  { %v283_v19 = vpop.permute.xlu1 %282  ;;  %v150_v20 = vpop.permute.xlu0 %149 }
  0xd4   :  { %v290_v24 = vrot.slane %v283_v19, %v3708_v21  ;;  %v157_v25 = vrot.slane %v150_v20, %v3708_v21 }
  0xd7   :  { %v286_v22 = vpop.permute.xlu1 %285  ;;  %v153_v23 = vpop.permute.xlu0 %152 }
  0xd8   :  { %v294_v26 = vrot.slane %v286_v22, %v3708_v21  ;;  %v161_v27 = vrot.slane %v153_v23, %v3708_v21 }
  0xda   :  { %v3715_v28 = vsel %vm135_vm1, %v294_v26, %v290_v24  ;;  %v162_v29 = vsel %vm135_vm1, %v161_v27, %v157_v25  ;;  %v3768_v25 = vsub.s32 1, %v3705_v18 }
  0xdb   :  { %297 = vxpose.xlu0.b32.start.end [1/1] (short) (narrow) %v3715_v28, 8  ;;  %164 = vxpose.xlu1.b32.start.end [1/1] (short) (narrow) %v162_v29, 8 }
  0xdc   :  { %v411_v30 = vpop.permute.xlu1 %410  ;;  %v408_v31 = vpop.permute.xlu0 %407 }
  0xdd   :  { %v419_v32 = vrot.slane %v411_v30, %v3708_v21  ;;  %v415_v33 = vrot.slane %v408_v31, %v3708_v21 }
  0xdf   :  { %v420_v34 = vsel %vm135_vm1, %v419_v32, %v415_v33 }
  0xe0   :  { %422 = vxpose.xlu0.b32.start.end [1/1] (short) (narrow) %v420_v34, 8 }
  0xe1   :  { %v533_v35 = vpop.permute.xlu1 %532  ;;  %v536_v36 = vpop.permute.xlu0 %535 }
  0xe2   :  { %v540_v37 = vrot.slane %v533_v35, %v3708_v21  ;;  %v544_v38 = vrot.slane %v536_v36, %v3708_v21 }
  0xe4   :  { %v545_v39 = vsel %vm135_vm1, %v544_v38, %v540_v37 }
  0xe5   :  { %547 = vxpose.xlu1.b32.start.end [1/1] (short) (narrow) %v545_v39, 8 }
 0x103   :  { %3247 = vset.pattern.permute.xlu1 %v3498_v3 }
 0x109   :  { %3253 = vset.pattern.permute.xlu0 %v3497_v2 }
 0x12c   :  { %v730_v45 = vpop.f32.mrb[0].mxu0 }
 0x12d   :  { %v2937_v46 = vpop.f32.mrb[1].mxu0 }
 0x15b   :  { %v3730_v41 = vpop.trf.xlu1  ;;  %v3732_v42 = vpop.trf.xlu0 }
 0x15c   :  { %v207_v43 = vrot.slane %v3730_v41, %v3728_v40  ;;  %v332_v44 = vrot.slane %v3732_v42, %v3728_v40  ;;  %v214_v26 = vrot.slane %v3730_v41, %v3768_v25  ;;  %v339_v31 = vrot.slane %v3732_v42, %v3768_v25 }
 0x15e   :  { %209 = vbcast.lane.b32.xlu0 %v207_v43, 256  ;;  %334 = vbcast.lane.b32.xlu1 %v332_v44, 256 }
 0x160   :  { %v3738_v47 = vpop.trf.xlu0 }
 0x161   :  { %v457_v48 = vrot.slane %v3738_v47, %v3728_v40  ;;  %v464_v27 = vrot.slane %v3738_v47, %v3768_v25 }
 0x163   :  { %459 = vbcast.lane.b32.xlu1 %v457_v48, 256 }
 0x165   :  { %v3742_v49 = vpop.trf.xlu1 }
 0x166   :  { %v582_v50 = vrot.slane %v3742_v49, %v3728_v40  ;;  %v589_v32 = vrot.slane %v3742_v49, %v3768_v25 }
 0x168   :  { %584 = vbcast.lane.b32.xlu1 %v582_v50, 256 }
 0x1d0   :  { %v3750_v53 = vpop.permute.xlu0 %209  ;;  %v335_v55 = vpop.permute.xlu1 %334 }
 0x1d1   :  { %v265_v56 = vmul.f32 %v3746_v51, %v3750_v53  ;;  %v390_v58 = vmul.f32 %v3752_v54, %v335_v55 }
 0x1d3   :  { %v273_v57 = vadd.f32 %v3748_v52, %v265_v56 }
 0x1d5   :  { %v460_v60 = vpop.permute.xlu1 %459  ;;  %v398_v61 = vadd.f32 %v390_v58, %v273_v57 }
 0x1d6   :  { %v515_v62 = vmul.f32 %v3758_v59, %v460_v60 }
 0x1d8   :  { %v523_v1 = vadd.f32 %v515_v62, %v398_v61 }
 0x1da   :  { %v585_v0 = vpop.permute.xlu1 %584 }
 0x1db   :  { %v640_v3 = vmul.f32 %v3761_v63, %v585_v0 }
 0x1dd   :  { %v648_v6 = vadd.f32 %v640_v3, %v523_v1 }
 0x1df   :  { %v734_v7 = vadd.f32 %v730_v45, %v648_v6 }
 0x1e1   :  { %3255 = vtanh.f32 %v734_v7  ;;  %v2800_v9 = vmul.f32 -1.442695, %v734_v7 }
 0x1e3   :  { %3257 = vpow2.f32 %v2800_v9 }
 0x1eb   :  { %v3256_v8 = vpop.eup %3255 }
 0x1ec   :  { %744 = vrot.lane.b32.xlu0 %v3256_v8, %s3504_s18 }
 0x1ed   :  { %v3258_v10 = vpop.eup %3257 }
 0x1ee   :  { %v738_v13 = vadd.f32 1.0, %v3258_v10  ;;  %v220_v10 = vsub.s32 2, %v3705_v18 }
 0x1f0   :  { %3259 = vrcp.f32 %v738_v13  ;;  %v221_v13 = vrot.slane %v3730_v41, %v220_v10 }
 0x1fa   :  { %v3260_v16 = vpop.eup %3259 }
 0x1fb   :  { %v742_v20 = vmul.f32 0.0, %v3260_v16 }
 0x25e   :  { %v745_v17 = vpop.permute.xlu0 %744 }
 0x25f   :  { %v747_v19 = vmul.f32 %v3260_v16, %v745_v17 }
 0x261   :  { %749 = vrot.lane.b32.xlu1 %v747_v19, %s3505_s3 }
 0x2d3   :  { %v750_v22 = vpop.permute.xlu1 %749 }
 0x2d4   :  { %v752_v23 = vadd.f32 %v750_v22, %v742_v20  ;;  %v346_v20 = vrot.slane %v3732_v42, %v220_v10  ;;  %v596_v22 = vrot.slane %v3742_v49, %v220_v10 }
 0x2d6   :  { %3261 = vtanh.f32 %v752_v23 }
 0x2e0   :  { %v3262_v24 = vpop.eup %3261 }
 0x2e1   :  { %755 = vrot.lane.b32.xlu0 %v3262_v24, %s3504_s18 }
 0x2e5   :  { %216 = vbcast.lane.b32.xlu0 %v214_v26, 256 }
 0x2e9   :  { %466 = vbcast.lane.b32.xlu0 %v464_v27, 256 }
 0x353   :  { %v756_v29 = vpop.permute.xlu0 %755 }
 0x354   :  { %v3774_v30 = vmul.f32 %v3260_v16, %v756_v29  ;;  %v471_v16 = vrot.slane %v3738_v47, %v220_v10 }
 0x356   :  { %764 = vrot.lane.b32.xlu1 %v3774_v30, %s3505_s3 }
 0x357   :  { %v3789_v34 = vpop.permute.xlu0 %216 }
 0x358   :  { %v266_v36 = vmul.f32 %v3746_v51, %v3789_v34 }
 0x35a   :  { %341 = vbcast.lane.b32.xlu1 %v339_v31, 256  ;;  %v274_v38 = vadd.f32 %v3748_v52, %v266_v36 }
 0x35b   :  { %v467_v39 = vpop.permute.xlu0 %466 }
 0x35c   :  { %v516_v45 = vmul.f32 %v3758_v59, %v467_v39 }
 0x35e   :  { %591 = vbcast.lane.b32.xlu1 %v589_v32, 256 }
 0x3c8   :  { %v765_v33 = vpop.permute.xlu1 %764 }
 0x3c9   :  { %2947 = vmatmul.mubr.msk.f32.vlgmr.msra.gmra.mrb[0].mxu1 %vm660_vm2, %v765_v33 }
 0x3ca   :  { %3135 = vmatpush3.bf16.msra.mxu1 %v3681_v12  ;;  %2968 = vmatprep.mubr.msk.f32.mxu1 %vm3502_vm0, %v3503_v14 }
 0x3cb   :  { %3136 = vmatprep.subr.bf16.mxu1 %v3501_v11 }
 0x3cc   :  { %v342_v35 = vpop.permute.xlu1 %341 }
 0x3cd   :  { %v391_v37 = vmul.f32 %v3752_v54, %v342_v35 }
 0x3ce   :  { %3138 = vmatpush3.bf16.msra.mxu1 %v3689_v15 }
 0x3cf   :  { %3145 = vmatprep.subr.bf16.mxu1 %v3501_v11  ;;  %v399_v43 = vadd.f32 %v391_v37, %v274_v38 }
 0x3d0   :  { %v592_v44 = vpop.permute.xlu1 %591 }
 0x3d1   :  { %v641_v46 = vmul.f32 %v3761_v63, %v592_v44  ;;  %v524_v48 = vadd.f32 %v516_v45, %v399_v43 }
 0x3d3   :  { %v649_v50 = vadd.f32 %v641_v46, %v524_v48 }
 0x49c   :  { %v834_v55 = vpop.f32.mrb[0].mxu1 }
 0x49d   :  { %v838_v56 = vadd.f32 %v834_v55, %v649_v50  ;;  %v2948_v57 = vpop.f32.mrb[1].mxu1 }
 0x49f   :  { %3263 = vtanh.f32 %v838_v56  ;;  %v2802_v60 = vmul.f32 -1.442695, %v838_v56 }
 0x4a1   :  { %3265 = vpow2.f32 %v2802_v60 }
 0x4a9   :  { %v3264_v58 = vpop.eup %3263 }
 0x4aa   :  { %848 = vrot.lane.b32.xlu0 %v3264_v58, %s3504_s18 }
 0x4ab   :  { %v3266_v61 = vpop.eup %3265 }
 0x4ac   :  { %v842_v62 = vadd.f32 1.0, %v3266_v61 }
 0x4ae   :  { %3267 = vrcp.f32 %v842_v62 }
 0x4b8   :  { %v3268_v0 = vpop.eup %3267 }
 0x4b9   :  { %v846_v6 = vmul.f32 %v3268_v0, %v752_v23 }
 0x51c   :  { %v849_v1 = vpop.permute.xlu0 %848 }
 0x51d   :  { %v851_v3 = vmul.f32 %v3268_v0, %v849_v1  ;;  %v227_v1 = vsub.s32 3, %v3705_v18 }
 0x51f   :  { %853 = vrot.lane.b32.xlu1 %v851_v3, %s3505_s3  ;;  %v228_v3 = vrot.slane %v3730_v41, %v227_v1  ;;  %v603_v10 = vrot.slane %v3742_v49, %v227_v1 }
 0x591   :  { %v854_v7 = vpop.permute.xlu1 %853 }
 0x592   :  { %v856_v8 = vadd.f32 %v854_v7, %v846_v6  ;;  %v478_v6 = vrot.slane %v3738_v47, %v227_v1 }
 0x594   :  { %3269 = vtanh.f32 %v856_v8 }
 0x59e   :  { %v3270_v9 = vpop.eup %3269 }
 0x59f   :  { %859 = vrot.lane.b32.xlu0 %v3270_v9, %s3504_s18 }
 0x5a3   :  { %223 = vbcast.lane.b32.xlu0 %v221_v13, 256 }
 0x5a7   :  { %473 = vbcast.lane.b32.xlu0 %v471_v16, 256 }
 0x611   :  { %v860_v17 = vpop.permute.xlu0 %859 }
 0x612   :  { %v3803_v19 = vmul.f32 %v3268_v0, %v860_v17 }
 0x614   :  { %868 = vrot.lane.b32.xlu1 %v3803_v19, %s3505_s3 }
 0x615   :  { %v3816_v24 = vpop.permute.xlu0 %223 }
 0x616   :  { %v267_v27 = vmul.f32 %v3746_v51, %v3816_v24 }
 0x618   :  { %348 = vbcast.lane.b32.xlu1 %v346_v20, 256  ;;  %v275_v31 = vadd.f32 %v3748_v52, %v267_v27 }
 0x619   :  { %v474_v32 = vpop.permute.xlu0 %473 }
 0x61a   :  { %v517_v36 = vmul.f32 %v3758_v59, %v474_v32 }
 0x61c   :  { %598 = vbcast.lane.b32.xlu1 %v596_v22, 256 }
 0x686   :  { %v869_v23 = vpop.permute.xlu1 %868 }
 0x687   :  { %2958 = vmatmul.mubr.msk.f32.vlgmr.msra.gmra.mrb[2].mxu0 %vm660_vm2, %v869_v23 }
 0x688   :  { %3141 = vmatpush3.bf16.msra.mxu0 %v3681_v12  ;;  %2979 = vmatprep.mubr.msk.f32.mxu0 %vm3502_vm0, %v3503_v14 }
 0x689   :  { %3142 = vmatprep.subr.bf16.mxu0 %v3501_v11 }
 0x68a   :  { %v349_v26 = vpop.permute.xlu1 %348 }
 0x68b   :  { %v392_v29 = vmul.f32 %v3752_v54, %v349_v26 }
 0x68c   :  { %3144 = vmatpush3.bf16.msra.mxu0 %v3689_v15 }
 0x68d   :  { %3151 = vmatprep.subr.bf16.mxu0 %v3501_v11  ;;  %v400_v33 = vadd.f32 %v392_v29, %v275_v31 }
 0x68e   :  { %v599_v35 = vpop.permute.xlu1 %598 }
 0x68f   :  { %v642_v37 = vmul.f32 %v3761_v63, %v599_v35  ;;  %v525_v38 = vadd.f32 %v517_v36, %v400_v33 }
 0x691   :  { %v650_v39 = vadd.f32 %v642_v37, %v525_v38 }
 0x75a   :  { %v938_v43 = vpop.f32.mrb[2].mxu0 }
 0x75b   :  { %v942_v44 = vadd.f32 %v938_v43, %v650_v39  ;;  %v2959_v45 = vpop.f32.mrb[3].mxu0 }
 0x75d   :  { %3271 = vtanh.f32 %v942_v44  ;;  %v2804_v48 = vmul.f32 -1.442695, %v942_v44 }
 0x75f   :  { %3273 = vpow2.f32 %v2804_v48 }
 0x767   :  { %v3272_v46 = vpop.eup %3271 }
 0x768   :  { %952 = vrot.lane.b32.xlu0 %v3272_v46, %s3504_s18 }
 0x769   :  { %v3274_v50 = vpop.eup %3273 }
 0x76a   :  { %v946_v55 = vadd.f32 1.0, %v3274_v50 }
 0x76c   :  { %3275 = vrcp.f32 %v946_v55 }
 0x776   :  { %v3276_v56 = vpop.eup %3275 }
 0x777   :  { %v950_v60 = vmul.f32 %v3276_v56, %v856_v8  ;;  %v353_v8 = vrot.slane %v3732_v42, %v227_v1 }
 0x7da   :  { %v953_v57 = vpop.permute.xlu0 %952 }
 0x7db   :  { %v955_v58 = vmul.f32 %v3276_v56, %v953_v57 }
 0x7dd   :  { %957 = vrot.lane.b32.xlu1 %v955_v58, %s3505_s3 }
 0x84f   :  { %v958_v61 = vpop.permute.xlu1 %957 }
 0x850   :  { %v960_v62 = vadd.f32 %v958_v61, %v950_v60  ;;  %v234_v60 = vsub.s32 4, %v3705_v18 }
 0x852   :  { %3277 = vtanh.f32 %v960_v62  ;;  %v235_v61 = vrot.slane %v3730_v41, %v234_v60 }
 0x85c   :  { %v3278_v0 = vpop.eup %3277 }
 0x85d   :  { %963 = vrot.lane.b32.xlu0 %v3278_v0, %s3504_s18  ;;  %v485_v0 = vrot.slane %v3738_v47, %v234_v60 }
 0x861   :  { %230 = vbcast.lane.b32.xlu0 %v228_v3, 256 }
 0x865   :  { %480 = vbcast.lane.b32.xlu0 %v478_v6, 256  ;;  %v610_v6 = vrot.slane %v3742_v49, %v234_v60 }
 0x8cf   :  { %v964_v7 = vpop.permute.xlu0 %963 }
 0x8d0   :  { %v3830_v9 = vmul.f32 %v3276_v56, %v964_v7 }
 0x8d2   :  { %972 = vrot.lane.b32.xlu1 %v3830_v9, %s3505_s3 }
 0x8d3   :  { %v3843_v16 = vpop.permute.xlu0 %230 }
 0x8d4   :  { %v268_v20 = vmul.f32 %v3746_v51, %v3843_v16 }
 0x8d6   :  { %355 = vbcast.lane.b32.xlu1 %v353_v8, 256  ;;  %v276_v23 = vadd.f32 %v3748_v52, %v268_v20 }
 0x8d7   :  { %v481_v26 = vpop.permute.xlu0 %480 }
 0x8d8   :  { %v518_v31 = vmul.f32 %v3758_v59, %v481_v26 }
 0x8da   :  { %605 = vbcast.lane.b32.xlu1 %v603_v10, 256 }
 0x944   :  { %v973_v13 = vpop.permute.xlu1 %972 }
 0x945   :  { %2969 = vmatmul.mubr.msk.f32.vlgmr.msra.gmra.mrb[2].mxu1 %vm660_vm2, %v973_v13 }
 0x946   :  { %3147 = vmatpush3.bf16.msra.mxu1 %v3681_v12  ;;  %2990 = vmatprep.mubr.msk.f32.mxu1 %vm3502_vm0, %v3503_v14 }
 0x947   :  { %3148 = vmatprep.subr.bf16.mxu1 %v3501_v11 }
 0x948   :  { %v356_v17 = vpop.permute.xlu1 %355 }
 0x949   :  { %v393_v22 = vmul.f32 %v3752_v54, %v356_v17 }
 0x94a   :  { %3150 = vmatpush3.bf16.msra.mxu1 %v3689_v15 }
 0x94b   :  { %3157 = vmatprep.subr.bf16.mxu1 %v3501_v11  ;;  %v401_v27 = vadd.f32 %v393_v22, %v276_v23 }
 0x94c   :  { %v606_v29 = vpop.permute.xlu1 %605 }
 0x94d   :  { %v643_v32 = vmul.f32 %v3761_v63, %v606_v29  ;;  %v526_v33 = vadd.f32 %v518_v31, %v401_v27 }
 0x94f   :  { %v651_v35 = vadd.f32 %v643_v32, %v526_v33 }
 0xa18   :  { %v1042_v36 = vpop.f32.mrb[2].mxu1 }
 0xa19   :  { %v1046_v37 = vadd.f32 %v1042_v36, %v651_v35  ;;  %v2970_v38 = vpop.f32.mrb[3].mxu1 }
 0xa1b   :  { %3279 = vtanh.f32 %v1046_v37  ;;  %v2806_v43 = vmul.f32 -1.442695, %v1046_v37 }
 0xa1d   :  { %3281 = vpow2.f32 %v2806_v43 }
 0xa25   :  { %v3280_v39 = vpop.eup %3279 }
 0xa26   :  { %1056 = vrot.lane.b32.xlu0 %v3280_v39, %s3504_s18 }
 0xa27   :  { %v3282_v44 = vpop.eup %3281 }
 0xa28   :  { %v1050_v45 = vadd.f32 1.0, %v3282_v44 }
 0xa2a   :  { %3283 = vrcp.f32 %v1050_v45 }
 0xa34   :  { %v3284_v46 = vpop.eup %3283 }
 0xa35   :  { %v1054_v55 = vmul.f32 %v3284_v46, %v960_v62  ;;  %v360_v62 = vrot.slane %v3732_v42, %v234_v60 }
 0xa98   :  { %v1057_v48 = vpop.permute.xlu0 %1056 }
 0xa99   :  { %v1059_v50 = vmul.f32 %v3284_v46, %v1057_v48 }
 0xa9b   :  { %1061 = vrot.lane.b32.xlu1 %v1059_v50, %s3505_s3 }
 0xb0d   :  { %v1062_v56 = vpop.permute.xlu1 %1061 }
 0xb0e   :  { %v1064_v57 = vadd.f32 %v1062_v56, %v1054_v55 }
 0xb10   :  { %3285 = vtanh.f32 %v1064_v57 }
 0xb1a   :  { %v3286_v58 = vpop.eup %3285 }
 0xb1b   :  { %1067 = vrot.lane.b32.xlu0 %v3286_v58, %s3504_s18  ;;  %v241_v58 = vsub.s32 5, %v3705_v18 }
 0xb1d   :  { %v242_v60 = vrot.slane %v3730_v41, %v241_v58 }
 0xb1f   :  { %237 = vbcast.lane.b32.xlu0 %v235_v61, 256  ;;  %v492_v61 = vrot.slane %v3738_v47, %v241_v58 }
 0xb23   :  { %487 = vbcast.lane.b32.xlu0 %v485_v0, 256 }
 0xb8d   :  { %v1068_v1 = vpop.permute.xlu0 %1067 }
 0xb8e   :  { %v3857_v3 = vmul.f32 %v3284_v46, %v1068_v1 }
 0xb90   :  { %1076 = vrot.lane.b32.xlu1 %v3857_v3, %s3505_s3 }
 0xb91   :  { %v3870_v8 = vpop.permute.xlu0 %237 }
 0xb92   :  { %v269_v13 = vmul.f32 %v3746_v51, %v3870_v8 }
 0xb94   :  { %362 = vbcast.lane.b32.xlu1 %v360_v62, 256  ;;  %v277_v20 = vadd.f32 %v3748_v52, %v269_v13  ;;  %v617_v62 = vrot.slane %v3742_v49, %v241_v58 }
 0xb95   :  { %v488_v22 = vpop.permute.xlu0 %487 }
 0xb96   :  { %v519_v27 = vmul.f32 %v3758_v59, %v488_v22 }
 0xb98   :  { %612 = vbcast.lane.b32.xlu1 %v610_v6, 256 }
 0xc02   :  { %v1077_v7 = vpop.permute.xlu1 %1076 }
 0xc03   :  { %2980 = vmatmul.mubr.msk.f32.vlgmr.msra.gmra.mrb[4].mxu0 %vm660_vm2, %v1077_v7 }
 0xc04   :  { %3153 = vmatpush3.bf16.msra.mxu0 %v3681_v12  ;;  %3001 = vmatprep.mubr.msk.f32.mxu0 %vm3502_vm0, %v3503_v14 }
 0xc05   :  { %3154 = vmatprep.subr.bf16.mxu0 %v3501_v11 }
 0xc06   :  { %v363_v10 = vpop.permute.xlu1 %362 }
 0xc07   :  { %v394_v17 = vmul.f32 %v3752_v54, %v363_v10 }
 0xc08   :  { %3156 = vmatpush3.bf16.msra.mxu0 %v3689_v15 }
 0xc09   :  { %3163 = vmatprep.subr.bf16.mxu0 %v3501_v11  ;;  %v402_v23 = vadd.f32 %v394_v17, %v277_v20 }
 0xc0a   :  { %v613_v26 = vpop.permute.xlu1 %612 }
 0xc0b   :  { %v644_v29 = vmul.f32 %v3761_v63, %v613_v26  ;;  %v527_v31 = vadd.f32 %v519_v27, %v402_v23 }
 0xc0d   :  { %v652_v32 = vadd.f32 %v644_v29, %v527_v31 }
 0xcd6   :  { %v1146_v33 = vpop.f32.mrb[4].mxu0 }
 0xcd7   :  { %v1150_v35 = vadd.f32 %v1146_v33, %v652_v32  ;;  %v2981_v36 = vpop.f32.mrb[5].mxu0 }
 0xcd9   :  { %3287 = vtanh.f32 %v1150_v35  ;;  %v2808_v38 = vmul.f32 -1.442695, %v1150_v35 }
 0xcdb   :  { %3289 = vpow2.f32 %v2808_v38 }
 0xce3   :  { %v3288_v37 = vpop.eup %3287 }
 0xce4   :  { %1160 = vrot.lane.b32.xlu0 %v3288_v37, %s3504_s18 }
 0xce5   :  { %v3290_v39 = vpop.eup %3289 }
 0xce6   :  { %v1154_v43 = vadd.f32 1.0, %v3290_v39 }
 0xce8   :  { %3291 = vrcp.f32 %v1154_v43 }
 0xcf2   :  { %v3292_v44 = vpop.eup %3291 }
 0xcf3   :  { %v1158_v48 = vmul.f32 %v3292_v44, %v1064_v57  ;;  %v367_v57 = vrot.slane %v3732_v42, %v241_v58 }
 0xd56   :  { %v1161_v45 = vpop.permute.xlu0 %1160 }
 0xd57   :  { %v1163_v46 = vmul.f32 %v3292_v44, %v1161_v45 }
 0xd59   :  { %1165 = vrot.lane.b32.xlu1 %v1163_v46, %s3505_s3 }
 0xdcb   :  { %v1166_v50 = vpop.permute.xlu1 %1165 }
 0xdcc   :  { %v1168_v55 = vadd.f32 %v1166_v50, %v1158_v48 }
 0xdce   :  { %3293 = vtanh.f32 %v1168_v55 }
 0xdd8   :  { %v3294_v56 = vpop.eup %3293 }
 0xdd9   :  { %1171 = vrot.lane.b32.xlu0 %v3294_v56, %s3504_s18  ;;  %v248_v56 = vsub.s32 6, %v3705_v18 }
 0xddb   :  { %v249_v58 = vrot.slane %v3730_v41, %v248_v56 }
 0xddd   :  { %244 = vbcast.lane.b32.xlu0 %v242_v60, 256  ;;  %v499_v60 = vrot.slane %v3738_v47, %v248_v56 }
 0xde1   :  { %494 = vbcast.lane.b32.xlu0 %v492_v61, 256 }
 0xe4b   :  { %v1172_v0 = vpop.permute.xlu0 %1171 }
 0xe4c   :  { %v3884_v1 = vmul.f32 %v3292_v44, %v1172_v0 }
 0xe4e   :  { %1180 = vrot.lane.b32.xlu1 %v3884_v1, %s3505_s3 }
 0xe4f   :  { %v3897_v7 = vpop.permute.xlu0 %244 }
 0xe50   :  { %v270_v13 = vmul.f32 %v3746_v51, %v3897_v7 }
 0xe52   :  { %369 = vbcast.lane.b32.xlu1 %v367_v57, 256  ;;  %v278_v20 = vadd.f32 %v3748_v52, %v270_v13  ;;  %v624_v57 = vrot.slane %v3742_v49, %v248_v56 }
 0xe56   :  { %619 = vbcast.lane.b32.xlu1 %v617_v62, 256 }
 0xec0   :  { %v1181_v6 = vpop.permute.xlu1 %1180 }
 0xec1   :  { %2991 = vmatmul.mubr.msk.f32.vlgmr.msra.gmra.mrb[4].mxu1 %vm660_vm2, %v1181_v6 }
 0xec2   :  { %3159 = vmatpush3.bf16.msra.mxu1 %v3681_v12  ;;  %3012 = vmatprep.mubr.msk.f32.mxu1 %vm3502_vm0, %v3503_v14  ;;  %v495_v12 = vpop.permute.xlu0 %494 }
 0xec3   :  { %3160 = vmatprep.subr.bf16.mxu1 %v3501_v11  ;;  %v520_v26 = vmul.f32 %v3758_v59, %v495_v12 }
 0xec4   :  { %v370_v10 = vpop.permute.xlu1 %369 }
 0xec5   :  { %v395_v17 = vmul.f32 %v3752_v54, %v370_v10 }
 0xec6   :  { %3162 = vmatpush3.bf16.msra.mxu1 %v3689_v15 }
 0xec7   :  { %3169 = vmatprep.subr.bf16.mxu1 %v3501_v11  ;;  %v403_v22 = vadd.f32 %v395_v17, %v278_v20 }
 0xec8   :  { %v620_v23 = vpop.permute.xlu1 %619 }
 0xec9   :  { %v645_v27 = vmul.f32 %v3761_v63, %v620_v23  ;;  %v528_v15 = vadd.f32 %v520_v26, %v403_v22 }
 0xecb   :  { %v653_v29 = vadd.f32 %v645_v27, %v528_v15 }
 0xf94   :  { %v1250_v31 = vpop.f32.mrb[4].mxu1 }
 0xf95   :  { %v1254_v32 = vadd.f32 %v1250_v31, %v653_v29  ;;  %v2992_v33 = vpop.f32.mrb[5].mxu1 }
 0xf97   :  { %3295 = vtanh.f32 %v1254_v32  ;;  %v2810_v36 = vmul.f32 -1.442695, %v1254_v32 }
 0xf99   :  { %3297 = vpow2.f32 %v2810_v36 }
 0xfa1   :  { %v3296_v35 = vpop.eup %3295 }
 0xfa2   :  { %1264 = vrot.lane.b32.xlu0 %v3296_v35, %s3504_s18 }
 0xfa3   :  { %v3298_v37 = vpop.eup %3297 }
 0xfa4   :  { %v1258_v38 = vadd.f32 1.0, %v3298_v37 }
 0xfa6   :  { %3299 = vrcp.f32 %v1258_v38 }
 0xfb0   :  { %v3300_v39 = vpop.eup %3299 }
 0xfb1   :  { %v1262_v45 = vmul.f32 %v3300_v39, %v1168_v55  ;;  %v374_v55 = vrot.slane %v3732_v42, %v248_v56 }
0x1014   :  { %v1265_v43 = vpop.permute.xlu0 %1264 }
0x1015   :  { %v1267_v44 = vmul.f32 %v3300_v39, %v1265_v43 }
0x1017   :  { %1269 = vrot.lane.b32.xlu1 %v1267_v44, %s3505_s3 }
0x1089   :  { %v1270_v46 = vpop.permute.xlu1 %1269 }
0x108a   :  { %v1272_v48 = vadd.f32 %v1270_v46, %v1262_v45 }
0x108c   :  { %3301 = vtanh.f32 %v1272_v48 }
0x1096   :  { %v3302_v50 = vpop.eup %3301 }
0x1097   :  { %1275 = vrot.lane.b32.xlu0 %v3302_v50, %s3504_s18 }
0x109b   :  { %251 = vbcast.lane.b32.xlu0 %v249_v58, 256  ;;  %v255_v58 = vsub.s32 7, %v3705_v18  ;;  %v2792_v18 = vsel %vm111_vm3, 1.0, %v3503_v14  ;;  %vm2477_vm3 = vcmask 23552  }
0x109f   :  { %501 = vbcast.lane.b32.xlu0 %v499_v60, 256  ;;  %v256_v60 = vrot.slane %v3730_v41, %v255_v58  ;;  %v2793_v41 = vsel %vm112_vm4, 1.0, %v3503_v14  ;;  %vm2479_vm4 = vcmask 31744  }
0x1109   :  { %v1276_v61 = vpop.permute.xlu0 %1275 }
0x110a   :  { %v3911_v0 = vmul.f32 %v3300_v39, %v1276_v61  ;;  %v506_v61 = vrot.slane %v3738_v47, %v255_v58  ;;  %v631_v47 = vrot.slane %v3742_v49, %v255_v58 }
0x110c   :  { %1284 = vrot.lane.b32.xlu1 %v3911_v0, %s3505_s3 }
0x110d   :  { %v3920_v6 = vpop.permute.xlu0 %251 }
0x110e   :  { %v271_v13 = vmul.f32 %v3746_v51, %v3920_v6 }
0x1110   :  { %376 = vbcast.lane.b32.xlu1 %v374_v55, 256  ;;  %v279_v20 = vadd.f32 %v3748_v52, %v271_v13 }
0x1111   :  { %v502_v12 = vpop.permute.xlu0 %501 }
0x1112   :  { %v521_v26 = vmul.f32 %v3758_v59, %v502_v12 }
0x1114   :  { %626 = vbcast.lane.b32.xlu1 %v624_v57, 256 }
0x117e   :  { %v1285_v62 = vpop.permute.xlu1 %1284 }
0x117f   :  { %3002 = vmatmul.mubr.msk.f32.vlgmr.msra.gmra.mrb[6].mxu0 %vm660_vm2, %v1285_v62  ;;  %v3248_v62 = vpack.i.bf16 %v2793_v41, %v2792_v18 }
0x1180   :  { %3023 = vmatprep.mubr.msk.f32.mxu0 %vm3502_vm0, %v3503_v14 }
0x1182   :  { %v377_v10 = vpop.permute.xlu1 %376 }
0x1183   :  { %v396_v17 = vmul.f32 %v3752_v54, %v377_v10 }
0x1185   :  { %v404_v22 = vadd.f32 %v396_v17, %v279_v20 }
0x1186   :  { %v627_v23 = vpop.permute.xlu1 %626 }
0x1187   :  { %v646_v27 = vmul.f32 %v3761_v63, %v627_v23  ;;  %v529_v15 = vadd.f32 %v521_v26, %v404_v22 }
0x1189   :  { %v654_v29 = vadd.f32 %v646_v27, %v529_v15 }
0x1252   :  { %v1354_v31 = vpop.f32.mrb[6].mxu0 }
0x1253   :  { %v1358_v32 = vadd.f32 %v1354_v31, %v654_v29  ;;  %v3003_v33 = vpop.f32.mrb[7].mxu0 }
0x1255   :  { %3303 = vtanh.f32 %v1358_v32  ;;  %v2812_v36 = vmul.f32 -1.442695, %v1358_v32 }
0x1257   :  { %3305 = vpow2.f32 %v2812_v36 }
0x125f   :  { %v3304_v35 = vpop.eup %3303 }
0x1260   :  { %1368 = vrot.lane.b32.xlu0 %v3304_v35, %s3504_s18 }
0x1261   :  { %v3306_v37 = vpop.eup %3305 }
0x1262   :  { %v1362_v38 = vadd.f32 1.0, %v3306_v37 }
0x1264   :  { %3307 = vrcp.f32 %v1362_v38 }
0x126e   :  { %v3308_v39 = vpop.eup %3307 }
0x126f   :  { %v1366_v45 = vmul.f32 %v3308_v39, %v1272_v48  ;;  %v381_v48 = vrot.slane %v3732_v42, %v255_v58 }
0x12d2   :  { %v1369_v43 = vpop.permute.xlu0 %1368 }
0x12d3   :  { %v1371_v44 = vmul.f32 %v3308_v39, %v1369_v43 }
0x12d5   :  { %1373 = vrot.lane.b32.xlu1 %v1371_v44, %s3505_s3 }
0x1347   :  { %v1374_v46 = vpop.permute.xlu1 %1373 }
0x1348   :  { %v1376_v50 = vadd.f32 %v1374_v46, %v1366_v45 }
0x134a   :  { %3309 = vtanh.f32 %v1376_v50 }
0x1354   :  { %v3310_v56 = vpop.eup %3309 }
0x1355   :  { %1379 = vrot.lane.b32.xlu0 %v3310_v56, %s3504_s18 }
0x1359   :  { %258 = vbcast.lane.b32.xlu0 %v256_v60, 256  ;;  %v2815_v60 = vld [vmem:[%s4245_s9] ss:$0 sm:$0xff] }
0x135d   :  { %508 = vbcast.lane.b32.xlu0 %v506_v61, 256 }
0x13c7   :  { %v1380_v55 = vpop.permute.xlu0 %1379 }
0x13c8   :  { %v3934_v57 = vmul.f32 %v3308_v39, %v1380_v55 }
0x13ca   :  { %1388 = vrot.lane.b32.xlu1 %v3934_v57, %s3505_s3 }
0x13cb   :  { %v3944_v10 = vpop.permute.xlu0 %258 }
0x13cc   :  { %v272_v42 = vmul.f32 %v3746_v51, %v3944_v10 }
0x13ce   :  { %383 = vbcast.lane.b32.xlu1 %v381_v48, 256  ;;  %v280_v17 = vadd.f32 %v3748_v52, %v272_v42  ;;  %v1558_v42 = vld [vmem:[%s4243_s7] sm:$0xff] }
0x13cf   :  { %v509_v4 = vpop.permute.xlu0 %508 }
0x13d0   :  { %v522_v20 = vmul.f32 %v3758_v59, %v509_v4  ;;  %v1559_v4 = vld [vmem:[%s4243_s7 + $0x8] sm:$0xff] }
0x13d2   :  { %633 = vbcast.lane.b32.xlu1 %v631_v47, 256 }
0x13d6   :  { %3249 = vperm.xlu1 %3247, %v3248_v62  }
0x143c   :  { %v1389_v13 = vpop.permute.xlu1 %1388 }
0x143d   :  { %3013 = vmatmul.mubr.msk.f32.vlgmr.msra.gmra.mrb[6].mxu1 %vm660_vm2, %v1389_v13 }
0x143e   :  { %3034 = vmatprep.mubr.msk.f32.mxu1 %vm3502_vm0, %v3503_v14 }
0x1440   :  { %v384_v5 = vpop.permute.xlu1 %383 }
0x1441   :  { %v397_v49 = vmul.f32 %v3752_v54, %v384_v5 }
0x1443   :  { %v405_v12 = vadd.f32 %v397_v49, %v280_v17 }
0x1444   :  { %v634_v22 = vpop.permute.xlu1 %633 }
0x1445   :  { %v647_v23 = vmul.f32 %v3761_v63, %v634_v22  ;;  %v530_v26 = vadd.f32 %v522_v20, %v405_v12 }
0x1447   :  { %v655_v27 = vadd.f32 %v647_v23, %v530_v26  ;;  %v2816_v26 = vld [vmem:[#allocation2] ss:$0 sm:$0xff] }
0x1455   :  { %v3250_v51 = vpop.permute.xlu1 %3249 }
0x1456   :  { %v3252_v15 = vunpack.i.h.bf16 %v3250_v51  ;;  %v3251_v29 = vunpack.i.l.bf16 %v3250_v51 }
0x1458   :  { %v134_v31 = vrot.slane %v3252_v15, %v3708_v21  ;;  %v130_v32 = vrot.slane %v3251_v29, %v3708_v21 }
0x145a   :  { %v3958_v52 = vsel %vm135_vm1, %v134_v31, %v130_v32  ;;  %v2818_v31 = vld [vmem:[%s4242_s6] ss:$0 sm:$0xff]  ;;  %v4019_v32 = vld [vmem:[%s4242_s6 + $0x1] ss:$0 sm:$0xff] }
0x145b   :  { %v139_v54 = vsel %vm138_vm5, %v3958_v52, 0.0 }
0x145c   :  { %140 = vadd.xlane.f32.xlu1 %v139_v54  ;;  %v2817_v54 = vld [vmem:[#allocation9] ss:$0 sm:$0xff] }
0x14e9   :  { %v141_v61 = vpop.xlane.xlu1 %140 }
0x14ea   :  { %v2794_v55 = vadd.f32 -1.0, %v141_v61 }
0x14ec   :  { %vm143_vm6 = vcmp.lt.f32.partialorder %v2794_v55, 0.0 }
0x14ed   :  { %v144_v48 = vsel %vm143_vm6, 7.0, %v2794_v55  ;;  %vm2481_vm6 = vcmask 39936  }
0x14ee   :  { %v3214_v18 = vtrunc.f32 %v144_v48 }
0x14f0   :  { %v3215_v41 = vcvt.f32.s32 %v3214_v18 }
0x14f2   :  { %vm759_vm7 = vcmp.eq.s32.totalorder %v3215_v41, 0  ;;  %vm863_vm8 = vcmp.eq.s32.totalorder %v3215_v41, 1  ;;  %vm967_vm9 = vcmp.eq.s32.totalorder %v3215_v41, 2  ;;  %vm1071_vm10 = vcmp.eq.s32.totalorder %v3215_v41, 3 }
0x14f3   :  { %vm1175_vm11 = vcmp.eq.s32.totalorder %v3215_v41, 4  ;;  %vm1279_vm12 = vcmp.eq.s32.totalorder %v3215_v41, 5  ;;  %vm1383_vm13 = vcmp.eq.s32.totalorder %v3215_v41, 6  ;;  %vm1487_vm14 = vcmp.eq.s32.totalorder %v3215_v41, 7 }
0x1510   :  { %v1458_v59 = vpop.f32.mrb[6].mxu1 }
0x1511   :  { %v1462_v33 = vadd.f32 %v1458_v59, %v655_v27  ;;  %v3014_v63 = vpop.f32.mrb[7].mxu1 }
0x1512   :  { %v1542_v63 = vmul.f32 %v4019_v32, %v3750_v53 }
0x1513   :  { %3311 = vtanh.f32 %v1462_v33  ;;  %v2814_v36 = vmul.f32 -1.442695, %v1462_v33 }
0x1515   :  { %3313 = vpow2.f32 %v2814_v36  ;;  %v1549_v36 = vmul.f32 %v4019_v32, %v3944_v10 }
0x151d   :  { %v3312_v35 = vpop.eup %3311 }
0x151e   :  { %1472 = vrot.lane.b32.xlu0 %v3312_v35, %s3504_s18 }
0x151f   :  { %v3314_v37 = vpop.eup %3313 }
0x1520   :  { %v1466_v38 = vadd.f32 1.0, %v3314_v37 }
0x1522   :  { %3315 = vrcp.f32 %v1466_v38 }
0x152c   :  { %v3316_v39 = vpop.eup %3315 }
0x152d   :  { %v1470_v45 = vmul.f32 %v3316_v39, %v1376_v50  ;;  %v762_v50 = vsel %vm759_vm7, %v3774_v30, 0.0  ;;  %v1560_v30 = vld [vmem:[%s4243_s7 + $0x10] sm:$0xff]  ;;  %vm2483_vm7 = vcmask 48128  }
0x152e   :  { %v866_v47 = vsel %vm863_vm8, %v3803_v19, %v762_v50  ;;  %v1543_v50 = vmul.f32 %v4019_v32, %v3789_v34  ;;  %vm2485_vm8 = vcmask 56320  }
0x152f   :  { %v970_v62 = vsel %vm967_vm9, %v3830_v9, %v866_v47  ;;  %v3983_v9 = vpack.c.bf16 %v1559_v4, %v1558_v42  ;;  %vm2598_vm9 = vcmask 1044480  }
0x1530   :  { %v1074_v13 = vsel %vm1071_vm10, %v3857_v3, %v970_v62  ;;  %v1561_v3 = vld [vmem:[%s4243_s7 + $0x18] sm:$0xff]  ;;  %vm2682_vm10 = vcmask 130048  }
0x1531   :  { %v1178_v19 = vsel %vm1175_vm11, %v3884_v1, %v1074_v13  ;;  %3165 = vmatpush3.bf16.msra.mxu0 %v3983_v9  ;;  %v3989_v5 = vpack.c.bf16 %v1561_v3, %v1560_v30  ;;  %3171 = vmatpush3.bf16.msra.mxu1 %v3983_v9  ;;  %vm2756_vm11 = vcmask 9216  }
0x1532   :  { %v1282_v17 = vsel %vm1279_vm12, %v3911_v0, %v1178_v19  ;;  %3166 = vmatprep.subr.bf16.mxu0 %v3501_v11  ;;  %3172 = vmatprep.subr.bf16.mxu1 %v3501_v11  ;;  %vm2779_vm12 = vcmask 72704  }
0x1533   :  { %v1386_v20 = vsel %vm1383_vm13, %v3934_v57, %v1282_v17  ;;  %vm2781_vm13 = vcmask 113664  }
0x1535   :  { %3168 = vmatpush3.bf16.msra.mxu0 %v3989_v5  ;;  %3174 = vmatpush3.bf16.msra.mxu1 %v3989_v5 }
0x1536   :  { %3175 = vmatprep.subr.bf16.mxu0 %v3501_v11  ;;  %3181 = vmatprep.subr.bf16.mxu1 %v3501_v11 }
0x1538   :  { %3024 = vmatmul.mubr.f32.vlgmr.msra.gmra.mrb[8].mxu0 %v3503_v14 }
0x1539   :  { %3177 = vmatpush3.bf16.msra.mxu0 %v3983_v9  ;;  %3045 = vmatprep.mubr.msk.f32.mxu0 %vm3502_vm0, %v3503_v14 }
0x153a   :  { %3178 = vmatprep.subr.bf16.mxu0 %v3501_v11 }
0x153d   :  { %3180 = vmatpush3.bf16.msra.mxu0 %v3989_v5 }
0x153e   :  { %3187 = vmatprep.subr.bf16.mxu0 %v3501_v11 }
0x1590   :  { %v1473_v43 = vpop.permute.xlu0 %1472 }
0x1591   :  { %v1475_v44 = vmul.f32 %v3316_v39, %v1473_v43 }
0x1593   :  { %1477 = vrot.lane.b32.xlu0 %v1475_v44, %s3505_s3 }
0x1605   :  { %v1478_v46 = vpop.permute.xlu0 %1477 }
0x1606   :  { %v1480_v56 = vadd.f32 %v1478_v46, %v1470_v45 }
0x1608   :  { %3317 = vtanh.f32 %v1480_v56 }
0x160b   :  { %v1630_v15 = vpop.f32.mrb[8].mxu0 }
0x160c   :  { %v3025_v29 = vpop.f32.mrb[9].mxu0 }
0x1612   :  { %v3318_v58 = vpop.eup %3317 }
0x1613   :  { %1483 = vrot.lane.b32.xlu0 %v3318_v58, %s3504_s18 }
0x1617   :  { %1497 = vrot.lane.b32.xlu0 %v2815_v60, %s3506_s1 }
0x1685   :  { %v1484_v1 = vpop.permute.xlu0 %1483 }
0x1686   :  { %v1486_v49 = vmul.f32 %v3316_v39, %v1484_v1 }
0x1688   :  { %v1490_v12 = vsel %vm1487_vm14, %v1486_v49, %v1386_v20  ;;  %vm2783_vm14 = vcmask 123904  }
0x1689   :  { %v1498_v0 = vpop.permute.xlu0 %1497 }
0x168a   :  { %v1500_v22 = vmul.f32 %v1498_v0, %v1490_v12 }
0x168c   :  { %1502 = vrot.lane.b32.xlu0 %v1500_v22, %s3505_s3 }
0x16fe   :  { %v1503_v57 = vpop.permute.xlu0 %1502 }
0x16ff   :  { %v1506_v23 = vsel %vm1505_vm15, %v1503_v57, 0.0 }
0x1700   :  { %1507 = vadd.xlane.f32.xlu0 %v1506_v23 }
0x178d   :  { %v1508_v27 = vpop.xlane.xlu0 %1507 }
0x178e   :  { %v4009_v51 = vadd.f32 %v2816_v26, %v1508_v27  ;;  %v1544_v26 = vmul.f32 %v4019_v32, %v3816_v24 }
0x1790   :  { %1528 = vperm.xlu1 %3247, %v4009_v51  }
0x1794   :  { %3254 = vset.pattern.permute.xlu1 %v3497_v2  ;;  %v1548_v2 = vmul.f32 %v4019_v32, %v3920_v6 }
0x180f   :  { %v1529_v59 = vpop.permute.xlu1 %1528 }
0x1810   :  { %v1535_v33 = vmul.f32 %v2818_v31, %v1529_v59 }
0x1812   :  { %v4023_v35 = vadd.f32 %v2817_v54, %v1535_v33 }
0x1814   :  { %v1550_v37 = vadd.f32 %v1542_v63, %v4023_v35  ;;  %v4031_v38 = vadd.f32 %v1548_v2, %v4023_v35  ;;  %v4034_v39 = vadd.f32 %v1549_v36, %v4023_v35  ;;  %v1551_v47 = vadd.f32 %v1543_v50, %v4023_v35 }
0x1815   :  { %v1552_v27 = vadd.f32 %v1544_v26, %v4023_v35 }
0x1816   :  { %v1634_v43 = vadd.f32 %v1630_v15, %v1550_v37 }
0x1818   :  { %3319 = vtanh.f32 %v1634_v43  ;;  %v2820_v53 = vmul.f32 -1.442695, %v1634_v43 }
0x181a   :  { %3321 = vpow2.f32 %v2820_v53 }
0x1822   :  { %v3320_v44 = vpop.eup %3319 }
0x1823   :  { %1644 = vrot.lane.b32.xlu0 %v3320_v44, %s3504_s18 }
0x1824   :  { %v3322_v45 = vpop.eup %3321 }
0x1825   :  { %v1638_v6 = vadd.f32 1.0, %v3322_v45 }
0x1827   :  { %3323 = vrcp.f32 %v1638_v6 }
0x1831   :  { %v3324_v46 = vpop.eup %3323 }
0x1832   :  { %v1642_v58 = vmul.f32 0.0, %v3324_v46 }
0x1895   :  { %v1645_v10 = vpop.permute.xlu0 %1644 }
0x1896   :  { %v1647_v56 = vmul.f32 %v3324_v46, %v1645_v10  ;;  %v1545_v10 = vmul.f32 %v4019_v32, %v3843_v16 }
0x1898   :  { %1649 = vrot.lane.b32.xlu1 %v1647_v56, %s3505_s3  ;;  %v1553_v56 = vadd.f32 %v1545_v10, %v4023_v35 }
0x190a   :  { %v1650_v60 = vpop.permute.xlu1 %1649 }
0x190b   :  { %v1652_v61 = vadd.f32 %v1650_v60, %v1642_v58 }
0x190d   :  { %3325 = vtanh.f32 %v1652_v61 }
0x1917   :  { %v3326_v55 = vpop.eup %3325 }
0x1918   :  { %1655 = vrot.lane.b32.xlu1 %v3326_v55, %s3504_s18 }
0x198a   :  { %v1656_v48 = vpop.permute.xlu1 %1655 }
0x198b   :  { %v4039_v18 = vmul.f32 %v3324_v46, %v1656_v48 }
0x198d   :  { %1683 = vrot.lane.b32.xlu1 %v4039_v18, %s3505_s3 }
0x19ff   :  { %v1684_v41 = vpop.permute.xlu1 %1683 }
0x1a00   :  { %3035 = vmatmul.mubr.msk.f32.vlgmr.msra.gmra.mrb[8].mxu1 %vm660_vm2, %v1684_v41 }
0x1a01   :  { %3183 = vmatpush3.bf16.msra.mxu1 %v3983_v9  ;;  %3056 = vmatprep.mubr.msk.f32.mxu1 %vm3502_vm0, %v3503_v14 }
0x1a02   :  { %3184 = vmatprep.subr.bf16.mxu1 %v3501_v11 }
0x1a05   :  { %3186 = vmatpush3.bf16.msra.mxu1 %v3989_v5 }
0x1a06   :  { %3193 = vmatprep.subr.bf16.mxu1 %v3501_v11 }
0x1ad3   :  { %v1753_v62 = vpop.f32.mrb[8].mxu1 }
0x1ad4   :  { %v1757_v13 = vadd.f32 %v1753_v62, %v1551_v47  ;;  %v3036_v42 = vpop.f32.mrb[9].mxu1 }
0x1ad6   :  { %3327 = vtanh.f32 %v1757_v13  ;;  %v2824_v30 = vmul.f32 -1.442695, %v1757_v13 }
0x1ad8   :  { %3329 = vpow2.f32 %v2824_v30 }
0x1ae0   :  { %v3328_v4 = vpop.eup %3327 }
0x1ae1   :  { %1767 = vrot.lane.b32.xlu1 %v3328_v4, %s3504_s18 }
0x1ae2   :  { %v3330_v19 = vpop.eup %3329 }
0x1ae3   :  { %v1761_v3 = vadd.f32 1.0, %v3330_v19 }
0x1ae5   :  { %3331 = vrcp.f32 %v1761_v3 }
0x1aef   :  { %v3332_v17 = vpop.eup %3331 }
0x1af0   :  { %v1765_v34 = vmul.f32 %v3332_v17, %v1652_v61 }
0x1b53   :  { %v1768_v1 = vpop.permute.xlu1 %1767 }
0x1b54   :  { %v1770_v49 = vmul.f32 %v3332_v17, %v1768_v1  ;;  %v1546_v1 = vmul.f32 %v4019_v32, %v3870_v8 }
0x1b56   :  { %1772 = vrot.lane.b32.xlu0 %v1770_v49, %s3505_s3  ;;  %v1554_v49 = vadd.f32 %v1546_v1, %v4023_v35 }
0x1bc8   :  { %v1773_v20 = vpop.permute.xlu0 %1772 }
0x1bc9   :  { %v1775_v12 = vadd.f32 %v1773_v20, %v1765_v34 }
0x1bcb   :  { %3333 = vtanh.f32 %v1775_v12 }
0x1bd5   :  { %v3334_v0 = vpop.eup %3333 }
0x1bd6   :  { %1778 = vrot.lane.b32.xlu1 %v3334_v0, %s3504_s18 }
0x1c48   :  { %v1779_v22 = vpop.permute.xlu1 %1778 }
0x1c49   :  { %v4056_v57 = vmul.f32 %v3332_v17, %v1779_v22 }
0x1c4b   :  { %1792 = vrot.lane.b32.xlu0 %v4056_v57, %s3505_s3 }
0x1cbd   :  { %v1793_v23 = vpop.permute.xlu0 %1792 }
0x1cbe   :  { %3046 = vmatmul.mubr.msk.f32.vlgmr.msra.gmra.mrb[10].mxu0 %vm660_vm2, %v1793_v23 }
0x1cbf   :  { %3189 = vmatpush3.bf16.msra.mxu0 %v3983_v9  ;;  %3067 = vmatprep.mubr.msk.f32.mxu0 %vm3502_vm0, %v3503_v14 }
0x1cc0   :  { %3190 = vmatprep.subr.bf16.mxu0 %v3501_v11 }
0x1cc3   :  { %3192 = vmatpush3.bf16.msra.mxu0 %v3989_v5 }
0x1cc4   :  { %3199 = vmatprep.subr.bf16.mxu0 %v3501_v11 }
0x1d91   :  { %v1862_v15 = vpop.f32.mrb[10].mxu0 }
0x1d92   :  { %v1866_v29 = vadd.f32 %v1862_v15, %v1552_v27  ;;  %v3047_v31 = vpop.f32.mrb[11].mxu0 }
0x1d94   :  { %3335 = vtanh.f32 %v1866_v29  ;;  %v2826_v59 = vmul.f32 -1.442695, %v1866_v29 }
0x1d96   :  { %3337 = vpow2.f32 %v2826_v59 }
0x1d9e   :  { %v3336_v54 = vpop.eup %3335 }
0x1d9f   :  { %1876 = vrot.lane.b32.xlu1 %v3336_v54, %s3504_s18 }
0x1da0   :  { %v3338_v33 = vpop.eup %3337 }
0x1da1   :  { %v1870_v63 = vadd.f32 1.0, %v3338_v33 }
0x1da3   :  { %3339 = vrcp.f32 %v1870_v63 }
0x1dad   :  { %v3340_v2 = vpop.eup %3339 }
0x1dae   :  { %v1874_v24 = vmul.f32 %v3340_v2, %v1775_v12 }
0x1e11   :  { %v1877_v36 = vpop.permute.xlu1 %1876 }
0x1e12   :  { %v1879_v37 = vmul.f32 %v3340_v2, %v1877_v36  ;;  %v1547_v36 = vmul.f32 %v4019_v32, %v3897_v7 }
0x1e14   :  { %1881 = vrot.lane.b32.xlu0 %v1879_v37, %s3505_s3  ;;  %v1555_v37 = vadd.f32 %v1547_v36, %v4023_v35 }
0x1e86   :  { %v1882_v43 = vpop.permute.xlu0 %1881 }
0x1e87   :  { %v1884_v44 = vadd.f32 %v1882_v43, %v1874_v24 }
0x1e89   :  { %3341 = vtanh.f32 %v1884_v44 }
0x1e93   :  { %v3342_v53 = vpop.eup %3341 }
0x1e94   :  { %1887 = vrot.lane.b32.xlu1 %v3342_v53, %s3504_s18 }
0x1f06   :  { %v1888_v45 = vpop.permute.xlu1 %1887 }
0x1f07   :  { %v4073_v6 = vmul.f32 %v3340_v2, %v1888_v45 }
0x1f09   :  { %1901 = vrot.lane.b32.xlu0 %v4073_v6, %s3505_s3 }
0x1f7b   :  { %v1902_v46 = vpop.permute.xlu0 %1901 }
0x1f7c   :  { %3057 = vmatmul.mubr.msk.f32.vlgmr.msra.gmra.mrb[10].mxu1 %vm660_vm2, %v1902_v46 }
0x1f7d   :  { %3195 = vmatpush3.bf16.msra.mxu1 %v3983_v9  ;;  %3078 = vmatprep.mubr.msk.f32.mxu1 %vm3502_vm0, %v3503_v14 }
0x1f7e   :  { %3196 = vmatprep.subr.bf16.mxu1 %v3501_v11 }
0x1f81   :  { %3198 = vmatpush3.bf16.msra.mxu1 %v3989_v5 }
0x1f82   :  { %3205 = vmatprep.subr.bf16.mxu1 %v3501_v11 }
0x204f   :  { %v1971_v58 = vpop.f32.mrb[10].mxu1 }
0x2050   :  { %v1975_v60 = vadd.f32 %v1971_v58, %v1553_v56  ;;  %v3058_v61 = vpop.f32.mrb[11].mxu1 }
0x2052   :  { %3343 = vtanh.f32 %v1975_v60  ;;  %v2828_v48 = vmul.f32 -1.442695, %v1975_v60 }
0x2054   :  { %3345 = vpow2.f32 %v2828_v48 }
0x205c   :  { %v3344_v55 = vpop.eup %3343 }
0x205d   :  { %1985 = vrot.lane.b32.xlu1 %v3344_v55, %s3504_s18 }
0x205e   :  { %v3346_v41 = vpop.eup %3345 }
0x205f   :  { %v1979_v50 = vadd.f32 1.0, %v3346_v41 }
0x2061   :  { %3347 = vrcp.f32 %v1979_v50 }
0x206b   :  { %v3348_v47 = vpop.eup %3347 }
0x206c   :  { %v1983_v16 = vmul.f32 %v3348_v47, %v1884_v44 }
0x20cf   :  { %v1986_v62 = vpop.permute.xlu1 %1985 }
0x20d0   :  { %v1988_v13 = vmul.f32 %v3348_v47, %v1986_v62 }
0x20d2   :  { %1990 = vrot.lane.b32.xlu0 %v1988_v13, %s3505_s3 }
0x2144   :  { %v1991_v42 = vpop.permute.xlu0 %1990 }
0x2145   :  { %v1993_v4 = vadd.f32 %v1991_v42, %v1983_v16 }
0x2147   :  { %3349 = vtanh.f32 %v1993_v4 }
0x2151   :  { %v3350_v30 = vpop.eup %3349 }
0x2152   :  { %1996 = vrot.lane.b32.xlu1 %v3350_v30, %s3504_s18 }
0x21c4   :  { %v1997_v19 = vpop.permute.xlu1 %1996 }
0x21c5   :  { %v4090_v3 = vmul.f32 %v3348_v47, %v1997_v19 }
0x21c7   :  { %2010 = vrot.lane.b32.xlu0 %v4090_v3, %s3505_s3 }
0x2239   :  { %v2011_v17 = vpop.permute.xlu0 %2010 }
0x223a   :  { %3068 = vmatmul.mubr.msk.f32.vlgmr.msra.gmra.mrb[12].mxu0 %vm660_vm2, %v2011_v17 }
0x223b   :  { %3201 = vmatpush3.bf16.msra.mxu0 %v3983_v9  ;;  %3089 = vmatprep.mubr.msk.f32.mxu0 %vm3502_vm0, %v3503_v14 }
0x223c   :  { %3202 = vmatprep.subr.bf16.mxu0 %v3501_v11 }
0x223f   :  { %3204 = vmatpush3.bf16.msra.mxu0 %v3989_v5 }
0x2240   :  { %3103 = vmatprep.subr.mxu0 %v3503_v14 }
0x230d   :  { %v2080_v34 = vpop.f32.mrb[12].mxu0 }
0x230e   :  { %v2084_v20 = vadd.f32 %v2080_v34, %v1554_v49  ;;  %v3069_v12 = vpop.f32.mrb[13].mxu0 }
0x2310   :  { %3351 = vtanh.f32 %v2084_v20  ;;  %v2830_v22 = vmul.f32 -1.442695, %v2084_v20 }
0x2312   :  { %3353 = vpow2.f32 %v2830_v22 }
0x231a   :  { %v3352_v0 = vpop.eup %3351 }
0x231b   :  { %2094 = vrot.lane.b32.xlu1 %v3352_v0, %s3504_s18 }
0x231c   :  { %v3354_v23 = vpop.eup %3353 }
0x231d   :  { %v2088_v26 = vadd.f32 1.0, %v3354_v23  ;;  %v2821_v23 = vld [vmem:[%s4247_s11] ss:$0 sm:$0xff]  ;;  %s3507_s11 = smov 2  }
0x231f   :  { %3355 = vrcp.f32 %v2088_v26 }
0x2329   :  { %v3356_v27 = vpop.eup %3355 }
0x232a   :  { %v2092_v8 = vmul.f32 %v3356_v27, %v1993_v4 }
0x238d   :  { %v2095_v15 = vpop.permute.xlu1 %2094 }
0x238e   :  { %v2097_v29 = vmul.f32 %v3356_v27, %v2095_v15 }
0x2390   :  { %2099 = vrot.lane.b32.xlu0 %v2097_v29, %s3505_s3 }
0x2402   :  { %v2100_v31 = vpop.permute.xlu0 %2099 }
0x2403   :  { %v2102_v54 = vadd.f32 %v2100_v31, %v2092_v8 }
0x2405   :  { %3357 = vtanh.f32 %v2102_v54 }
0x240f   :  { %v3358_v59 = vpop.eup %3357 }
0x2410   :  { %2105 = vrot.lane.b32.xlu1 %v3358_v59, %s3504_s18 }
0x2482   :  { %v2106_v33 = vpop.permute.xlu1 %2105 }
0x2483   :  { %v4107_v63 = vmul.f32 %v3356_v27, %v2106_v33 }
0x2485   :  { %2119 = vrot.lane.b32.xlu0 %v4107_v63, %s3505_s3 }
0x24f7   :  { %v2120_v2 = vpop.permute.xlu0 %2119 }
0x24f8   :  { %3079 = vmatmul.mubr.msk.f32.vlgmr.msra.gmra.mrb[12].mxu1 %vm660_vm2, %v2120_v2 }
0x24f9   :  { %3207 = vmatpush3.bf16.msra.mxu1 %v3983_v9  ;;  %3100 = vmatprep.mubr.msk.f32.mxu1 %vm3502_vm0, %v3503_v14 }
0x24fa   :  { %3208 = vmatprep.subr.bf16.mxu1 %v3501_v11 }
0x24fd   :  { %3210 = vmatpush3.bf16.msra.mxu1 %v3989_v5 }
0x24fe   :  { %3211 = vmatprep.subr.bf16.mxu1 %v3501_v11 }
0x25cb   :  { %v2189_v24 = vpop.f32.mrb[12].mxu1 }
0x25cc   :  { %v2193_v43 = vadd.f32 %v2189_v24, %v1555_v37  ;;  %v3080_v44 = vpop.f32.mrb[13].mxu1 }
0x25ce   :  { %3359 = vtanh.f32 %v2193_v43  ;;  %v2832_v9 = vmul.f32 -1.442695, %v2193_v43 }
0x25d0   :  { %3361 = vpow2.f32 %v2832_v9 }
0x25d8   :  { %v3360_v53 = vpop.eup %3359 }
0x25d9   :  { %2203 = vrot.lane.b32.xlu1 %v3360_v53, %s3504_s18 }
0x25da   :  { %v3362_v45 = vpop.eup %3361 }
0x25db   :  { %v2197_v46 = vadd.f32 1.0, %v3362_v45 }
0x25dd   :  { %3363 = vrcp.f32 %v2197_v46 }
0x25e7   :  { %v3364_v5 = vpop.eup %3363 }
0x25e8   :  { %v2201_v7 = vmul.f32 %v3364_v5, %v2102_v54 }
0x264b   :  { %v2204_v10 = vpop.permute.xlu1 %2203 }
0x264c   :  { %v2206_v11 = vmul.f32 %v3364_v5, %v2204_v10 }
0x264e   :  { %2208 = vrot.lane.b32.xlu0 %v2206_v11, %s3505_s3 }
0x26c0   :  { %v2209_v32 = vpop.permute.xlu0 %2208 }
0x26c1   :  { %v2211_v35 = vadd.f32 %v2209_v32, %v2201_v7 }
0x26c3   :  { %3365 = vtanh.f32 %v2211_v35 }
0x26cd   :  { %v3366_v56 = vpop.eup %3365 }
0x26ce   :  { %2214 = vrot.lane.b32.xlu1 %v3366_v56, %s3504_s18 }
0x2740   :  { %v2215_v58 = vpop.permute.xlu1 %2214 }
0x2741   :  { %v2217_v60 = vmul.f32 %v3364_v5, %v2215_v58 }
0x2743   :  { %2228 = vrot.lane.b32.xlu0 %v2217_v60, %s3505_s3 }
0x27b5   :  { %v2229_v61 = vpop.permute.xlu0 %2228 }
0x27b6   :  { %3090 = vmatmul.mubr.msk.f32.vlgmr.msra.gmra.mrb[14].mxu0 %vm660_vm2, %v2229_v61 }
0x27b7   :  { %3105 = vmatprep.mubr.msk.f32.mxu0 %vm3502_vm0, %v3503_v14 }
0x2889   :  { %v2298_v55 = vpop.f32.mrb[14].mxu0 }
0x288a   :  { %v2302_v48 = vadd.f32 %v2298_v55, %v4031_v38  ;;  %v3091_v41 = vpop.f32.mrb[15].mxu0 }
0x288c   :  { %3367 = vtanh.f32 %v2302_v48  ;;  %v2834_v47 = vmul.f32 -1.442695, %v2302_v48  ;;  %v2822_v48 = vld [vmem:[#allocation3] ss:$0 sm:$0xff] }
0x288e   :  { %3369 = vpow2.f32 %v2834_v47 }
0x2896   :  { %v3368_v50 = vpop.eup %3367 }
0x2897   :  { %2312 = vrot.lane.b32.xlu1 %v3368_v50, %s3504_s18 }
0x2898   :  { %v3370_v62 = vpop.eup %3369 }
0x2899   :  { %v2306_v13 = vadd.f32 1.0, %v3370_v62 }
0x289b   :  { %3371 = vrcp.f32 %v2306_v13 }
0x28a5   :  { %v3372_v16 = vpop.eup %3371 }
0x28a6   :  { %v2310_v30 = vmul.f32 %v3372_v16, %v2211_v35 }
0x2909   :  { %v2313_v42 = vpop.permute.xlu1 %2312 }
0x290a   :  { %v2315_v4 = vmul.f32 %v3372_v16, %v2313_v42 }
0x290c   :  { %2317 = vrot.lane.b32.xlu0 %v2315_v4, %s3505_s3 }
0x297e   :  { %v2318_v19 = vpop.permute.xlu0 %2317 }
0x297f   :  { %v2320_v17 = vadd.f32 %v2318_v19, %v2310_v30 }
0x2981   :  { %3373 = vtanh.f32 %v2320_v17 }
0x298b   :  { %v3374_v38 = vpop.eup %3373 }
0x298c   :  { %2323 = vrot.lane.b32.xlu1 %v3374_v38, %s3504_s18 }
0x29fe   :  { %v2324_v1 = vpop.permute.xlu1 %2323 }
0x29ff   :  { %v2326_v49 = vmul.f32 %v3372_v16, %v2324_v1 }
0x2a01   :  { %2337 = vrot.lane.b32.xlu0 %v2326_v49, %s3505_s3 }
0x2a73   :  { %v2338_v34 = vpop.permute.xlu0 %2337 }
0x2a74   :  { %3101 = vmatmul.mubr.msk.f32.vlgmr.msra.gmra.mrb[14].mxu1 %vm660_vm2, %v2338_v34  ;;  %vm2475_vm2 = vcmask 15360  }
0x2a75   :  { %3112 = vmatprep.mubr.msk.f32.mxu1 %vm3502_vm0, %v3503_v14  ;;  %vm2473_vm0 = vcmask 7168  }
0x2b47   :  { %v2407_v20 = vpop.f32.mrb[14].mxu1 }
0x2b48   :  { %v2411_v12 = vadd.f32 %v2407_v20, %v4034_v39  ;;  %v3102_v0 = vpop.f32.mrb[15].mxu1 }
0x2b4a   :  { %3375 = vtanh.f32 %v2411_v12  ;;  %v2836_v26 = vmul.f32 -1.442695, %v2411_v12 }
0x2b4c   :  { %3377 = vpow2.f32 %v2836_v26 }
0x2b54   :  { %v3376_v22 = vpop.eup %3375 }
0x2b55   :  { %2421 = vrot.lane.b32.xlu1 %v3376_v22, %s3504_s18 }
0x2b56   :  { %v3378_v27 = vpop.eup %3377 }
0x2b57   :  { %v2415_v15 = vadd.f32 1.0, %v3378_v27 }
0x2b59   :  { %1664 = vrot.lane.b32.xlu1 %v2821_v23, %s3506_s1  ;;  %3379 = vrcp.f32 %v2415_v15 }
0x2b63   :  { %v3380_v14 = vpop.eup %3379 }
0x2b64   :  { %v2419_v33 = vmul.f32 %v3380_v14, %v2320_v17 }
0x2bc7   :  { %v2422_v29 = vpop.permute.xlu1 %2421 }
0x2bc8   :  { %v2424_v8 = vmul.f32 %v3380_v14, %v2422_v29 }
0x2bca   :  { %2426 = vrot.lane.b32.xlu0 %v2424_v8, %s3505_s3 }
0x2bcb   :  { %v1665_v39 = vpop.permute.xlu1 %1664 }
0x2bcc   :  { %v1782_v31 = vmul.f32 %v4056_v57, %v1665_v39  ;;  %v2000_v54 = vmul.f32 %v4090_v3, %v1665_v39  ;;  %v2218_v59 = vmul.f32 %v2217_v60, %v1665_v39  ;;  %v1891_v24 = vmul.f32 %v4073_v6, %v1665_v39 }
0x2bcd   :  { %v2109_v57 = vmul.f32 %v4107_v63, %v1665_v39  ;;  %v2327_v3 = vmul.f32 %v2326_v49, %v1665_v39  ;;  %v1667_v43 = vmul.f32 %v1665_v39, %v4039_v18 }
0x2bce   :  { %1784 = vrot.lane.b32.xlu1 %v1782_v31, %s3505_s3 }
0x2bd2   :  { %2002 = vrot.lane.b32.xlu1 %v2000_v54, %s3505_s3 }
0x2bd6   :  { %2220 = vrot.lane.b32.xlu1 %v2218_v59, %s3505_s3 }
0x2c3c   :  { %v2427_v2 = vpop.permute.xlu0 %2426 }
0x2c3d   :  { %v2429_v36 = vadd.f32 %v2427_v2, %v2419_v33 }
0x2c3f   :  { %3381 = vtanh.f32 %v2429_v36  ;;  %v3395_v36 = vld [vmem:[%s4257_s0 + $0x8] sm:$0xff] }
0x2c40   :  { %v1785_v44 = vpop.permute.xlu1 %1784 }
0x2c41   :  { %v1787_v7 = vsel %vm1505_vm15, %v1785_v44, 0.0 }
0x2c44   :  { %v2003_v46 = vpop.permute.xlu1 %2002 }
0x2c45   :  { %v2005_v63 = vsel %vm1505_vm15, %v2003_v46, 0.0 }
0x2c48   :  { %v2221_v10 = vpop.permute.xlu1 %2220 }
0x2c49   :  { %v3382_v37 = vpop.eup %3381  ;;  %v2223_v11 = vsel %vm1505_vm15, %v2221_v10, 0.0 }
0x2c4a   :  { %2432 = vrot.lane.b32.xlu0 %v3382_v37, %s3504_s18  ;;  %s3512_s18 = smov 6   ;;  %v2494_v37 = vmul.f32 %v3395_v36, %v3395_v36 }
0x2c4e   :  { %1893 = vrot.lane.b32.xlu0 %v1891_v24, %s3505_s3  ;;  %v3396_v24 = vld [vmem:[%s4257_s0] sm:$0xff] }
0x2c52   :  { %2111 = vrot.lane.b32.xlu0 %v2109_v57, %s3505_s3  ;;  %v2493_v57 = vmul.f32 %v3396_v24, %v3396_v24 }
0x2c56   :  { %2329 = vrot.lane.b32.xlu0 %v2327_v3, %s3505_s3 }
0x2c5a   :  { %1669 = vrot.lane.b32.xlu0 %v1667_v43, %s3505_s3 }
0x2cbc   :  { %v2433_v53 = vpop.permute.xlu0 %2432 }
0x2cbd   :  { %v2435_v9 = vmul.f32 %v3380_v14, %v2433_v53 }
0x2cbf   :  { %v2436_v45 = vmul.f32 %v2435_v9, %v1665_v39 }
0x2cc0   :  { %v1894_v5 = vpop.permute.xlu0 %1893 }
0x2cc1   :  { %v1896_v6 = vsel %vm1505_vm15, %v1894_v5, 0.0  ;;  %2438 = vrot.lane.b32.xlu1 %v2436_v45, %s3505_s3  ;;  %s3513_s3 = smov 7  }
0x2cc2   :  { %1897 = vadd.xlane.f32.xlu0 %v1896_v6 }
0x2cc4   :  { %v2112_v18 = vpop.permute.xlu0 %2111 }
0x2cc5   :  { %v2114_v35 = vsel %vm1505_vm15, %v2112_v18, 0.0 }
0x2cc6   :  { %2006 = vadd.xlane.f32.xlu0 %v2005_v63 }
0x2cc8   :  { %v2330_v32 = vpop.permute.xlu0 %2329 }
0x2cc9   :  { %v2332_v56 = vsel %vm1505_vm15, %v2330_v32, 0.0 }
0x2cca   :  { %2224 = vadd.xlane.f32.xlu0 %v2223_v11 }
0x2ccc   :  { %v1670_v58 = vpop.permute.xlu0 %1669 }
0x2ccd   :  { %v1672_v60 = vsel %vm1505_vm15, %v1670_v58, 0.0 }
0x2ce5   :  { %1788 = vadd.xlane.f32.xlu1 %v1787_v7  ;;  %v2573_v7 = vld [vmem:[%s4258_s20] sm:$0x3] }
0x2ce9   :  { %2115 = vadd.xlane.f32.xlu1 %v2114_v35 }
0x2ced   :  { %2333 = vadd.xlane.f32.xlu1 %v2332_v56 }
0x2cf1   :  { %1673 = vadd.xlane.f32.xlu1 %v1672_v60 }
0x2d33   :  { %v2439_v61 = vpop.permute.xlu1 %2438 }
0x2d34   :  { %v2441_v55 = vsel %vm1505_vm15, %v2439_v61, 0.0  ;;  %v2574_v61 = vld [vmem:[%s4238_s2] sm:$0x3] }
0x2d35   :  { %2442 = vadd.xlane.f32.xlu0 %v2441_v55  ;;  %v2587_v55 = vld [vmem:[%s4248_s13] sm:$0x1f] }
0x2d36   :  { %3104 = vmatpush3.msk.msra.mxu0 %vm2598_vm9, %v2587_v55 }
0x2d4f   :  { %v1898_v41 = vpop.xlane.xlu0 %1897 }
0x2d50   :  { %v1899_v50 = vadd.f32 %v2822_v48, %v1898_v41 }
0x2d52   :  { %2450 = vrot.lane.b32.xlu1 %v1899_v50, %s3507_s11 }
0x2d53   :  { %v2007_v47 = vpop.xlane.xlu0 %2006 }
0x2d54   :  { %v2008_v62 = vadd.f32 %v2822_v48, %v2007_v47 }
0x2d56   :  { %2454 = vrot.lane.b32.xlu1 %v2008_v62, %s3508_s25 }
0x2d57   :  { %v2225_v13 = vpop.xlane.xlu0 %2224 }
0x2d58   :  { %v2226_v16 = vadd.f32 %v2822_v48, %v2225_v13 }
0x2d5a   :  { %2462 = vrot.lane.b32.xlu1 %v2226_v16, %s3509_s27 }
0x2d72   :  { %v1789_v42 = vpop.xlane.xlu1 %1788 }
0x2d73   :  { %v1790_v4 = vadd.f32 %v2822_v48, %v1789_v42 }
0x2d75   :  { %2446 = vrot.lane.b32.xlu0 %v1790_v4, %s3510_s8 }
0x2d76   :  { %v2116_v30 = vpop.xlane.xlu1 %2115 }
0x2d77   :  { %v2117_v19 = vadd.f32 %v2822_v48, %v2116_v30 }
0x2d79   :  { %2458 = vrot.lane.b32.xlu0 %v2117_v19, %s3511_s30 }
0x2d7a   :  { %v2334_v17 = vpop.xlane.xlu1 %2333 }
0x2d7b   :  { %v2335_v38 = vadd.f32 %v2822_v48, %v2334_v17 }
0x2d7d   :  { %2466 = vrot.lane.b32.xlu0 %v2335_v38, %s3512_s18 }
0x2d7e   :  { %v1674_v34 = vpop.xlane.xlu1 %1673 }
0x2d7f   :  { %v1681_v0 = vadd.f32 %v2822_v48, %v1674_v34 }
0x2dc2   :  { %v2443_v1 = vpop.xlane.xlu0 %2442 }
0x2dc3   :  { %v2444_v49 = vadd.f32 %v2822_v48, %v2443_v1 }
0x2dc4   :  { %v2451_v20 = vpop.permute.xlu1 %2450 }
0x2dc5   :  { %2470 = vrot.lane.b32.xlu1 %v2444_v49, %s3513_s3 }
0x2dc8   :  { %v2455_v23 = vpop.permute.xlu1 %2454 }
0x2dcc   :  { %v2463_v14 = vpop.permute.xlu1 %2462 }
0x2de7   :  { %v2447_v12 = vpop.permute.xlu0 %2446 }
0x2de8   :  { %v2474_v22 = vsel %vm2473_vm0, %v1681_v0, %v2447_v12 }
0x2de9   :  { %v2476_v26 = vsel %vm2475_vm2, %v2474_v22, %v2451_v20 }
0x2dea   :  { %v2478_v15 = vsel %vm2477_vm3, %v2476_v26, %v2455_v23  ;;  %v2673_v23 = vld [vmem:[%s4250_s15] sm:$0xff]  ;;  %v2674_v26 = vld [vmem:[%s4250_s15 + $0x8] sm:$0xff]  ;;  %s3514_s15 = smov 9  }
0x2deb   :  { %v2459_v27 = vpop.permute.xlu0 %2458 }
0x2dec   :  { %v2480_v29 = vsel %vm2479_vm4, %v2478_v15, %v2459_v27  ;;  %v3212_v27 = vpack.c.bf16 %v2674_v26, %v2673_v23  ;;  %v2837_v15 = vld [vmem:[%s4249_s14] ss:$0 sm:$0xff]  ;;  %s3515_s14 = smov 14  }
0x2ded   :  { %v2482_v39 = vsel %vm2481_vm6, %v2480_v29, %v2463_v14 }
0x2dee   :  { %3213 = vmatpush3.bf16.msra.mxu1 %v3212_v27 }
0x2def   :  { %v2467_v8 = vpop.permute.xlu0 %2466 }
0x2df0   :  { %v2484_v31 = vsel %vm2483_vm7, %v2482_v39, %v2467_v8 }
0x2e37   :  { %v2471_v54 = vpop.permute.xlu1 %2470 }
0x2e38   :  { %v4173_v59 = vsel %vm2485_vm8, %v2484_v31, %v2471_v54  ;;  %v2840_v31 = vld [vmem:[%s4251_s16] ss:$0 sm:$0xff] }
0x2e39   :  { %v2542_v33 = vrot.slane %v4173_v59, %v3768_v25  ;;  %v2535_v2 = vrot.slane %v4173_v59, %v3728_v40  ;;  %v2487_v40 = vsub.f32 %v4173_v59, %v3715_v28  ;;  %v2516_v5 = vmul.f32 %v4173_v59, %v4173_v59 }
0x2e3b   :  { %2544 = vbcast.lane.b32.xlu1 %v2542_v33, 256  ;;  %2537 = vbcast.lane.b32.xlu0 %v2535_v2, 256  ;;  %v2488_v6 = vmul.f32 %v2487_v40, %v2487_v40  ;;  %v2517_v63 = vsel %vm138_vm5, %v2516_v5, 0.0 }
0x2e3d   :  { %v2489_v10 = vmul.f32 %v2488_v6, %v3958_v52 }
0x2e3f   :  { %2501 = vperm.xlu1 %3254, %v2494_v37   ;;  %2498 = vperm.xlu0 %3253, %v2493_v57   ;;  %v2490_v28 = vsel %vm138_vm5, %v2489_v10, 0.0 }
0x2ead   :  { %v2545_v3 = vpop.permute.xlu1 %2544  ;;  %v2538_v43 = vpop.permute.xlu0 %2537 }
0x2eae   :  { %v2549_v25 = vmul.f32 %v3395_v36, %v2545_v3  ;;  %v2548_v44 = vmul.f32 %v3396_v24, %v2538_v43 }
0x2eb0   :  { %2556 = vperm.xlu0 %3253, %v2549_v25   ;;  %2553 = vperm.xlu1 %3254, %v2548_v44  }
0x2ebe   :  { %v2502_v53 = vpop.permute.xlu1 %2501  ;;  %v2499_v9 = vpop.permute.xlu0 %2498 }
0x2ebf   :  { %v2510_v45 = vrot.slane %v2502_v53, %v3708_v21  ;;  %v2506_v46 = vrot.slane %v2499_v9, %v3708_v21 }
0x2ec1   :  { %v2511_v11 = vsel %vm135_vm1, %v2510_v45, %v2506_v46 }
0x2ec2   :  { %v2513_v18 = vsel %vm138_vm5, %v2511_v11, 0.0 }
0x2ecf   :  { %2518 = vadd.xlane.f32.xlu0 %v2517_v63 }
0x2ed3   :  { %2491 = vadd.xlane.f32.xlu0 %v2490_v28 }
0x2ed4   :  { %2514 = vadd.xlane.f32.xlu1 %v2513_v18 }
0x2ee9   :  { %2576 = vrot.lane.b32.xlu0 %v2573_v7, %s3508_s25 }
0x2f2f   :  { %v2554_v32 = vpop.permute.xlu1 %2553  ;;  %v2557_v35 = vpop.permute.xlu0 %2556 }
0x2f30   :  { %v2561_v56 = vrot.slane %v2554_v32, %v3708_v21  ;;  %v2565_v52 = vrot.slane %v2557_v35, %v3708_v21 }
0x2f32   :  { %v2566_v58 = vsel %vm135_vm1, %v2565_v52, %v2561_v56 }
0x2f33   :  { %v2568_v60 = vsel %vm138_vm5, %v2566_v58, 0.0 }
0x2f34   :  { %2569 = vadd.xlane.f32.xlu1 %v2568_v60 }
0x2f45   :  { %2580 = vrot.lane.b32.xlu1 %v2574_v61, %s3511_s30 }
0x2f5c   :  { %v2519_v41 = vpop.xlane.xlu0 %2518 }
0x2f60   :  { %v2492_v30 = vpop.xlane.xlu0 %2491 }
0x2f61   :  { %v2515_v48 = vpop.xlane.xlu1 %2514 }
0x2f62   :  { %v2522_v21 = vmul.f32 %v2519_v41, %v2515_v48 }
0x2f64   :  { %3383 = vrsqrt.f32 %v2522_v21  ;;  %vm2525_vm1 = vcmp.eq.f32.partialorder %v2522_v21, inf  ;;  %v2528_v13 = vand.u32 2147483648, %v2522_v21  ;;  %vm2527_vm5 = vcmp.eq.f32.partialorder %v2522_v21, 0.0  ;;  %v2577_v49 = vpop.permute.xlu0 %2576 }
0x2f65   :  { %3385 = vrsqrt.f32 %v2515_v48 }
0x2f6e   :  { %v3384_v50 = vpop.eup %3383 }
0x2f6f   :  { %v2524_v47 = vmul.f32 %v3384_v50, %v2522_v21  ;;  %v3386_v4 = vpop.eup %3385 }
0x2f70   :  { %v2521_v19 = vmul.f32 %v3386_v4, %v2492_v30 }
0x2f71   :  { %v2526_v62 = vsel %vm2525_vm1, %v2522_v21, %v2524_v47 }
0x2f72   :  { %v2529_v16 = vsel %vm2527_vm5, %v2528_v13, %v2526_v62  ;;  %v2583_v34 = vsel %vm2473_vm0, %v4009_v51, %v2521_v19 }
0x2f73   :  { %v2530_v42 = vmax.f32 %v2529_v16, 1e-08 }
0x2f75   :  { %3387 = vrcp.f32 %v2530_v42 }
0x2f7f   :  { %v3388_v17 = vpop.eup %3387 }
0x2fc1   :  { %v2570_v38 = vpop.xlane.xlu1 %2569 }
0x2fc2   :  { %v2572_v1 = vmul.f32 %v3388_v17, %v2570_v38 }
0x2fc4   :  { %v2584_v20 = vsel %vm2475_vm2, %v2583_v34, %v2572_v1 }
0x2fc5   :  { %v2585_v12 = vsel %vm2477_vm3, %v2584_v20, %v2577_v49  ;;  %v2581_v0 = vpop.permute.xlu1 %2580 }
0x2fc6   :  { %v2586_v22 = vsel %vm2479_vm4, %v2585_v12, %v2581_v0 }
0x2fc7   :  { %3106 = vmatmul.mubr.msk.f32.vlgmr.msra.gmra.mrb[16].mxu0 %vm2481_vm6, %v2586_v22 }
0x309a   :  { %v2668_v14 = vpop.f32.mrb[16].mxu0 }
0x309b   :  { %v2669_v29 = vadd.f32 %v2837_v15, %v2668_v14  ;;  %v3107_v8 = vpop.f32.mrb[17].mxu0 }
0x309d   :  { %3389 = vtanh.f32 %v2669_v29 }
0x30a7   :  { %v3390_v39 = vpop.eup %3389 }
0x30a8   :  { %3113 = vmatmul.mubr.msk.f32.vlgmr.msra.gmra.mrb[16].mxu1 %vm2682_vm10, %v3390_v39 }
0x317b   :  { %v2752_v54 = vpop.f32.mrb[16].mxu1 }
0x317c   :  { %v2753_v33 = vadd.f32 %v2840_v31, %v2752_v54  ;;  %v3114_v2 = vpop.f32.mrb[17].mxu1 }
0x317e   :  { %v2757_v36 = vsel %vm2756_vm11, %v2753_v33, -inf }
0x317f   :  { %2758 = vmax.xlane.f32.xlu1 %v2757_v36 }
0x3190   :  { %2771 = vrot.lane.b32.xlu1 %v2586_v22, %s3514_s15 }
0x320c   :  { %v2759_v37 = vpop.xlane.xlu1 %2758 }
0x320d   :  { %v2760_v24 = vsub.f32 %v2753_v33, %v2759_v37 }
0x320f   :  { %v2761_v57 = vmul.f32 1.442695, %v2760_v24 }
0x3210   :  { %v2772_v9 = vpop.permute.xlu1 %2771 }
0x3211   :  { %3391 = vpow2.f32 %v2761_v57 }
0x321b   :  { %v3392_v3 = vpop.eup %3391 }
0x321c   :  { %v2763_v43 = vsel %vm2756_vm11, %v3392_v3, 0.0 }
0x321d   :  { %2764 = vadd.xlane.f32.xlu0 %v2763_v43 }
0x3233   :  { %2768 = vrot.lane.b32.xlu0 %v4173_v59, %s3510_s8 }
0x32aa   :  { %v2765_v25 = vpop.xlane.xlu0 %2764 }
0x32ab   :  { %3393 = vrcp.f32 %v2765_v25 }
0x32ae   :  { %v2769_v53 = vpop.permute.xlu0 %2768 }
0x32af   :  { %v2778_v45 = vsel %vm2473_vm0, %v4009_v51, %v2769_v53 }
0x32b0   :  { %v2780_v46 = vsel %vm2779_vm12, %v2778_v45, %v2772_v9 }
0x32b5   :  { %v3394_v44 = vpop.eup %3393 }
0x32b6   :  { %v2767_v40 = vmul.f32 %v3394_v44, %v3392_v3 }
0x32b8   :  { %2775 = vrot.lane.b32.xlu1 %v2767_v40, %s3515_s14 }
0x332a   :  { %v2776_v5 = vpop.permute.xlu1 %2775 }
0x332b   :  { %v2782_v6 = vsel %vm2781_vm13, %v2780_v46, %v2776_v5 }
0x332c   :  { %2784 = vst.msk [vmem:[%s4252_s17] sm:$0x3] %vm2783_vm14, %v2782_v6 }
0x332d   :  { %2789 = vsyncpa [#allocation5], 1 }
0x332e   :  { %2790 = vsyncpa [#allocation7], 1 }
0x332f   :  { %2791 = vsyncpa [#allocation10], 1 }

</bundles_post_ra>
